<compile_context>
chip_gen: v6e
topology: v6e:2x2x1
jax: 0.10.0
libtpu: 0.0.40
codegen_flags: <defaults>
</compile_context>

<pallas_src>
import functools
import math

import numpy as np
import jax
import jax.numpy as jnp
from jax.experimental import pallas as pl
from jax.experimental.pallas import tpu as pltpu


# ----------------------------- configuration ------------------------------ #
class Config:
    vocab_size = 33
    hidden_size = 32
    num_hidden_layers = 2
    num_attention_heads = 2
    intermediate_size = 64
    max_position_embeddings = 64
    hidden_dropout_prob = 0.1      # identity at inference
    layer_norm_eps = 1e-5
    initializer_range = 0.02
    num_labels = 3
    pad_token_id = 1


# --------------------- in-kernel helpers (values, not refs) ----------------- #
def _ln(x, g, b, eps):
    mu = jnp.mean(x, axis=-1, keepdims=True)
    var = jnp.mean(jnp.square(x - mu), axis=-1, keepdims=True)
    return (x - mu) * jax.lax.rsqrt(var + eps) * g + b


def _softmax_rows(s):
    s = s - jnp.max(s, axis=-1, keepdims=True)
    p = jnp.exp(s)
    # EUP approximate reciprocal instead of a VPU divide.
    return p * pl.reciprocal(jnp.sum(p, axis=-1, keepdims=True), approx=True)


def _shift_rows_up(x, j):
    """out[t] = x[t + j] (circular; wrapped rows only land in positions masked later)."""
    if j == 0:
        return x
    return jnp.concatenate([x[j:, :], x[:j, :]], axis=0)


# ------------------------------ fused kernel ------------------------------- #
def _fused_kernel(*refs, num_layers, num_heads, head_dim, eps, head_type):
    (emb_ref, bias_ref,
     emb_ln_g, emb_ln_b,
     ln1_g, ln1_b, wqkv, bqkv, wo, bo,
     ln2_g, ln2_b, w1, b1, w2, b2,
     fin_g, fin_b) = refs[:18]
    head_refs = refs[18:-1]
    o_ref = refs[-1]

    bf16 = jnp.bfloat16
    f32 = jnp.float32
    H = num_heads * head_dim
    S = emb_ref.shape[1]
    scale = 1.0 / math.sqrt(head_dim)

    # additive attention mask broadcast ONCE, outside the layer loop (kept f32)
    bias2d = jnp.broadcast_to(bias_ref[0], (S, S))

    # embedding LayerNorm
    h = _ln(emb_ref[0], emb_ln_g[...], emb_ln_b[...], eps)                # (S, H) f32

    for l in range(num_layers):
        # ---- self attention block (pre-LN), fused QKV ----
        x = _ln(h, ln1_g[l], ln1_b[l], eps).astype(bf16)                  # MXU operand in bf16
        qkv = jnp.dot(x, wqkv[l], preferred_element_type=f32) + bqkv[l]   # (S, 3H) f32
        wo_l = wo[l]                                                      # (H, H) bf16
        attn = jnp.zeros((S, H), f32)
        for hd in range(num_heads):
            c = hd * head_dim
            q = qkv[:, c:c + head_dim].astype(bf16)
            k = qkv[:, H + c:H + c + head_dim].astype(bf16)
            v = qkv[:, 2 * H + c:2 * H + c + head_dim].astype(bf16)
            # q @ k^T without an explicit transpose: contract last dims of both operands.
            s = jax.lax.dot_general(q, k, (((1,), (1,)), ((), ())),
                                    preferred_element_type=f32)
            p = _softmax_rows(s * scale + bias2d)                         # f32 softmax
            ctx = jnp.dot(p.astype(bf16), v, preferred_element_type=f32)  # (S, dh)
            # fold the head directly into the output projection (no lane concat of heads)
            attn = attn + jnp.dot(ctx.astype(bf16), wo_l[c:c + head_dim, :],
                                  preferred_element_type=f32)
        h = h + attn + bo[l]

        # ---- feed forward block (pre-LN) ----
        x = _ln(h, ln2_g[l], ln2_b[l], eps).astype(bf16)
        ff = jnp.dot(x, w1[l], preferred_element_type=f32) + b1[l]
        ff = jax.nn.gelu(ff, approximate=True).astype(bf16)               # gelu in f32, cast for MXU
        h = h + jnp.dot(ff, w2[l], preferred_element_type=f32) + b2[l]

    feat = _ln(h, fin_g[...], fin_b[...], eps)                            # (S, H) f32

    # ---- fused classification head: only (1, num_labels) goes back to HBM ----
    if head_type == "CNN":
        conv_w, conv_mask, out_w, out_b = head_refs
        k_max = conv_w.shape[0]
        # conv1d(no bias) over ALL S rows as k_max shifted wide matmuls
        acc = jnp.dot(feat.astype(bf16), conv_w[0], preferred_element_type=f32)
        for j in range(1, k_max):
            xj = _shift_rows_up(feat, j).astype(bf16)
            acc = acc + jnp.dot(xj, conv_w[j], preferred_element_type=f32)     # (S, n*ocs)
        y = jnp.maximum(acc, 0.0) * conv_mask[...]       # ReLU; zero invalid (wrapped) tail rows
        pooled = jnp.max(y, axis=0, keepdims=True)       # max-pool over time -> (1, n*ocs)
        logits = jnp.dot(pooled.astype(bf16), out_w[...], preferred_element_type=f32) + out_b[...]
    else:
        dense_w, dense_b, out_w, out_b = head_refs
        cls = feat[0:1, :]                               # CLS token, (1, H)
        z = jnp.tanh(jnp.dot(cls.astype(bf16), dense_w[...], preferred_element_type=f32)
                     + dense_b[...])
        logits = jnp.dot(z.astype(bf16), out_w[...], preferred_element_type=f32) + out_b[...]

    o_ref[0] = logits


# ------------------------------ kernel wrapper ------------------------------ #
def esm_classifier_logits(params, input_ids, attention_mask, cfg, head_type,
                          kernel_sizes, ocs, single_buffer):
    B, S = input_ids.shape
    H = cfg.hidden_size
    nh = cfg.num_attention_heads
    dh = H // nh
    L = cfg.num_hidden_layers
    NL = cfg.num_labels
    bf16 = jnp.bfloat16

    # plain-JAX glue: embedding gather + learned positions, mask -> additive bias
    emb = params["word_emb"][input_ids] + params["pos_emb"][jnp.arange(S)][None]
    bias = ((1.0 - attention_mask.astype(jnp.float32)) * -1e9).reshape(B, 1, S)

    def wspec(shape):
        nd = len(shape)
        idx = lambda b, _nd=nd: (0,) * _nd      # constant block index over the grid
        if single_buffer:
            return pl.BlockSpec(shape, idx, pipeline_mode=pl.Buffered(1))
        return pl.BlockSpec(shape, idx)

    inputs = [
        emb, bias,
        params["emb_ln_g"], params["emb_ln_b"],
        params["ln1_g"], params["ln1_b"],
        params["wqkv"].astype(bf16), params["bqkv"],
        params["wo"].astype(bf16), params["bo"],
        params["ln2_g"], params["ln2_b"],
        params["w1"].astype(bf16), params["b1"],
        params["w2"].astype(bf16), params["b2"],
        params["final_ln_g"], params["final_ln_b"],
    ]
    in_specs = [
        pl.BlockSpec((1, S, H), lambda b: (b, 0, 0)),    # embeddings (per batch element)
        pl.BlockSpec((1, 1, S), lambda b: (b, 0, 0)),    # additive mask (per batch element)
    ] + [wspec(x.shape) for x in inputs[2:]]

    if head_type == "CNN":
        n = len(kernel_sizes)
        k_max = max(kernel_sizes)
        # zero-pad each conv weight along k and concat output channels into one wide weight
        conv_w_all = jnp.zeros((k_max, H, n * ocs), jnp.float32)
        for ci, k in enumerate(kernel_sizes):
            conv_w_all = conv_w_all.at[:k, :, ci * ocs:(ci + 1) * ocs].set(params["conv_w"][ci])
        # rows t >= S - k + 1 of conv c are invalid -> zeroed post-ReLU before the max-pool
        mask_np = np.zeros((S, n * ocs), np.float32)
        for ci, k in enumerate(kernel_sizes):
            mask_np[: S - k + 1, ci * ocs:(ci + 1) * ocs] = 1.0
        head_inputs = [conv_w_all.astype(bf16), jnp.asarray(mask_np),
                       params["cnn_out_w"].astype(bf16), params["cnn_out_b"]]
    else:
        head_inputs = [params["dense_w"].astype(bf16), params["dense_b"],
                       params["lin_out_w"].astype(bf16), params["lin_out_b"]]
    inputs += head_inputs
    in_specs += [wspec(x.shape) for x in head_inputs]

    # explicit scoped-VMEM limit, sized from the actual buffers with headroom
    total_bytes = sum(int(np.prod(x.shape)) * x.dtype.itemsize for x in inputs)
    vmem_limit = int(min(64 << 20, max(32 << 20, 2 * total_bytes + (4 << 20))))

    kernel = functools.partial(_fused_kernel, num_layers=L, num_heads=nh,
                               head_dim=dh, eps=cfg.layer_norm_eps, head_type=head_type)
    logits = pl.pallas_call(
        kernel,
        out_shape=jax.ShapeDtypeStruct((B, 1, NL), jnp.float32),
        grid=(B,),
        in_specs=in_specs,
        out_specs=pl.BlockSpec((1, 1, NL), lambda b: (b, 0, 0)),
        compiler_params=pltpu.CompilerParams(
            dimension_semantics=("parallel",),
            vmem_limit_bytes=vmem_limit),
    )(*inputs)
    return logits.reshape(B, NL)


# --------------------------------- forward --------------------------------- #
def cross_entropy(logits, labels):
    # single_label_classification branch (num_labels > 1, integer labels)
    logz = jax.nn.logsumexp(logits, axis=-1)
    picked = jnp.take_along_axis(logits, labels[:, None], axis=-1)[:, 0]
    return jnp.mean(logz - picked)


def make_forward(cfg, head_type, kernel_sizes, ocs, single_buffer=True):
    def forward(params, input_ids, attention_mask, labels):
        logits = esm_classifier_logits(params, input_ids, attention_mask, cfg,
                                       head_type, kernel_sizes, ocs, single_buffer)
        loss = cross_entropy(logits, labels)
        return loss, logits
    return jax.jit(forward)


# ------------------------------ parameter init ----------------------------- #
def init_params(key, cfg, kernel_sizes, ocs):
    keys = iter(jax.random.split(key, 64))
    std = cfg.initializer_range
    H, inter, L = cfg.hidden_size, cfg.intermediate_size, cfg.num_hidden_layers

    def normal(shape):
        return std * jax.random.normal(next(keys), shape, jnp.float32)

    word_emb = normal((cfg.vocab_size, H)).at[cfg.pad_token_id].set(0.0)
    params = dict(
        word_emb=word_emb,
        pos_emb=normal((cfg.max_position_embeddings, H)),
        emb_ln_g=jnp.ones((1, H), jnp.float32), emb_ln_b=jnp.zeros((1, H), jnp.float32),
        final_ln_g=jnp.ones((1, H), jnp.float32), final_ln_b=jnp.zeros((1, H), jnp.float32),
        # per-layer weights stacked on a leading layer axis (constant index_map in the kernel)
        ln1_g=jnp.ones((L, 1, H), jnp.float32), ln1_b=jnp.zeros((L, 1, H), jnp.float32),
        ln2_g=jnp.ones((L, 1, H), jnp.float32), ln2_b=jnp.zeros((L, 1, H), jnp.float32),
        wqkv=normal((L, H, 3 * H)), bqkv=jnp.zeros((L, 1, 3 * H), jnp.float32),
        wo=normal((L, H, H)), bo=jnp.zeros((L, 1, H), jnp.float32),
        w1=normal((L, H, inter)), b1=jnp.zeros((L, 1, inter), jnp.float32),
        w2=normal((L, inter, H)), b2=jnp.zeros((L, 1, H), jnp.float32),
        # CNN classification head: torch Conv1d weight (OC, H, k) stored as (k, H, OC)
        conv_w=[normal((k, H, ocs)) for k in kernel_sizes],
        cnn_out_w=normal((ocs * len(kernel_sizes), cfg.num_labels)),
        cnn_out_b=jnp.zeros((1, cfg.num_labels), jnp.float32),
        # Linear classification head
        dense_w=normal((H, H)), dense_b=jnp.zeros((1, H), jnp.float32),
        lin_out_w=normal((H, cfg.num_labels)),
        lin_out_b=jnp.zeros((1, cfg.num_labels), jnp.float32),
    )
    return params


# ----------------------------------- main ----------------------------------- #
if __name__ == "__main__":
    cfg = Config()
    kernel_sizes = [2, 3, 5]
    ocs = 8
    B, S = 2, 8

    root = jax.random.PRNGKey(0)
    k_params, k_ids, k_labels = jax.random.split(root, 3)

    params = init_params(k_params, cfg, kernel_sizes, ocs)
    input_ids = jax.random.randint(k_ids, (B, S), 0, cfg.vocab_size, dtype=jnp.int32)
    attention_mask = jnp.ones((B, S), jnp.int32).at[:, -1].set(0)   # one padded position
    labels = jax.random.randint(k_labels, (B,), 0, cfg.num_labels, dtype=jnp.int32)

    def build(single_buffer):
        return (make_forward(cfg, "CNN", kernel_sizes, ocs, single_buffer),
                make_forward(cfg, "Linear", kernel_sizes, ocs, single_buffer))

    fwd_cnn, fwd_lin = build(True)
    try:
        loss_cnn, logits_cnn = fwd_cnn(params, input_ids, attention_mask, labels)
    except Exception:
        # TODO(synk): this jax build rejected pipeline_mode=pl.Buffered(1) for the constant
        #             weight blocks; fall back to default double buffering.
        fwd_cnn, fwd_lin = build(False)
        loss_cnn, logits_cnn = fwd_cnn(params, input_ids, attention_mask, labels)

    loss_lin, logits_lin = fwd_lin(params, input_ids, attention_mask, labels)
    jax.block_until_ready((loss_cnn, logits_cnn, loss_lin, logits_lin))

    assert logits_cnn.shape == (B, cfg.num_labels)
    assert logits_lin.shape == (B, cfg.num_labels)
    assert bool(jnp.isfinite(loss_cnn)) and bool(jnp.isfinite(loss_lin))
    assert bool(jnp.all(jnp.isfinite(logits_cnn))) and bool(jnp.all(jnp.isfinite(logits_lin)))
    print("KERNEL_OK")
</pallas_src>

<mosaic_0001>
module attributes {stable_mosaic.version = 11 : i64} {
  func.func @_fused_kernel(%arg0: i32, %arg1: memref<1x8x32xf32, #tpu.memory_space<vmem>>, %arg2: memref<1x1x8xf32, #tpu.memory_space<vmem>>, %arg3: memref<1x32xf32, #tpu.memory_space<vmem>>, %arg4: memref<1x32xf32, #tpu.memory_space<vmem>>, %arg5: memref<2x1x32xf32, #tpu.memory_space<vmem>>, %arg6: memref<2x1x32xf32, #tpu.memory_space<vmem>>, %arg7: memref<2x32x96xbf16, #tpu.memory_space<vmem>>, %arg8: memref<2x1x96xf32, #tpu.memory_space<vmem>>, %arg9: memref<2x32x32xbf16, #tpu.memory_space<vmem>>, %arg10: memref<2x1x32xf32, #tpu.memory_space<vmem>>, %arg11: memref<2x1x32xf32, #tpu.memory_space<vmem>>, %arg12: memref<2x1x32xf32, #tpu.memory_space<vmem>>, %arg13: memref<2x32x64xbf16, #tpu.memory_space<vmem>>, %arg14: memref<2x1x64xf32, #tpu.memory_space<vmem>>, %arg15: memref<2x64x32xbf16, #tpu.memory_space<vmem>>, %arg16: memref<2x1x32xf32, #tpu.memory_space<vmem>>, %arg17: memref<1x32xf32, #tpu.memory_space<vmem>>, %arg18: memref<1x32xf32, #tpu.memory_space<vmem>>, %arg19: memref<5x32x24xbf16, #tpu.memory_space<vmem>>, %arg20: memref<8x24xf32, #tpu.memory_space<vmem>>, %arg21: memref<24x3xbf16, #tpu.memory_space<vmem>>, %arg22: memref<1x3xf32, #tpu.memory_space<vmem>>, %arg23: memref<1x1x3xf32, #tpu.memory_space<vmem>>) attributes {dimension_semantics = [#tpu.dimension_semantics<parallel>], iteration_bounds = array<i64: 2>, scalar_prefetch = 0 : i64, scratch_operands = 0 : i64, tpu.core_type = #tpu.core_type<tc>, window_params = [{transform_indices = @transform_0, window_bounds = array<i64: 1, 8, 32>}, {transform_indices = @transform_1, window_bounds = array<i64: 1, 1, 8>}, {pipeline_mode = #tpu.pipeline_mode<synchronous>, transform_indices = @transform_2, window_bounds = array<i64: 1, 32>}, {pipeline_mode = #tpu.pipeline_mode<synchronous>, transform_indices = @transform_3, window_bounds = array<i64: 1, 32>}, {pipeline_mode = #tpu.pipeline_mode<synchronous>, transform_indices = @transform_4, window_bounds = array<i64: 2, 1, 32>}, {pipeline_mode = #tpu.pipeline_mode<synchronous>, transform_indices = @transform_5, window_bounds = array<i64: 2, 1, 32>}, {pipeline_mode = #tpu.pipeline_mode<synchronous>, transform_indices = @transform_6, window_bounds = array<i64: 2, 32, 96>}, {pipeline_mode = #tpu.pipeline_mode<synchronous>, transform_indices = @transform_7, window_bounds = array<i64: 2, 1, 96>}, {pipeline_mode = #tpu.pipeline_mode<synchronous>, transform_indices = @transform_8, window_bounds = array<i64: 2, 32, 32>}, {pipeline_mode = #tpu.pipeline_mode<synchronous>, transform_indices = @transform_9, window_bounds = array<i64: 2, 1, 32>}, {pipeline_mode = #tpu.pipeline_mode<synchronous>, transform_indices = @transform_10, window_bounds = array<i64: 2, 1, 32>}, {pipeline_mode = #tpu.pipeline_mode<synchronous>, transform_indices = @transform_11, window_bounds = array<i64: 2, 1, 32>}, {pipeline_mode = #tpu.pipeline_mode<synchronous>, transform_indices = @transform_12, window_bounds = array<i64: 2, 32, 64>}, {pipeline_mode = #tpu.pipeline_mode<synchronous>, transform_indices = @transform_13, window_bounds = array<i64: 2, 1, 64>}, {pipeline_mode = #tpu.pipeline_mode<synchronous>, transform_indices = @transform_14, window_bounds = array<i64: 2, 64, 32>}, {pipeline_mode = #tpu.pipeline_mode<synchronous>, transform_indices = @transform_15, window_bounds = array<i64: 2, 1, 32>}, {pipeline_mode = #tpu.pipeline_mode<synchronous>, transform_indices = @transform_16, window_bounds = array<i64: 1, 32>}, {pipeline_mode = #tpu.pipeline_mode<synchronous>, transform_indices = @transform_17, window_bounds = array<i64: 1, 32>}, {pipeline_mode = #tpu.pipeline_mode<synchronous>, transform_indices = @transform_18, window_bounds = array<i64: 5, 32, 24>}, {pipeline_mode = #tpu.pipeline_mode<synchronous>, transform_indices = @transform_19, window_bounds = array<i64: 8, 24>}, {pipeline_mode = #tpu.pipeline_mode<synchronous>, transform_indices = @transform_20, window_bounds = array<i64: 24, 3>}, {pipeline_mode = #tpu.pipeline_mode<synchronous>, transform_indices = @transform_21, window_bounds = array<i64: 1, 3>}, {transform_indices = @transform_22, window_bounds = array<i64: 1, 1, 3>}]} {
    %c0 = arith.constant 0 : index
    %c0_0 = arith.constant 0 : index
    %c0_1 = arith.constant 0 : index
    %0 = vector.load %arg2[%c0, %c0_0, %c0_1] : memref<1x1x8xf32, #tpu.memory_space<vmem>>, vector<1x1x8xf32>
    %1 = vector.shape_cast %0 : vector<1x1x8xf32> to vector<1x8xf32>
    %2 = vector.shape_cast %1 : vector<1x8xf32> to vector<1x8xf32>
    %3 = vector.broadcast %2 : vector<1x8xf32> to vector<8x8xf32>
    %c0_2 = arith.constant 0 : index
    %c0_3 = arith.constant 0 : index
    %c0_4 = arith.constant 0 : index
    %4 = vector.load %arg1[%c0_2, %c0_3, %c0_4] : memref<1x8x32xf32, #tpu.memory_space<vmem>>, vector<1x8x32xf32>
    %5 = vector.shape_cast %4 : vector<1x8x32xf32> to vector<8x32xf32>
    %c0_5 = arith.constant 0 : index
    %c0_6 = arith.constant 0 : index
    %6 = vector.load %arg3[%c0_5, %c0_6] : memref<1x32xf32, #tpu.memory_space<vmem>>, vector<1x32xf32>
    %c0_7 = arith.constant 0 : index
    %c0_8 = arith.constant 0 : index
    %7 = vector.load %arg4[%c0_7, %c0_8] : memref<1x32xf32, #tpu.memory_space<vmem>>, vector<1x32xf32>
    %cst = arith.constant dense<0.000000e+00> : vector<8xf32>
    %8 = vector.multi_reduction <add>, %5, %cst [1] : vector<8x32xf32> to vector<8xf32>
    %9 = vector.shape_cast %8 : vector<8xf32> to vector<8x1xf32>
    %cst_9 = arith.constant 3.200000e+01 : f32
    %10 = vector.broadcast %cst_9 : f32 to vector<8x1xf32>
    %11 = arith.divf %9, %10 : vector<8x1xf32>
    %12 = vector.broadcast %11 : vector<8x1xf32> to vector<8x32xf32>
    %13 = arith.subf %5, %12 : vector<8x32xf32>
    %14 = arith.mulf %13, %13 : vector<8x32xf32>
    %cst_10 = arith.constant dense<0.000000e+00> : vector<8xf32>
    %15 = vector.multi_reduction <add>, %14, %cst_10 [1] : vector<8x32xf32> to vector<8xf32>
    %16 = vector.shape_cast %15 : vector<8xf32> to vector<8x1xf32>
    %cst_11 = arith.constant 3.200000e+01 : f32
    %17 = vector.broadcast %cst_11 : f32 to vector<8x1xf32>
    %18 = arith.divf %16, %17 : vector<8x1xf32>
    %19 = vector.broadcast %11 : vector<8x1xf32> to vector<8x32xf32>
    %20 = arith.subf %5, %19 : vector<8x32xf32>
    %cst_12 = arith.constant 9.99999974E-6 : f32
    %21 = vector.broadcast %cst_12 : f32 to vector<8x1xf32>
    %22 = arith.addf %18, %21 : vector<8x1xf32>
    %23 = math.rsqrt %22 : vector<8x1xf32>
    %24 = vector.broadcast %23 : vector<8x1xf32> to vector<8x32xf32>
    %25 = arith.mulf %20, %24 : vector<8x32xf32>
    %26 = vector.broadcast %6 : vector<1x32xf32> to vector<8x32xf32>
    %27 = arith.mulf %25, %26 : vector<8x32xf32>
    %28 = vector.broadcast %7 : vector<1x32xf32> to vector<8x32xf32>
    %29 = arith.addf %27, %28 : vector<8x32xf32>
    %c0_13 = arith.constant 0 : index
    %c0_14 = arith.constant 0 : index
    %c0_15 = arith.constant 0 : index
    %30 = vector.load %arg5[%c0_13, %c0_14, %c0_15] : memref<2x1x32xf32, #tpu.memory_space<vmem>>, vector<1x1x32xf32>
    %31 = vector.shape_cast %30 : vector<1x1x32xf32> to vector<1x32xf32>
    %c0_16 = arith.constant 0 : index
    %c0_17 = arith.constant 0 : index
    %c0_18 = arith.constant 0 : index
    %32 = vector.load %arg6[%c0_16, %c0_17, %c0_18] : memref<2x1x32xf32, #tpu.memory_space<vmem>>, vector<1x1x32xf32>
    %33 = vector.shape_cast %32 : vector<1x1x32xf32> to vector<1x32xf32>
    %cst_19 = arith.constant dense<0.000000e+00> : vector<8xf32>
    %34 = vector.multi_reduction <add>, %29, %cst_19 [1] : vector<8x32xf32> to vector<8xf32>
    %35 = vector.shape_cast %34 : vector<8xf32> to vector<8x1xf32>
    %cst_20 = arith.constant 3.200000e+01 : f32
    %36 = vector.broadcast %cst_20 : f32 to vector<8x1xf32>
    %37 = arith.divf %35, %36 : vector<8x1xf32>
    %38 = vector.broadcast %37 : vector<8x1xf32> to vector<8x32xf32>
    %39 = arith.subf %29, %38 : vector<8x32xf32>
    %40 = arith.mulf %39, %39 : vector<8x32xf32>
    %cst_21 = arith.constant dense<0.000000e+00> : vector<8xf32>
    %41 = vector.multi_reduction <add>, %40, %cst_21 [1] : vector<8x32xf32> to vector<8xf32>
    %42 = vector.shape_cast %41 : vector<8xf32> to vector<8x1xf32>
    %cst_22 = arith.constant 3.200000e+01 : f32
    %43 = vector.broadcast %cst_22 : f32 to vector<8x1xf32>
    %44 = arith.divf %42, %43 : vector<8x1xf32>
    %45 = vector.broadcast %37 : vector<8x1xf32> to vector<8x32xf32>
    %46 = arith.subf %29, %45 : vector<8x32xf32>
    %cst_23 = arith.constant 9.99999974E-6 : f32
    %47 = vector.broadcast %cst_23 : f32 to vector<8x1xf32>
    %48 = arith.addf %44, %47 : vector<8x1xf32>
    %49 = math.rsqrt %48 : vector<8x1xf32>
    %50 = vector.broadcast %49 : vector<8x1xf32> to vector<8x32xf32>
    %51 = arith.mulf %46, %50 : vector<8x32xf32>
    %52 = vector.broadcast %31 : vector<1x32xf32> to vector<8x32xf32>
    %53 = arith.mulf %51, %52 : vector<8x32xf32>
    %54 = vector.broadcast %33 : vector<1x32xf32> to vector<8x32xf32>
    %55 = arith.addf %53, %54 : vector<8x32xf32>
    %56 = arith.truncf %55 : vector<8x32xf32> to vector<8x32xbf16>
    %c0_24 = arith.constant 0 : index
    %c0_25 = arith.constant 0 : index
    %c0_26 = arith.constant 0 : index
    %57 = vector.load %arg7[%c0_24, %c0_25, %c0_26] : memref<2x32x96xbf16, #tpu.memory_space<vmem>>, vector<1x32x96xbf16>
    %58 = vector.shape_cast %57 : vector<1x32x96xbf16> to vector<32x96xbf16>
    %cst_27 = arith.constant dense<0.000000e+00> : vector<8x96xf32>
    %59 = tpu.matmul %56, %58, %cst_27 {dimension_numbers = #tpu.dot_dimension_numbers<[1], [0], [0], [1], [0, 0, 1, 1], [], []>} : vector<8x32xbf16>, vector<32x96xbf16>, vector<8x96xf32> -> vector<8x96xf32>
    %c0_28 = arith.constant 0 : index
    %c0_29 = arith.constant 0 : index
    %c0_30 = arith.constant 0 : index
    %60 = vector.load %arg8[%c0_28, %c0_29, %c0_30] : memref<2x1x96xf32, #tpu.memory_space<vmem>>, vector<1x1x96xf32>
    %61 = vector.shape_cast %60 : vector<1x1x96xf32> to vector<1x96xf32>
    %62 = vector.broadcast %61 : vector<1x96xf32> to vector<8x96xf32>
    %63 = arith.addf %59, %62 : vector<8x96xf32>
    %c0_31 = arith.constant 0 : index
    %c0_32 = arith.constant 0 : index
    %c0_33 = arith.constant 0 : index
    %64 = vector.load %arg9[%c0_31, %c0_32, %c0_33] : memref<2x32x32xbf16, #tpu.memory_space<vmem>>, vector<1x32x32xbf16>
    %65 = vector.shape_cast %64 : vector<1x32x32xbf16> to vector<32x32xbf16>
    %cst_34 = arith.constant 0.000000e+00 : f32
    %66 = vector.broadcast %cst_34 : f32 to vector<8x32xf32>
    %67 = vector.extract_strided_slice %63 {offsets = [0, 0], sizes = [8, 16], strides = [1, 1]} : vector<8x96xf32> to vector<8x16xf32>
    %68 = arith.truncf %67 : vector<8x16xf32> to vector<8x16xbf16>
    %69 = vector.extract_strided_slice %63 {offsets = [0, 32], sizes = [8, 16], strides = [1, 1]} : vector<8x96xf32> to vector<8x16xf32>
    %70 = arith.truncf %69 : vector<8x16xf32> to vector<8x16xbf16>
    %71 = vector.extract_strided_slice %63 {offsets = [0, 64], sizes = [8, 16], strides = [1, 1]} : vector<8x96xf32> to vector<8x16xf32>
    %72 = arith.truncf %71 : vector<8x16xf32> to vector<8x16xbf16>
    %cst_35 = arith.constant dense<0.000000e+00> : vector<8x8xf32>
    %73 = tpu.matmul %68, %70, %cst_35 {dimension_numbers = #tpu.dot_dimension_numbers<[1], [1], [0], [0], [0, 0, 1, 0], [], []>} : vector<8x16xbf16>, vector<8x16xbf16>, vector<8x8xf32> -> vector<8x8xf32>
    %cst_36 = arith.constant 2.500000e-01 : f32
    %74 = vector.broadcast %cst_36 : f32 to vector<8x8xf32>
    %75 = arith.mulf %73, %74 : vector<8x8xf32>
    %76 = arith.addf %75, %3 : vector<8x8xf32>
    %cst_37 = arith.constant dense<0xFF800000> : vector<8xf32>
    %77 = vector.multi_reduction <maximumf>, %76, %cst_37 [1] : vector<8x8xf32> to vector<8xf32>
    %78 = vector.shape_cast %77 : vector<8xf32> to vector<8x1xf32>
    %79 = vector.broadcast %78 : vector<8x1xf32> to vector<8x8xf32>
    %80 = arith.subf %76, %79 : vector<8x8xf32>
    %81 = math.exp %80 : vector<8x8xf32>
    %cst_38 = arith.constant dense<0.000000e+00> : vector<8xf32>
    %82 = vector.multi_reduction <add>, %81, %cst_38 [1] : vector<8x8xf32> to vector<8xf32>
    %83 = vector.shape_cast %82 : vector<8xf32> to vector<8x1xf32>
    %84 = tpu.reciprocal %83 {approx = true} : vector<8x1xf32> -> vector<8x1xf32>
    %85 = vector.broadcast %84 : vector<8x1xf32> to vector<8x8xf32>
    %86 = arith.mulf %81, %85 : vector<8x8xf32>
    %87 = arith.truncf %86 : vector<8x8xf32> to vector<8x8xbf16>
    %cst_39 = arith.constant dense<0.000000e+00> : vector<8x16xf32>
    %88 = tpu.matmul %87, %72, %cst_39 {dimension_numbers = #tpu.dot_dimension_numbers<[1], [0], [0], [1], [0, 0, 1, 1], [], []>} : vector<8x8xbf16>, vector<8x16xbf16>, vector<8x16xf32> -> vector<8x16xf32>
    %89 = arith.truncf %88 : vector<8x16xf32> to vector<8x16xbf16>
    %90 = vector.extract_strided_slice %65 {offsets = [0, 0], sizes = [16, 32], strides = [1, 1]} : vector<32x32xbf16> to vector<16x32xbf16>
    %cst_40 = arith.constant dense<0.000000e+00> : vector<8x32xf32>
    %91 = tpu.matmul %89, %90, %cst_40 {dimension_numbers = #tpu.dot_dimension_numbers<[1], [0], [0], [1], [0, 0, 1, 1], [], []>} : vector<8x16xbf16>, vector<16x32xbf16>, vector<8x32xf32> -> vector<8x32xf32>
    %92 = arith.addf %66, %91 : vector<8x32xf32>
    %93 = vector.extract_strided_slice %63 {offsets = [0, 16], sizes = [8, 16], strides = [1, 1]} : vector<8x96xf32> to vector<8x16xf32>
    %94 = arith.truncf %93 : vector<8x16xf32> to vector<8x16xbf16>
    %95 = vector.extract_strided_slice %63 {offsets = [0, 48], sizes = [8, 16], strides = [1, 1]} : vector<8x96xf32> to vector<8x16xf32>
    %96 = arith.truncf %95 : vector<8x16xf32> to vector<8x16xbf16>
    %97 = vector.extract_strided_slice %63 {offsets = [0, 80], sizes = [8, 16], strides = [1, 1]} : vector<8x96xf32> to vector<8x16xf32>
    %98 = arith.truncf %97 : vector<8x16xf32> to vector<8x16xbf16>
    %cst_41 = arith.constant dense<0.000000e+00> : vector<8x8xf32>
    %99 = tpu.matmul %94, %96, %cst_41 {dimension_numbers = #tpu.dot_dimension_numbers<[1], [1], [0], [0], [0, 0, 1, 0], [], []>} : vector<8x16xbf16>, vector<8x16xbf16>, vector<8x8xf32> -> vector<8x8xf32>
    %cst_42 = arith.constant 2.500000e-01 : f32
    %100 = vector.broadcast %cst_42 : f32 to vector<8x8xf32>
    %101 = arith.mulf %99, %100 : vector<8x8xf32>
    %102 = arith.addf %101, %3 : vector<8x8xf32>
    %cst_43 = arith.constant dense<0xFF800000> : vector<8xf32>
    %103 = vector.multi_reduction <maximumf>, %102, %cst_43 [1] : vector<8x8xf32> to vector<8xf32>
    %104 = vector.shape_cast %103 : vector<8xf32> to vector<8x1xf32>
    %105 = vector.broadcast %104 : vector<8x1xf32> to vector<8x8xf32>
    %106 = arith.subf %102, %105 : vector<8x8xf32>
    %107 = math.exp %106 : vector<8x8xf32>
    %cst_44 = arith.constant dense<0.000000e+00> : vector<8xf32>
    %108 = vector.multi_reduction <add>, %107, %cst_44 [1] : vector<8x8xf32> to vector<8xf32>
    %109 = vector.shape_cast %108 : vector<8xf32> to vector<8x1xf32>
    %110 = tpu.reciprocal %109 {approx = true} : vector<8x1xf32> -> vector<8x1xf32>
    %111 = vector.broadcast %110 : vector<8x1xf32> to vector<8x8xf32>
    %112 = arith.mulf %107, %111 : vector<8x8xf32>
    %113 = arith.truncf %112 : vector<8x8xf32> to vector<8x8xbf16>
    %cst_45 = arith.constant dense<0.000000e+00> : vector<8x16xf32>
    %114 = tpu.matmul %113, %98, %cst_45 {dimension_numbers = #tpu.dot_dimension_numbers<[1], [0], [0], [1], [0, 0, 1, 1], [], []>} : vector<8x8xbf16>, vector<8x16xbf16>, vector<8x16xf32> -> vector<8x16xf32>
    %115 = arith.truncf %114 : vector<8x16xf32> to vector<8x16xbf16>
    %116 = vector.extract_strided_slice %65 {offsets = [16, 0], sizes = [16, 32], strides = [1, 1]} : vector<32x32xbf16> to vector<16x32xbf16>
    %cst_46 = arith.constant dense<0.000000e+00> : vector<8x32xf32>
    %117 = tpu.matmul %115, %116, %cst_46 {dimension_numbers = #tpu.dot_dimension_numbers<[1], [0], [0], [1], [0, 0, 1, 1], [], []>} : vector<8x16xbf16>, vector<16x32xbf16>, vector<8x32xf32> -> vector<8x32xf32>
    %118 = arith.addf %92, %117 : vector<8x32xf32>
    %119 = arith.addf %29, %118 : vector<8x32xf32>
    %c0_47 = arith.constant 0 : index
    %c0_48 = arith.constant 0 : index
    %c0_49 = arith.constant 0 : index
    %120 = vector.load %arg10[%c0_47, %c0_48, %c0_49] : memref<2x1x32xf32, #tpu.memory_space<vmem>>, vector<1x1x32xf32>
    %121 = vector.shape_cast %120 : vector<1x1x32xf32> to vector<1x32xf32>
    %122 = vector.broadcast %121 : vector<1x32xf32> to vector<8x32xf32>
    %123 = arith.addf %119, %122 : vector<8x32xf32>
    %c0_50 = arith.constant 0 : index
    %c0_51 = arith.constant 0 : index
    %c0_52 = arith.constant 0 : index
    %124 = vector.load %arg11[%c0_50, %c0_51, %c0_52] : memref<2x1x32xf32, #tpu.memory_space<vmem>>, vector<1x1x32xf32>
    %125 = vector.shape_cast %124 : vector<1x1x32xf32> to vector<1x32xf32>
    %c0_53 = arith.constant 0 : index
    %c0_54 = arith.constant 0 : index
    %c0_55 = arith.constant 0 : index
    %126 = vector.load %arg12[%c0_53, %c0_54, %c0_55] : memref<2x1x32xf32, #tpu.memory_space<vmem>>, vector<1x1x32xf32>
    %127 = vector.shape_cast %126 : vector<1x1x32xf32> to vector<1x32xf32>
    %cst_56 = arith.constant dense<0.000000e+00> : vector<8xf32>
    %128 = vector.multi_reduction <add>, %123, %cst_56 [1] : vector<8x32xf32> to vector<8xf32>
    %129 = vector.shape_cast %128 : vector<8xf32> to vector<8x1xf32>
    %cst_57 = arith.constant 3.200000e+01 : f32
    %130 = vector.broadcast %cst_57 : f32 to vector<8x1xf32>
    %131 = arith.divf %129, %130 : vector<8x1xf32>
    %132 = vector.broadcast %131 : vector<8x1xf32> to vector<8x32xf32>
    %133 = arith.subf %123, %132 : vector<8x32xf32>
    %134 = arith.mulf %133, %133 : vector<8x32xf32>
    %cst_58 = arith.constant dense<0.000000e+00> : vector<8xf32>
    %135 = vector.multi_reduction <add>, %134, %cst_58 [1] : vector<8x32xf32> to vector<8xf32>
    %136 = vector.shape_cast %135 : vector<8xf32> to vector<8x1xf32>
    %cst_59 = arith.constant 3.200000e+01 : f32
    %137 = vector.broadcast %cst_59 : f32 to vector<8x1xf32>
    %138 = arith.divf %136, %137 : vector<8x1xf32>
    %139 = vector.broadcast %131 : vector<8x1xf32> to vector<8x32xf32>
    %140 = arith.subf %123, %139 : vector<8x32xf32>
    %cst_60 = arith.constant 9.99999974E-6 : f32
    %141 = vector.broadcast %cst_60 : f32 to vector<8x1xf32>
    %142 = arith.addf %138, %141 : vector<8x1xf32>
    %143 = math.rsqrt %142 : vector<8x1xf32>
    %144 = vector.broadcast %143 : vector<8x1xf32> to vector<8x32xf32>
    %145 = arith.mulf %140, %144 : vector<8x32xf32>
    %146 = vector.broadcast %125 : vector<1x32xf32> to vector<8x32xf32>
    %147 = arith.mulf %145, %146 : vector<8x32xf32>
    %148 = vector.broadcast %127 : vector<1x32xf32> to vector<8x32xf32>
    %149 = arith.addf %147, %148 : vector<8x32xf32>
    %150 = arith.truncf %149 : vector<8x32xf32> to vector<8x32xbf16>
    %c0_61 = arith.constant 0 : index
    %c0_62 = arith.constant 0 : index
    %c0_63 = arith.constant 0 : index
    %151 = vector.load %arg13[%c0_61, %c0_62, %c0_63] : memref<2x32x64xbf16, #tpu.memory_space<vmem>>, vector<1x32x64xbf16>
    %152 = vector.shape_cast %151 : vector<1x32x64xbf16> to vector<32x64xbf16>
    %cst_64 = arith.constant dense<0.000000e+00> : vector<8x64xf32>
    %153 = tpu.matmul %150, %152, %cst_64 {dimension_numbers = #tpu.dot_dimension_numbers<[1], [0], [0], [1], [0, 0, 1, 1], [], []>} : vector<8x32xbf16>, vector<32x64xbf16>, vector<8x64xf32> -> vector<8x64xf32>
    %c0_65 = arith.constant 0 : index
    %c0_66 = arith.constant 0 : index
    %c0_67 = arith.constant 0 : index
    %154 = vector.load %arg14[%c0_65, %c0_66, %c0_67] : memref<2x1x64xf32, #tpu.memory_space<vmem>>, vector<1x1x64xf32>
    %155 = vector.shape_cast %154 : vector<1x1x64xf32> to vector<1x64xf32>
    %156 = vector.broadcast %155 : vector<1x64xf32> to vector<8x64xf32>
    %157 = arith.addf %153, %156 : vector<8x64xf32>
    %158 = arith.mulf %157, %157 : vector<8x64xf32>
    %159 = arith.mulf %157, %158 : vector<8x64xf32>
    %cst_68 = arith.constant 4.471500e-02 : f32
    %160 = vector.broadcast %cst_68 : f32 to vector<8x64xf32>
    %161 = arith.mulf %160, %159 : vector<8x64xf32>
    %162 = arith.addf %157, %161 : vector<8x64xf32>
    %cst_69 = arith.constant 0.797884583 : f32
    %163 = vector.broadcast %cst_69 : f32 to vector<8x64xf32>
    %164 = arith.mulf %163, %162 : vector<8x64xf32>
    %165 = math.tanh %164 : vector<8x64xf32>
    %cst_70 = arith.constant 1.000000e+00 : f32
    %166 = vector.broadcast %cst_70 : f32 to vector<8x64xf32>
    %167 = arith.addf %166, %165 : vector<8x64xf32>
    %cst_71 = arith.constant 5.000000e-01 : f32
    %168 = vector.broadcast %cst_71 : f32 to vector<8x64xf32>
    %169 = arith.mulf %168, %167 : vector<8x64xf32>
    %170 = arith.mulf %157, %169 : vector<8x64xf32>
    %171 = arith.truncf %170 : vector<8x64xf32> to vector<8x64xbf16>
    %c0_72 = arith.constant 0 : index
    %c0_73 = arith.constant 0 : index
    %c0_74 = arith.constant 0 : index
    %172 = vector.load %arg15[%c0_72, %c0_73, %c0_74] : memref<2x64x32xbf16, #tpu.memory_space<vmem>>, vector<1x64x32xbf16>
    %173 = vector.shape_cast %172 : vector<1x64x32xbf16> to vector<64x32xbf16>
    %cst_75 = arith.constant dense<0.000000e+00> : vector<8x32xf32>
    %174 = tpu.matmul %171, %173, %cst_75 {dimension_numbers = #tpu.dot_dimension_numbers<[1], [0], [0], [1], [0, 0, 1, 1], [], []>} : vector<8x64xbf16>, vector<64x32xbf16>, vector<8x32xf32> -> vector<8x32xf32>
    %175 = arith.addf %123, %174 : vector<8x32xf32>
    %c0_76 = arith.constant 0 : index
    %c0_77 = arith.constant 0 : index
    %c0_78 = arith.constant 0 : index
    %176 = vector.load %arg16[%c0_76, %c0_77, %c0_78] : memref<2x1x32xf32, #tpu.memory_space<vmem>>, vector<1x1x32xf32>
    %177 = vector.shape_cast %176 : vector<1x1x32xf32> to vector<1x32xf32>
    %178 = vector.broadcast %177 : vector<1x32xf32> to vector<8x32xf32>
    %179 = arith.addf %175, %178 : vector<8x32xf32>
    %c1 = arith.constant 1 : index
    %c0_79 = arith.constant 0 : index
    %c0_80 = arith.constant 0 : index
    %180 = vector.load %arg5[%c1, %c0_79, %c0_80] : memref<2x1x32xf32, #tpu.memory_space<vmem>>, vector<1x1x32xf32>
    %181 = vector.shape_cast %180 : vector<1x1x32xf32> to vector<1x32xf32>
    %c1_81 = arith.constant 1 : index
    %c0_82 = arith.constant 0 : index
    %c0_83 = arith.constant 0 : index
    %182 = vector.load %arg6[%c1_81, %c0_82, %c0_83] : memref<2x1x32xf32, #tpu.memory_space<vmem>>, vector<1x1x32xf32>
    %183 = vector.shape_cast %182 : vector<1x1x32xf32> to vector<1x32xf32>
    %cst_84 = arith.constant dense<0.000000e+00> : vector<8xf32>
    %184 = vector.multi_reduction <add>, %179, %cst_84 [1] : vector<8x32xf32> to vector<8xf32>
    %185 = vector.shape_cast %184 : vector<8xf32> to vector<8x1xf32>
    %cst_85 = arith.constant 3.200000e+01 : f32
    %186 = vector.broadcast %cst_85 : f32 to vector<8x1xf32>
    %187 = arith.divf %185, %186 : vector<8x1xf32>
    %188 = vector.broadcast %187 : vector<8x1xf32> to vector<8x32xf32>
    %189 = arith.subf %179, %188 : vector<8x32xf32>
    %190 = arith.mulf %189, %189 : vector<8x32xf32>
    %cst_86 = arith.constant dense<0.000000e+00> : vector<8xf32>
    %191 = vector.multi_reduction <add>, %190, %cst_86 [1] : vector<8x32xf32> to vector<8xf32>
    %192 = vector.shape_cast %191 : vector<8xf32> to vector<8x1xf32>
    %cst_87 = arith.constant 3.200000e+01 : f32
    %193 = vector.broadcast %cst_87 : f32 to vector<8x1xf32>
    %194 = arith.divf %192, %193 : vector<8x1xf32>
    %195 = vector.broadcast %187 : vector<8x1xf32> to vector<8x32xf32>
    %196 = arith.subf %179, %195 : vector<8x32xf32>
    %cst_88 = arith.constant 9.99999974E-6 : f32
    %197 = vector.broadcast %cst_88 : f32 to vector<8x1xf32>
    %198 = arith.addf %194, %197 : vector<8x1xf32>
    %199 = math.rsqrt %198 : vector<8x1xf32>
    %200 = vector.broadcast %199 : vector<8x1xf32> to vector<8x32xf32>
    %201 = arith.mulf %196, %200 : vector<8x32xf32>
    %202 = vector.broadcast %181 : vector<1x32xf32> to vector<8x32xf32>
    %203 = arith.mulf %201, %202 : vector<8x32xf32>
    %204 = vector.broadcast %183 : vector<1x32xf32> to vector<8x32xf32>
    %205 = arith.addf %203, %204 : vector<8x32xf32>
    %206 = arith.truncf %205 : vector<8x32xf32> to vector<8x32xbf16>
    %c1_89 = arith.constant 1 : index
    %c0_90 = arith.constant 0 : index
    %c0_91 = arith.constant 0 : index
    %207 = vector.load %arg7[%c1_89, %c0_90, %c0_91] : memref<2x32x96xbf16, #tpu.memory_space<vmem>>, vector<1x32x96xbf16>
    %208 = vector.shape_cast %207 : vector<1x32x96xbf16> to vector<32x96xbf16>
    %cst_92 = arith.constant dense<0.000000e+00> : vector<8x96xf32>
    %209 = tpu.matmul %206, %208, %cst_92 {dimension_numbers = #tpu.dot_dimension_numbers<[1], [0], [0], [1], [0, 0, 1, 1], [], []>} : vector<8x32xbf16>, vector<32x96xbf16>, vector<8x96xf32> -> vector<8x96xf32>
    %c1_93 = arith.constant 1 : index
    %c0_94 = arith.constant 0 : index
    %c0_95 = arith.constant 0 : index
    %210 = vector.load %arg8[%c1_93, %c0_94, %c0_95] : memref<2x1x96xf32, #tpu.memory_space<vmem>>, vector<1x1x96xf32>
    %211 = vector.shape_cast %210 : vector<1x1x96xf32> to vector<1x96xf32>
    %212 = vector.broadcast %211 : vector<1x96xf32> to vector<8x96xf32>
    %213 = arith.addf %209, %212 : vector<8x96xf32>
    %c1_96 = arith.constant 1 : index
    %c0_97 = arith.constant 0 : index
    %c0_98 = arith.constant 0 : index
    %214 = vector.load %arg9[%c1_96, %c0_97, %c0_98] : memref<2x32x32xbf16, #tpu.memory_space<vmem>>, vector<1x32x32xbf16>
    %215 = vector.shape_cast %214 : vector<1x32x32xbf16> to vector<32x32xbf16>
    %cst_99 = arith.constant 0.000000e+00 : f32
    %216 = vector.broadcast %cst_99 : f32 to vector<8x32xf32>
    %217 = vector.extract_strided_slice %213 {offsets = [0, 0], sizes = [8, 16], strides = [1, 1]} : vector<8x96xf32> to vector<8x16xf32>
    %218 = arith.truncf %217 : vector<8x16xf32> to vector<8x16xbf16>
    %219 = vector.extract_strided_slice %213 {offsets = [0, 32], sizes = [8, 16], strides = [1, 1]} : vector<8x96xf32> to vector<8x16xf32>
    %220 = arith.truncf %219 : vector<8x16xf32> to vector<8x16xbf16>
    %221 = vector.extract_strided_slice %213 {offsets = [0, 64], sizes = [8, 16], strides = [1, 1]} : vector<8x96xf32> to vector<8x16xf32>
    %222 = arith.truncf %221 : vector<8x16xf32> to vector<8x16xbf16>
    %cst_100 = arith.constant dense<0.000000e+00> : vector<8x8xf32>
    %223 = tpu.matmul %218, %220, %cst_100 {dimension_numbers = #tpu.dot_dimension_numbers<[1], [1], [0], [0], [0, 0, 1, 0], [], []>} : vector<8x16xbf16>, vector<8x16xbf16>, vector<8x8xf32> -> vector<8x8xf32>
    %cst_101 = arith.constant 2.500000e-01 : f32
    %224 = vector.broadcast %cst_101 : f32 to vector<8x8xf32>
    %225 = arith.mulf %223, %224 : vector<8x8xf32>
    %226 = arith.addf %225, %3 : vector<8x8xf32>
    %cst_102 = arith.constant dense<0xFF800000> : vector<8xf32>
    %227 = vector.multi_reduction <maximumf>, %226, %cst_102 [1] : vector<8x8xf32> to vector<8xf32>
    %228 = vector.shape_cast %227 : vector<8xf32> to vector<8x1xf32>
    %229 = vector.broadcast %228 : vector<8x1xf32> to vector<8x8xf32>
    %230 = arith.subf %226, %229 : vector<8x8xf32>
    %231 = math.exp %230 : vector<8x8xf32>
    %cst_103 = arith.constant dense<0.000000e+00> : vector<8xf32>
    %232 = vector.multi_reduction <add>, %231, %cst_103 [1] : vector<8x8xf32> to vector<8xf32>
    %233 = vector.shape_cast %232 : vector<8xf32> to vector<8x1xf32>
    %234 = tpu.reciprocal %233 {approx = true} : vector<8x1xf32> -> vector<8x1xf32>
    %235 = vector.broadcast %234 : vector<8x1xf32> to vector<8x8xf32>
    %236 = arith.mulf %231, %235 : vector<8x8xf32>
    %237 = arith.truncf %236 : vector<8x8xf32> to vector<8x8xbf16>
    %cst_104 = arith.constant dense<0.000000e+00> : vector<8x16xf32>
    %238 = tpu.matmul %237, %222, %cst_104 {dimension_numbers = #tpu.dot_dimension_numbers<[1], [0], [0], [1], [0, 0, 1, 1], [], []>} : vector<8x8xbf16>, vector<8x16xbf16>, vector<8x16xf32> -> vector<8x16xf32>
    %239 = arith.truncf %238 : vector<8x16xf32> to vector<8x16xbf16>
    %240 = vector.extract_strided_slice %215 {offsets = [0, 0], sizes = [16, 32], strides = [1, 1]} : vector<32x32xbf16> to vector<16x32xbf16>
    %cst_105 = arith.constant dense<0.000000e+00> : vector<8x32xf32>
    %241 = tpu.matmul %239, %240, %cst_105 {dimension_numbers = #tpu.dot_dimension_numbers<[1], [0], [0], [1], [0, 0, 1, 1], [], []>} : vector<8x16xbf16>, vector<16x32xbf16>, vector<8x32xf32> -> vector<8x32xf32>
    %242 = arith.addf %216, %241 : vector<8x32xf32>
    %243 = vector.extract_strided_slice %213 {offsets = [0, 16], sizes = [8, 16], strides = [1, 1]} : vector<8x96xf32> to vector<8x16xf32>
    %244 = arith.truncf %243 : vector<8x16xf32> to vector<8x16xbf16>
    %245 = vector.extract_strided_slice %213 {offsets = [0, 48], sizes = [8, 16], strides = [1, 1]} : vector<8x96xf32> to vector<8x16xf32>
    %246 = arith.truncf %245 : vector<8x16xf32> to vector<8x16xbf16>
    %247 = vector.extract_strided_slice %213 {offsets = [0, 80], sizes = [8, 16], strides = [1, 1]} : vector<8x96xf32> to vector<8x16xf32>
    %248 = arith.truncf %247 : vector<8x16xf32> to vector<8x16xbf16>
    %cst_106 = arith.constant dense<0.000000e+00> : vector<8x8xf32>
    %249 = tpu.matmul %244, %246, %cst_106 {dimension_numbers = #tpu.dot_dimension_numbers<[1], [1], [0], [0], [0, 0, 1, 0], [], []>} : vector<8x16xbf16>, vector<8x16xbf16>, vector<8x8xf32> -> vector<8x8xf32>
    %cst_107 = arith.constant 2.500000e-01 : f32
    %250 = vector.broadcast %cst_107 : f32 to vector<8x8xf32>
    %251 = arith.mulf %249, %250 : vector<8x8xf32>
    %252 = arith.addf %251, %3 : vector<8x8xf32>
    %cst_108 = arith.constant dense<0xFF800000> : vector<8xf32>
    %253 = vector.multi_reduction <maximumf>, %252, %cst_108 [1] : vector<8x8xf32> to vector<8xf32>
    %254 = vector.shape_cast %253 : vector<8xf32> to vector<8x1xf32>
    %255 = vector.broadcast %254 : vector<8x1xf32> to vector<8x8xf32>
    %256 = arith.subf %252, %255 : vector<8x8xf32>
    %257 = math.exp %256 : vector<8x8xf32>
    %cst_109 = arith.constant dense<0.000000e+00> : vector<8xf32>
    %258 = vector.multi_reduction <add>, %257, %cst_109 [1] : vector<8x8xf32> to vector<8xf32>
    %259 = vector.shape_cast %258 : vector<8xf32> to vector<8x1xf32>
    %260 = tpu.reciprocal %259 {approx = true} : vector<8x1xf32> -> vector<8x1xf32>
    %261 = vector.broadcast %260 : vector<8x1xf32> to vector<8x8xf32>
    %262 = arith.mulf %257, %261 : vector<8x8xf32>
    %263 = arith.truncf %262 : vector<8x8xf32> to vector<8x8xbf16>
    %cst_110 = arith.constant dense<0.000000e+00> : vector<8x16xf32>
    %264 = tpu.matmul %263, %248, %cst_110 {dimension_numbers = #tpu.dot_dimension_numbers<[1], [0], [0], [1], [0, 0, 1, 1], [], []>} : vector<8x8xbf16>, vector<8x16xbf16>, vector<8x16xf32> -> vector<8x16xf32>
    %265 = arith.truncf %264 : vector<8x16xf32> to vector<8x16xbf16>
    %266 = vector.extract_strided_slice %215 {offsets = [16, 0], sizes = [16, 32], strides = [1, 1]} : vector<32x32xbf16> to vector<16x32xbf16>
    %cst_111 = arith.constant dense<0.000000e+00> : vector<8x32xf32>
    %267 = tpu.matmul %265, %266, %cst_111 {dimension_numbers = #tpu.dot_dimension_numbers<[1], [0], [0], [1], [0, 0, 1, 1], [], []>} : vector<8x16xbf16>, vector<16x32xbf16>, vector<8x32xf32> -> vector<8x32xf32>
    %268 = arith.addf %242, %267 : vector<8x32xf32>
    %269 = arith.addf %179, %268 : vector<8x32xf32>
    %c1_112 = arith.constant 1 : index
    %c0_113 = arith.constant 0 : index
    %c0_114 = arith.constant 0 : index
    %270 = vector.load %arg10[%c1_112, %c0_113, %c0_114] : memref<2x1x32xf32, #tpu.memory_space<vmem>>, vector<1x1x32xf32>
    %271 = vector.shape_cast %270 : vector<1x1x32xf32> to vector<1x32xf32>
    %272 = vector.broadcast %271 : vector<1x32xf32> to vector<8x32xf32>
    %273 = arith.addf %269, %272 : vector<8x32xf32>
    %c1_115 = arith.constant 1 : index
    %c0_116 = arith.constant 0 : index
    %c0_117 = arith.constant 0 : index
    %274 = vector.load %arg11[%c1_115, %c0_116, %c0_117] : memref<2x1x32xf32, #tpu.memory_space<vmem>>, vector<1x1x32xf32>
    %275 = vector.shape_cast %274 : vector<1x1x32xf32> to vector<1x32xf32>
    %c1_118 = arith.constant 1 : index
    %c0_119 = arith.constant 0 : index
    %c0_120 = arith.constant 0 : index
    %276 = vector.load %arg12[%c1_118, %c0_119, %c0_120] : memref<2x1x32xf32, #tpu.memory_space<vmem>>, vector<1x1x32xf32>
    %277 = vector.shape_cast %276 : vector<1x1x32xf32> to vector<1x32xf32>
    %cst_121 = arith.constant dense<0.000000e+00> : vector<8xf32>
    %278 = vector.multi_reduction <add>, %273, %cst_121 [1] : vector<8x32xf32> to vector<8xf32>
    %279 = vector.shape_cast %278 : vector<8xf32> to vector<8x1xf32>
    %cst_122 = arith.constant 3.200000e+01 : f32
    %280 = vector.broadcast %cst_122 : f32 to vector<8x1xf32>
    %281 = arith.divf %279, %280 : vector<8x1xf32>
    %282 = vector.broadcast %281 : vector<8x1xf32> to vector<8x32xf32>
    %283 = arith.subf %273, %282 : vector<8x32xf32>
    %284 = arith.mulf %283, %283 : vector<8x32xf32>
    %cst_123 = arith.constant dense<0.000000e+00> : vector<8xf32>
    %285 = vector.multi_reduction <add>, %284, %cst_123 [1] : vector<8x32xf32> to vector<8xf32>
    %286 = vector.shape_cast %285 : vector<8xf32> to vector<8x1xf32>
    %cst_124 = arith.constant 3.200000e+01 : f32
    %287 = vector.broadcast %cst_124 : f32 to vector<8x1xf32>
    %288 = arith.divf %286, %287 : vector<8x1xf32>
    %289 = vector.broadcast %281 : vector<8x1xf32> to vector<8x32xf32>
    %290 = arith.subf %273, %289 : vector<8x32xf32>
    %cst_125 = arith.constant 9.99999974E-6 : f32
    %291 = vector.broadcast %cst_125 : f32 to vector<8x1xf32>
    %292 = arith.addf %288, %291 : vector<8x1xf32>
    %293 = math.rsqrt %292 : vector<8x1xf32>
    %294 = vector.broadcast %293 : vector<8x1xf32> to vector<8x32xf32>
    %295 = arith.mulf %290, %294 : vector<8x32xf32>
    %296 = vector.broadcast %275 : vector<1x32xf32> to vector<8x32xf32>
    %297 = arith.mulf %295, %296 : vector<8x32xf32>
    %298 = vector.broadcast %277 : vector<1x32xf32> to vector<8x32xf32>
    %299 = arith.addf %297, %298 : vector<8x32xf32>
    %300 = arith.truncf %299 : vector<8x32xf32> to vector<8x32xbf16>
    %c1_126 = arith.constant 1 : index
    %c0_127 = arith.constant 0 : index
    %c0_128 = arith.constant 0 : index
    %301 = vector.load %arg13[%c1_126, %c0_127, %c0_128] : memref<2x32x64xbf16, #tpu.memory_space<vmem>>, vector<1x32x64xbf16>
    %302 = vector.shape_cast %301 : vector<1x32x64xbf16> to vector<32x64xbf16>
    %cst_129 = arith.constant dense<0.000000e+00> : vector<8x64xf32>
    %303 = tpu.matmul %300, %302, %cst_129 {dimension_numbers = #tpu.dot_dimension_numbers<[1], [0], [0], [1], [0, 0, 1, 1], [], []>} : vector<8x32xbf16>, vector<32x64xbf16>, vector<8x64xf32> -> vector<8x64xf32>
    %c1_130 = arith.constant 1 : index
    %c0_131 = arith.constant 0 : index
    %c0_132 = arith.constant 0 : index
    %304 = vector.load %arg14[%c1_130, %c0_131, %c0_132] : memref<2x1x64xf32, #tpu.memory_space<vmem>>, vector<1x1x64xf32>
    %305 = vector.shape_cast %304 : vector<1x1x64xf32> to vector<1x64xf32>
    %306 = vector.broadcast %305 : vector<1x64xf32> to vector<8x64xf32>
    %307 = arith.addf %303, %306 : vector<8x64xf32>
    %308 = arith.mulf %307, %307 : vector<8x64xf32>
    %309 = arith.mulf %307, %308 : vector<8x64xf32>
    %cst_133 = arith.constant 4.471500e-02 : f32
    %310 = vector.broadcast %cst_133 : f32 to vector<8x64xf32>
    %311 = arith.mulf %310, %309 : vector<8x64xf32>
    %312 = arith.addf %307, %311 : vector<8x64xf32>
    %cst_134 = arith.constant 0.797884583 : f32
    %313 = vector.broadcast %cst_134 : f32 to vector<8x64xf32>
    %314 = arith.mulf %313, %312 : vector<8x64xf32>
    %315 = math.tanh %314 : vector<8x64xf32>
    %cst_135 = arith.constant 1.000000e+00 : f32
    %316 = vector.broadcast %cst_135 : f32 to vector<8x64xf32>
    %317 = arith.addf %316, %315 : vector<8x64xf32>
    %cst_136 = arith.constant 5.000000e-01 : f32
    %318 = vector.broadcast %cst_136 : f32 to vector<8x64xf32>
    %319 = arith.mulf %318, %317 : vector<8x64xf32>
    %320 = arith.mulf %307, %319 : vector<8x64xf32>
    %321 = arith.truncf %320 : vector<8x64xf32> to vector<8x64xbf16>
    %c1_137 = arith.constant 1 : index
    %c0_138 = arith.constant 0 : index
    %c0_139 = arith.constant 0 : index
    %322 = vector.load %arg15[%c1_137, %c0_138, %c0_139] : memref<2x64x32xbf16, #tpu.memory_space<vmem>>, vector<1x64x32xbf16>
    %323 = vector.shape_cast %322 : vector<1x64x32xbf16> to vector<64x32xbf16>
    %cst_140 = arith.constant dense<0.000000e+00> : vector<8x32xf32>
    %324 = tpu.matmul %321, %323, %cst_140 {dimension_numbers = #tpu.dot_dimension_numbers<[1], [0], [0], [1], [0, 0, 1, 1], [], []>} : vector<8x64xbf16>, vector<64x32xbf16>, vector<8x32xf32> -> vector<8x32xf32>
    %325 = arith.addf %273, %324 : vector<8x32xf32>
    %c1_141 = arith.constant 1 : index
    %c0_142 = arith.constant 0 : index
    %c0_143 = arith.constant 0 : index
    %326 = vector.load %arg16[%c1_141, %c0_142, %c0_143] : memref<2x1x32xf32, #tpu.memory_space<vmem>>, vector<1x1x32xf32>
    %327 = vector.shape_cast %326 : vector<1x1x32xf32> to vector<1x32xf32>
    %328 = vector.broadcast %327 : vector<1x32xf32> to vector<8x32xf32>
    %329 = arith.addf %325, %328 : vector<8x32xf32>
    %c0_144 = arith.constant 0 : index
    %c0_145 = arith.constant 0 : index
    %330 = vector.load %arg17[%c0_144, %c0_145] : memref<1x32xf32, #tpu.memory_space<vmem>>, vector<1x32xf32>
    %c0_146 = arith.constant 0 : index
    %c0_147 = arith.constant 0 : index
    %331 = vector.load %arg18[%c0_146, %c0_147] : memref<1x32xf32, #tpu.memory_space<vmem>>, vector<1x32xf32>
    %cst_148 = arith.constant dense<0.000000e+00> : vector<8xf32>
    %332 = vector.multi_reduction <add>, %329, %cst_148 [1] : vector<8x32xf32> to vector<8xf32>
    %333 = vector.shape_cast %332 : vector<8xf32> to vector<8x1xf32>
    %cst_149 = arith.constant 3.200000e+01 : f32
    %334 = vector.broadcast %cst_149 : f32 to vector<8x1xf32>
    %335 = arith.divf %333, %334 : vector<8x1xf32>
    %336 = vector.broadcast %335 : vector<8x1xf32> to vector<8x32xf32>
    %337 = arith.subf %329, %336 : vector<8x32xf32>
    %338 = arith.mulf %337, %337 : vector<8x32xf32>
    %cst_150 = arith.constant dense<0.000000e+00> : vector<8xf32>
    %339 = vector.multi_reduction <add>, %338, %cst_150 [1] : vector<8x32xf32> to vector<8xf32>
    %340 = vector.shape_cast %339 : vector<8xf32> to vector<8x1xf32>
    %cst_151 = arith.constant 3.200000e+01 : f32
    %341 = vector.broadcast %cst_151 : f32 to vector<8x1xf32>
    %342 = arith.divf %340, %341 : vector<8x1xf32>
    %343 = vector.broadcast %335 : vector<8x1xf32> to vector<8x32xf32>
    %344 = arith.subf %329, %343 : vector<8x32xf32>
    %cst_152 = arith.constant 9.99999974E-6 : f32
    %345 = vector.broadcast %cst_152 : f32 to vector<8x1xf32>
    %346 = arith.addf %342, %345 : vector<8x1xf32>
    %347 = math.rsqrt %346 : vector<8x1xf32>
    %348 = vector.broadcast %347 : vector<8x1xf32> to vector<8x32xf32>
    %349 = arith.mulf %344, %348 : vector<8x32xf32>
    %350 = vector.broadcast %330 : vector<1x32xf32> to vector<8x32xf32>
    %351 = arith.mulf %349, %350 : vector<8x32xf32>
    %352 = vector.broadcast %331 : vector<1x32xf32> to vector<8x32xf32>
    %353 = arith.addf %351, %352 : vector<8x32xf32>
    %354 = arith.truncf %353 : vector<8x32xf32> to vector<8x32xbf16>
    %c0_153 = arith.constant 0 : index
    %c0_154 = arith.constant 0 : index
    %c0_155 = arith.constant 0 : index
    %355 = vector.load %arg19[%c0_153, %c0_154, %c0_155] : memref<5x32x24xbf16, #tpu.memory_space<vmem>>, vector<1x32x24xbf16>
    %356 = vector.shape_cast %355 : vector<1x32x24xbf16> to vector<32x24xbf16>
    %cst_156 = arith.constant dense<0.000000e+00> : vector<8x24xf32>
    %357 = tpu.matmul %354, %356, %cst_156 {dimension_numbers = #tpu.dot_dimension_numbers<[1], [0], [0], [1], [0, 0, 1, 1], [], []>} : vector<8x32xbf16>, vector<32x24xbf16>, vector<8x24xf32> -> vector<8x24xf32>
    %358 = vector.extract_strided_slice %353 {offsets = [1, 0], sizes = [7, 32], strides = [1, 1]} : vector<8x32xf32> to vector<7x32xf32>
    %359 = vector.extract_strided_slice %353 {offsets = [0, 0], sizes = [1, 32], strides = [1, 1]} : vector<8x32xf32> to vector<1x32xf32>
    %360 = tpu.concatenate %358, %359 in 0 : vector<7x32xf32>, vector<1x32xf32> -> vector<8x32xf32>
    %361 = arith.truncf %360 : vector<8x32xf32> to vector<8x32xbf16>
    %c1_157 = arith.constant 1 : index
    %c0_158 = arith.constant 0 : index
    %c0_159 = arith.constant 0 : index
    %362 = vector.load %arg19[%c1_157, %c0_158, %c0_159] : memref<5x32x24xbf16, #tpu.memory_space<vmem>>, vector<1x32x24xbf16>
    %363 = vector.shape_cast %362 : vector<1x32x24xbf16> to vector<32x24xbf16>
    %cst_160 = arith.constant dense<0.000000e+00> : vector<8x24xf32>
    %364 = tpu.matmul %361, %363, %cst_160 {dimension_numbers = #tpu.dot_dimension_numbers<[1], [0], [0], [1], [0, 0, 1, 1], [], []>} : vector<8x32xbf16>, vector<32x24xbf16>, vector<8x24xf32> -> vector<8x24xf32>
    %365 = arith.addf %357, %364 : vector<8x24xf32>
    %366 = vector.extract_strided_slice %353 {offsets = [2, 0], sizes = [6, 32], strides = [1, 1]} : vector<8x32xf32> to vector<6x32xf32>
    %367 = vector.extract_strided_slice %353 {offsets = [0, 0], sizes = [2, 32], strides = [1, 1]} : vector<8x32xf32> to vector<2x32xf32>
    %368 = tpu.concatenate %366, %367 in 0 : vector<6x32xf32>, vector<2x32xf32> -> vector<8x32xf32>
    %369 = arith.truncf %368 : vector<8x32xf32> to vector<8x32xbf16>
    %c2 = arith.constant 2 : index
    %c0_161 = arith.constant 0 : index
    %c0_162 = arith.constant 0 : index
    %370 = vector.load %arg19[%c2, %c0_161, %c0_162] : memref<5x32x24xbf16, #tpu.memory_space<vmem>>, vector<1x32x24xbf16>
    %371 = vector.shape_cast %370 : vector<1x32x24xbf16> to vector<32x24xbf16>
    %cst_163 = arith.constant dense<0.000000e+00> : vector<8x24xf32>
    %372 = tpu.matmul %369, %371, %cst_163 {dimension_numbers = #tpu.dot_dimension_numbers<[1], [0], [0], [1], [0, 0, 1, 1], [], []>} : vector<8x32xbf16>, vector<32x24xbf16>, vector<8x24xf32> -> vector<8x24xf32>
    %373 = arith.addf %365, %372 : vector<8x24xf32>
    %374 = vector.extract_strided_slice %353 {offsets = [3, 0], sizes = [5, 32], strides = [1, 1]} : vector<8x32xf32> to vector<5x32xf32>
    %375 = vector.extract_strided_slice %353 {offsets = [0, 0], sizes = [3, 32], strides = [1, 1]} : vector<8x32xf32> to vector<3x32xf32>
    %376 = tpu.concatenate %374, %375 in 0 : vector<5x32xf32>, vector<3x32xf32> -> vector<8x32xf32>
    %377 = arith.truncf %376 : vector<8x32xf32> to vector<8x32xbf16>
    %c3 = arith.constant 3 : index
    %c0_164 = arith.constant 0 : index
    %c0_165 = arith.constant 0 : index
    %378 = vector.load %arg19[%c3, %c0_164, %c0_165] : memref<5x32x24xbf16, #tpu.memory_space<vmem>>, vector<1x32x24xbf16>
    %379 = vector.shape_cast %378 : vector<1x32x24xbf16> to vector<32x24xbf16>
    %cst_166 = arith.constant dense<0.000000e+00> : vector<8x24xf32>
    %380 = tpu.matmul %377, %379, %cst_166 {dimension_numbers = #tpu.dot_dimension_numbers<[1], [0], [0], [1], [0, 0, 1, 1], [], []>} : vector<8x32xbf16>, vector<32x24xbf16>, vector<8x24xf32> -> vector<8x24xf32>
    %381 = arith.addf %373, %380 : vector<8x24xf32>
    %382 = vector.extract_strided_slice %353 {offsets = [4, 0], sizes = [4, 32], strides = [1, 1]} : vector<8x32xf32> to vector<4x32xf32>
    %383 = vector.extract_strided_slice %353 {offsets = [0, 0], sizes = [4, 32], strides = [1, 1]} : vector<8x32xf32> to vector<4x32xf32>
    %384 = tpu.concatenate %382, %383 in 0 : vector<4x32xf32>, vector<4x32xf32> -> vector<8x32xf32>
    %385 = arith.truncf %384 : vector<8x32xf32> to vector<8x32xbf16>
    %c4 = arith.constant 4 : index
    %c0_167 = arith.constant 0 : index
    %c0_168 = arith.constant 0 : index
    %386 = vector.load %arg19[%c4, %c0_167, %c0_168] : memref<5x32x24xbf16, #tpu.memory_space<vmem>>, vector<1x32x24xbf16>
    %387 = vector.shape_cast %386 : vector<1x32x24xbf16> to vector<32x24xbf16>
    %cst_169 = arith.constant dense<0.000000e+00> : vector<8x24xf32>
    %388 = tpu.matmul %385, %387, %cst_169 {dimension_numbers = #tpu.dot_dimension_numbers<[1], [0], [0], [1], [0, 0, 1, 1], [], []>} : vector<8x32xbf16>, vector<32x24xbf16>, vector<8x24xf32> -> vector<8x24xf32>
    %389 = arith.addf %381, %388 : vector<8x24xf32>
    %cst_170 = arith.constant 0.000000e+00 : f32
    %390 = vector.broadcast %cst_170 : f32 to vector<8x24xf32>
    %391 = arith.maximumf %389, %390 : vector<8x24xf32>
    %c0_171 = arith.constant 0 : index
    %c0_172 = arith.constant 0 : index
    %392 = vector.load %arg20[%c0_171, %c0_172] : memref<8x24xf32, #tpu.memory_space<vmem>>, vector<8x24xf32>
    %393 = arith.mulf %391, %392 : vector<8x24xf32>
    %cst_173 = arith.constant dense<0xFF800000> : vector<24xf32>
    %394 = vector.multi_reduction <maximumf>, %393, %cst_173 [0] : vector<8x24xf32> to vector<24xf32>
    %395 = vector.shape_cast %394 : vector<24xf32> to vector<1x24xf32>
    %396 = arith.truncf %395 : vector<1x24xf32> to vector<1x24xbf16>
    %c0_174 = arith.constant 0 : index
    %c0_175 = arith.constant 0 : index
    %397 = vector.load %arg21[%c0_174, %c0_175] : memref<24x3xbf16, #tpu.memory_space<vmem>>, vector<24x3xbf16>
    %cst_176 = arith.constant dense<0.000000e+00> : vector<1x3xf32>
    %398 = tpu.matmul %396, %397, %cst_176 {dimension_numbers = #tpu.dot_dimension_numbers<[1], [0], [0], [1], [0, 0, 1, 1], [], []>} : vector<1x24xbf16>, vector<24x3xbf16>, vector<1x3xf32> -> vector<1x3xf32>
    %c0_177 = arith.constant 0 : index
    %c0_178 = arith.constant 0 : index
    %399 = vector.load %arg22[%c0_177, %c0_178] : memref<1x3xf32, #tpu.memory_space<vmem>>, vector<1x3xf32>
    %400 = arith.addf %398, %399 : vector<1x3xf32>
    %c0_179 = arith.constant 0 : index
    %c0_180 = arith.constant 0 : index
    %c0_181 = arith.constant 0 : index
    %401 = vector.load %arg23[%c0_179, %c0_180, %c0_181] : memref<1x1x3xf32, #tpu.memory_space<vmem>>, vector<1x1x3xf32>
    %402 = vector.shape_cast %401 : vector<1x1x3xf32> to vector<1x3xf32>
    %403 = vector.shape_cast %400 : vector<1x3xf32> to vector<1x1x3xf32>
    tpu.vector_store %arg23[%c0_179, %c0_180, %c0_181], %403 {strides = array<i32>} : memref<1x1x3xf32, #tpu.memory_space<vmem>>, vector<1x1x3xf32>,
    return
  }
  func.func @transform_0(%arg0: i32) -> (i32, i32, i32) {
    %c0_i32 = arith.constant 0 : i32
    %c0_i32_0 = arith.constant 0 : i32
    %c0_i32_1 = arith.constant 0 : i32
    return %arg0, %c0_i32, %c0_i32_0 : i32, i32, i32
  }
  func.func @transform_1(%arg0: i32) -> (i32, i32, i32) {
    %c0_i32 = arith.constant 0 : i32
    %c0_i32_0 = arith.constant 0 : i32
    %c0_i32_1 = arith.constant 0 : i32
    return %arg0, %c0_i32, %c0_i32_0 : i32, i32, i32
  }
  func.func @transform_2(%arg0: i32) -> (i32, i32) {
    %c0_i32 = arith.constant 0 : i32
    %c0_i32_0 = arith.constant 0 : i32
    %c0_i32_1 = arith.constant 0 : i32
    return %c0_i32, %c0_i32_0 : i32, i32
  }
  func.func @transform_3(%arg0: i32) -> (i32, i32) {
    %c0_i32 = arith.constant 0 : i32
    %c0_i32_0 = arith.constant 0 : i32
    %c0_i32_1 = arith.constant 0 : i32
    return %c0_i32, %c0_i32_0 : i32, i32
  }
  func.func @transform_4(%arg0: i32) -> (i32, i32, i32) {
    %c0_i32 = arith.constant 0 : i32
    %c0_i32_0 = arith.constant 0 : i32
    %c0_i32_1 = arith.constant 0 : i32
    %c0_i32_2 = arith.constant 0 : i32
    return %c0_i32, %c0_i32_0, %c0_i32_1 : i32, i32, i32
  }
  func.func @transform_5(%arg0: i32) -> (i32, i32, i32) {
    %c0_i32 = arith.constant 0 : i32
    %c0_i32_0 = arith.constant 0 : i32
    %c0_i32_1 = arith.constant 0 : i32
    %c0_i32_2 = arith.constant 0 : i32
    return %c0_i32, %c0_i32_0, %c0_i32_1 : i32, i32, i32
  }
  func.func @transform_6(%arg0: i32) -> (i32, i32, i32) {
    %c0_i32 = arith.constant 0 : i32
    %c0_i32_0 = arith.constant 0 : i32
    %c0_i32_1 = arith.constant 0 : i32
    %c0_i32_2 = arith.constant 0 : i32
    return %c0_i32, %c0_i32_0, %c0_i32_1 : i32, i32, i32
  }
  func.func @transform_7(%arg0: i32) -> (i32, i32, i32) {
    %c0_i32 = arith.constant 0 : i32
    %c0_i32_0 = arith.constant 0 : i32
    %c0_i32_1 = arith.constant 0 : i32
    %c0_i32_2 = arith.constant 0 : i32
    return %c0_i32, %c0_i32_0, %c0_i32_1 : i32, i32, i32
  }
  func.func @transform_8(%arg0: i32) -> (i32, i32, i32) {
    %c0_i32 = arith.constant 0 : i32
    %c0_i32_0 = arith.constant 0 : i32
    %c0_i32_1 = arith.constant 0 : i32
    %c0_i32_2 = arith.constant 0 : i32
    return %c0_i32, %c0_i32_0, %c0_i32_1 : i32, i32, i32
  }
  func.func @transform_9(%arg0: i32) -> (i32, i32, i32) {
    %c0_i32 = arith.constant 0 : i32
    %c0_i32_0 = arith.constant 0 : i32
    %c0_i32_1 = arith.constant 0 : i32
    %c0_i32_2 = arith.constant 0 : i32
    return %c0_i32, %c0_i32_0, %c0_i32_1 : i32, i32, i32
  }
  func.func @transform_10(%arg0: i32) -> (i32, i32, i32) {
    %c0_i32 = arith.constant 0 : i32
    %c0_i32_0 = arith.constant 0 : i32
    %c0_i32_1 = arith.constant 0 : i32
    %c0_i32_2 = arith.constant 0 : i32
    return %c0_i32, %c0_i32_0, %c0_i32_1 : i32, i32, i32
  }
  func.func @transform_11(%arg0: i32) -> (i32, i32, i32) {
    %c0_i32 = arith.constant 0 : i32
    %c0_i32_0 = arith.constant 0 : i32
    %c0_i32_1 = arith.constant 0 : i32
    %c0_i32_2 = arith.constant 0 : i32
    return %c0_i32, %c0_i32_0, %c0_i32_1 : i32, i32, i32
  }
  func.func @transform_12(%arg0: i32) -> (i32, i32, i32) {
    %c0_i32 = arith.constant 0 : i32
    %c0_i32_0 = arith.constant 0 : i32
    %c0_i32_1 = arith.constant 0 : i32
    %c0_i32_2 = arith.constant 0 : i32
    return %c0_i32, %c0_i32_0, %c0_i32_1 : i32, i32, i32
  }
  func.func @transform_13(%arg0: i32) -> (i32, i32, i32) {
    %c0_i32 = arith.constant 0 : i32
    %c0_i32_0 = arith.constant 0 : i32
    %c0_i32_1 = arith.constant 0 : i32
    %c0_i32_2 = arith.constant 0 : i32
    return %c0_i32, %c0_i32_0, %c0_i32_1 : i32, i32, i32
  }
  func.func @transform_14(%arg0: i32) -> (i32, i32, i32) {
    %c0_i32 = arith.constant 0 : i32
    %c0_i32_0 = arith.constant 0 : i32
    %c0_i32_1 = arith.constant 0 : i32
    %c0_i32_2 = arith.constant 0 : i32
    return %c0_i32, %c0_i32_0, %c0_i32_1 : i32, i32, i32
  }
  func.func @transform_15(%arg0: i32) -> (i32, i32, i32) {
    %c0_i32 = arith.constant 0 : i32
    %c0_i32_0 = arith.constant 0 : i32
    %c0_i32_1 = arith.constant 0 : i32
    %c0_i32_2 = arith.constant 0 : i32
    return %c0_i32, %c0_i32_0, %c0_i32_1 : i32, i32, i32
  }
  func.func @transform_16(%arg0: i32) -> (i32, i32) {
    %c0_i32 = arith.constant 0 : i32
    %c0_i32_0 = arith.constant 0 : i32
    %c0_i32_1 = arith.constant 0 : i32
    return %c0_i32, %c0_i32_0 : i32, i32
  }
  func.func @transform_17(%arg0: i32) -> (i32, i32) {
    %c0_i32 = arith.constant 0 : i32
    %c0_i32_0 = arith.constant 0 : i32
    %c0_i32_1 = arith.constant 0 : i32
    return %c0_i32, %c0_i32_0 : i32, i32
  }
  func.func @transform_18(%arg0: i32) -> (i32, i32, i32) {
    %c0_i32 = arith.constant 0 : i32
    %c0_i32_0 = arith.constant 0 : i32
    %c0_i32_1 = arith.constant 0 : i32
    %c0_i32_2 = arith.constant 0 : i32
    return %c0_i32, %c0_i32_0, %c0_i32_1 : i32, i32, i32
  }
  func.func @transform_19(%arg0: i32) -> (i32, i32) {
    %c0_i32 = arith.constant 0 : i32
    %c0_i32_0 = arith.constant 0 : i32
    %c0_i32_1 = arith.constant 0 : i32
    return %c0_i32, %c0_i32_0 : i32, i32
  }
  func.func @transform_20(%arg0: i32) -> (i32, i32) {
    %c0_i32 = arith.constant 0 : i32
    %c0_i32_0 = arith.constant 0 : i32
    %c0_i32_1 = arith.constant 0 : i32
    return %c0_i32, %c0_i32_0 : i32, i32
  }
  func.func @transform_21(%arg0: i32) -> (i32, i32) {
    %c0_i32 = arith.constant 0 : i32
    %c0_i32_0 = arith.constant 0 : i32
    %c0_i32_1 = arith.constant 0 : i32
    return %c0_i32, %c0_i32_0 : i32, i32
  }
  func.func @transform_22(%arg0: i32) -> (i32, i32, i32) {
    %c0_i32 = arith.constant 0 : i32
    %c0_i32_0 = arith.constant 0 : i32
    %c0_i32_1 = arith.constant 0 : i32
    return %arg0, %c0_i32, %c0_i32_0 : i32, i32, i32
  }
}

module attributes {stable_mosaic.version = 11 : i64} {
  func.func @_fused_kernel(%arg0: i32, %arg1: memref<1x8x32xf32, #tpu.memory_space<vmem>>, %arg2: memref<1x1x8xf32, #tpu.memory_space<vmem>>, %arg3: memref<1x32xf32, #tpu.memory_space<vmem>>, %arg4: memref<1x32xf32, #tpu.memory_space<vmem>>, %arg5: memref<2x1x32xf32, #tpu.memory_space<vmem>>, %arg6: memref<2x1x32xf32, #tpu.memory_space<vmem>>, %arg7: memref<2x32x96xbf16, #tpu.memory_space<vmem>>, %arg8: memref<2x1x96xf32, #tpu.memory_space<vmem>>, %arg9: memref<2x32x32xbf16, #tpu.memory_space<vmem>>, %arg10: memref<2x1x32xf32, #tpu.memory_space<vmem>>, %arg11: memref<2x1x32xf32, #tpu.memory_space<vmem>>, %arg12: memref<2x1x32xf32, #tpu.memory_space<vmem>>, %arg13: memref<2x32x64xbf16, #tpu.memory_space<vmem>>, %arg14: memref<2x1x64xf32, #tpu.memory_space<vmem>>, %arg15: memref<2x64x32xbf16, #tpu.memory_space<vmem>>, %arg16: memref<2x1x32xf32, #tpu.memory_space<vmem>>, %arg17: memref<1x32xf32, #tpu.memory_space<vmem>>, %arg18: memref<1x32xf32, #tpu.memory_space<vmem>>, %arg19: memref<5x32x24xbf16, #tpu.memory_space<vmem>>, %arg20: memref<8x24xf32, #tpu.memory_space<vmem>>, %arg21: memref<24x3xbf16, #tpu.memory_space<vmem>>, %arg22: memref<1x3xf32, #tpu.memory_space<vmem>>, %arg23: memref<1x1x3xf32, #tpu.memory_space<vmem>>) attributes {dimension_semantics = [#tpu.dimension_semantics<parallel>], iteration_bounds = array<i64: 2>, scalar_prefetch = 0 : i64, scratch_operands = 0 : i64, tpu.core_type = #tpu.core_type<tc>, window_params = [{transform_indices = @transform_0, window_bounds = array<i64: 1, 8, 32>}, {transform_indices = @transform_1, window_bounds = array<i64: 1, 1, 8>}, {pipeline_mode = #tpu.pipeline_mode<synchronous>, transform_indices = @transform_2, window_bounds = array<i64: 1, 32>}, {pipeline_mode = #tpu.pipeline_mode<synchronous>, transform_indices = @transform_3, window_bounds = array<i64: 1, 32>}, {pipeline_mode = #tpu.pipeline_mode<synchronous>, transform_indices = @transform_4, window_bounds = array<i64: 2, 1, 32>}, {pipeline_mode = #tpu.pipeline_mode<synchronous>, transform_indices = @transform_5, window_bounds = array<i64: 2, 1, 32>}, {pipeline_mode = #tpu.pipeline_mode<synchronous>, transform_indices = @transform_6, window_bounds = array<i64: 2, 32, 96>}, {pipeline_mode = #tpu.pipeline_mode<synchronous>, transform_indices = @transform_7, window_bounds = array<i64: 2, 1, 96>}, {pipeline_mode = #tpu.pipeline_mode<synchronous>, transform_indices = @transform_8, window_bounds = array<i64: 2, 32, 32>}, {pipeline_mode = #tpu.pipeline_mode<synchronous>, transform_indices = @transform_9, window_bounds = array<i64: 2, 1, 32>}, {pipeline_mode = #tpu.pipeline_mode<synchronous>, transform_indices = @transform_10, window_bounds = array<i64: 2, 1, 32>}, {pipeline_mode = #tpu.pipeline_mode<synchronous>, transform_indices = @transform_11, window_bounds = array<i64: 2, 1, 32>}, {pipeline_mode = #tpu.pipeline_mode<synchronous>, transform_indices = @transform_12, window_bounds = array<i64: 2, 32, 64>}, {pipeline_mode = #tpu.pipeline_mode<synchronous>, transform_indices = @transform_13, window_bounds = array<i64: 2, 1, 64>}, {pipeline_mode = #tpu.pipeline_mode<synchronous>, transform_indices = @transform_14, window_bounds = array<i64: 2, 64, 32>}, {pipeline_mode = #tpu.pipeline_mode<synchronous>, transform_indices = @transform_15, window_bounds = array<i64: 2, 1, 32>}, {pipeline_mode = #tpu.pipeline_mode<synchronous>, transform_indices = @transform_16, window_bounds = array<i64: 1, 32>}, {pipeline_mode = #tpu.pipeline_mode<synchronous>, transform_indices = @transform_17, window_bounds = array<i64: 1, 32>}, {pipeline_mode = #tpu.pipeline_mode<synchronous>, transform_indices = @transform_18, window_bounds = array<i64: 5, 32, 24>}, {pipeline_mode = #tpu.pipeline_mode<synchronous>, transform_indices = @transform_19, window_bounds = array<i64: 8, 24>}, {pipeline_mode = #tpu.pipeline_mode<synchronous>, transform_indices = @transform_20, window_bounds = array<i64: 24, 3>}, {pipeline_mode = #tpu.pipeline_mode<synchronous>, transform_indices = @transform_21, window_bounds = array<i64: 1, 3>}, {transform_indices = @transform_22, window_bounds = array<i64: 1, 1, 3>}]} {
    %c0 = arith.constant 0 : index
    %c0_0 = arith.constant 0 : index
    %c0_1 = arith.constant 0 : index
    %0 = vector.load %arg2[%c0, %c0_0, %c0_1] : memref<1x1x8xf32, #tpu.memory_space<vmem>>, vector<1x1x8xf32>
    %1 = vector.shape_cast %0 : vector<1x1x8xf32> to vector<1x8xf32>
    %2 = vector.shape_cast %1 : vector<1x8xf32> to vector<1x8xf32>
    %3 = vector.broadcast %2 : vector<1x8xf32> to vector<8x8xf32>
    %c0_2 = arith.constant 0 : index
    %c0_3 = arith.constant 0 : index
    %c0_4 = arith.constant 0 : index
    %4 = vector.load %arg1[%c0_2, %c0_3, %c0_4] : memref<1x8x32xf32, #tpu.memory_space<vmem>>, vector<1x8x32xf32>
    %5 = vector.shape_cast %4 : vector<1x8x32xf32> to vector<8x32xf32>
    %c0_5 = arith.constant 0 : index
    %c0_6 = arith.constant 0 : index
    %6 = vector.load %arg3[%c0_5, %c0_6] : memref<1x32xf32, #tpu.memory_space<vmem>>, vector<1x32xf32>
    %c0_7 = arith.constant 0 : index
    %c0_8 = arith.constant 0 : index
    %7 = vector.load %arg4[%c0_7, %c0_8] : memref<1x32xf32, #tpu.memory_space<vmem>>, vector<1x32xf32>
    %cst = arith.constant dense<0.000000e+00> : vector<8xf32>
    %8 = vector.multi_reduction <add>, %5, %cst [1] : vector<8x32xf32> to vector<8xf32>
    %9 = vector.shape_cast %8 : vector<8xf32> to vector<8x1xf32>
    %cst_9 = arith.constant 3.200000e+01 : f32
    %10 = vector.broadcast %cst_9 : f32 to vector<8x1xf32>
    %11 = arith.divf %9, %10 : vector<8x1xf32>
    %12 = vector.broadcast %11 : vector<8x1xf32> to vector<8x32xf32>
    %13 = arith.subf %5, %12 : vector<8x32xf32>
    %14 = arith.mulf %13, %13 : vector<8x32xf32>
    %cst_10 = arith.constant dense<0.000000e+00> : vector<8xf32>
    %15 = vector.multi_reduction <add>, %14, %cst_10 [1] : vector<8x32xf32> to vector<8xf32>
    %16 = vector.shape_cast %15 : vector<8xf32> to vector<8x1xf32>
    %cst_11 = arith.constant 3.200000e+01 : f32
    %17 = vector.broadcast %cst_11 : f32 to vector<8x1xf32>
    %18 = arith.divf %16, %17 : vector<8x1xf32>
    %19 = vector.broadcast %11 : vector<8x1xf32> to vector<8x32xf32>
    %20 = arith.subf %5, %19 : vector<8x32xf32>
    %cst_12 = arith.constant 9.99999974E-6 : f32
    %21 = vector.broadcast %cst_12 : f32 to vector<8x1xf32>
    %22 = arith.addf %18, %21 : vector<8x1xf32>
    %23 = math.rsqrt %22 : vector<8x1xf32>
    %24 = vector.broadcast %23 : vector<8x1xf32> to vector<8x32xf32>
    %25 = arith.mulf %20, %24 : vector<8x32xf32>
    %26 = vector.broadcast %6 : vector<1x32xf32> to vector<8x32xf32>
    %27 = arith.mulf %25, %26 : vector<8x32xf32>
    %28 = vector.broadcast %7 : vector<1x32xf32> to vector<8x32xf32>
    %29 = arith.addf %27, %28 : vector<8x32xf32>
    %c0_13 = arith.constant 0 : index
    %c0_14 = arith.constant 0 : index
    %c0_15 = arith.constant 0 : index
    %30 = vector.load %arg5[%c0_13, %c0_14, %c0_15] : memref<2x1x32xf32, #tpu.memory_space<vmem>>, vector<1x1x32xf32>
    %31 = vector.shape_cast %30 : vector<1x1x32xf32> to vector<1x32xf32>
    %c0_16 = arith.constant 0 : index
    %c0_17 = arith.constant 0 : index
    %c0_18 = arith.constant 0 : index
    %32 = vector.load %arg6[%c0_16, %c0_17, %c0_18] : memref<2x1x32xf32, #tpu.memory_space<vmem>>, vector<1x1x32xf32>
    %33 = vector.shape_cast %32 : vector<1x1x32xf32> to vector<1x32xf32>
    %cst_19 = arith.constant dense<0.000000e+00> : vector<8xf32>
    %34 = vector.multi_reduction <add>, %29, %cst_19 [1] : vector<8x32xf32> to vector<8xf32>
    %35 = vector.shape_cast %34 : vector<8xf32> to vector<8x1xf32>
    %cst_20 = arith.constant 3.200000e+01 : f32
    %36 = vector.broadcast %cst_20 : f32 to vector<8x1xf32>
    %37 = arith.divf %35, %36 : vector<8x1xf32>
    %38 = vector.broadcast %37 : vector<8x1xf32> to vector<8x32xf32>
    %39 = arith.subf %29, %38 : vector<8x32xf32>
    %40 = arith.mulf %39, %39 : vector<8x32xf32>
    %cst_21 = arith.constant dense<0.000000e+00> : vector<8xf32>
    %41 = vector.multi_reduction <add>, %40, %cst_21 [1] : vector<8x32xf32> to vector<8xf32>
    %42 = vector.shape_cast %41 : vector<8xf32> to vector<8x1xf32>
    %cst_22 = arith.constant 3.200000e+01 : f32
    %43 = vector.broadcast %cst_22 : f32 to vector<8x1xf32>
    %44 = arith.divf %42, %43 : vector<8x1xf32>
    %45 = vector.broadcast %37 : vector<8x1xf32> to vector<8x32xf32>
    %46 = arith.subf %29, %45 : vector<8x32xf32>
    %cst_23 = arith.constant 9.99999974E-6 : f32
    %47 = vector.broadcast %cst_23 : f32 to vector<8x1xf32>
    %48 = arith.addf %44, %47 : vector<8x1xf32>
    %49 = math.rsqrt %48 : vector<8x1xf32>
    %50 = vector.broadcast %49 : vector<8x1xf32> to vector<8x32xf32>
    %51 = arith.mulf %46, %50 : vector<8x32xf32>
    %52 = vector.broadcast %31 : vector<1x32xf32> to vector<8x32xf32>
    %53 = arith.mulf %51, %52 : vector<8x32xf32>
    %54 = vector.broadcast %33 : vector<1x32xf32> to vector<8x32xf32>
    %55 = arith.addf %53, %54 : vector<8x32xf32>
    %56 = arith.truncf %55 : vector<8x32xf32> to vector<8x32xbf16>
    %c0_24 = arith.constant 0 : index
    %c0_25 = arith.constant 0 : index
    %c0_26 = arith.constant 0 : index
    %57 = vector.load %arg7[%c0_24, %c0_25, %c0_26] : memref<2x32x96xbf16, #tpu.memory_space<vmem>>, vector<1x32x96xbf16>
    %58 = vector.shape_cast %57 : vector<1x32x96xbf16> to vector<32x96xbf16>
    %cst_27 = arith.constant dense<0.000000e+00> : vector<8x96xf32>
    %59 = tpu.matmul %56, %58, %cst_27 {dimension_numbers = #tpu.dot_dimension_numbers<[1], [0], [0], [1], [0, 0, 1, 1], [], []>} : vector<8x32xbf16>, vector<32x96xbf16>, vector<8x96xf32> -> vector<8x96xf32>
    %c0_28 = arith.constant 0 : index
    %c0_29 = arith.constant 0 : index
    %c0_30 = arith.constant 0 : index
    %60 = vector.load %arg8[%c0_28, %c0_29, %c0_30] : memref<2x1x96xf32, #tpu.memory_space<vmem>>, vector<1x1x96xf32>
    %61 = vector.shape_cast %60 : vector<1x1x96xf32> to vector<1x96xf32>
    %62 = vector.broadcast %61 : vector<1x96xf32> to vector<8x96xf32>
    %63 = arith.addf %59, %62 : vector<8x96xf32>
    %c0_31 = arith.constant 0 : index
    %c0_32 = arith.constant 0 : index
    %c0_33 = arith.constant 0 : index
    %64 = vector.load %arg9[%c0_31, %c0_32, %c0_33] : memref<2x32x32xbf16, #tpu.memory_space<vmem>>, vector<1x32x32xbf16>
    %65 = vector.shape_cast %64 : vector<1x32x32xbf16> to vector<32x32xbf16>
    %cst_34 = arith.constant 0.000000e+00 : f32
    %66 = vector.broadcast %cst_34 : f32 to vector<8x32xf32>
    %67 = vector.extract_strided_slice %63 {offsets = [0, 0], sizes = [8, 16], strides = [1, 1]} : vector<8x96xf32> to vector<8x16xf32>
    %68 = arith.truncf %67 : vector<8x16xf32> to vector<8x16xbf16>
    %69 = vector.extract_strided_slice %63 {offsets = [0, 32], sizes = [8, 16], strides = [1, 1]} : vector<8x96xf32> to vector<8x16xf32>
    %70 = arith.truncf %69 : vector<8x16xf32> to vector<8x16xbf16>
    %71 = vector.extract_strided_slice %63 {offsets = [0, 64], sizes = [8, 16], strides = [1, 1]} : vector<8x96xf32> to vector<8x16xf32>
    %72 = arith.truncf %71 : vector<8x16xf32> to vector<8x16xbf16>
    %cst_35 = arith.constant dense<0.000000e+00> : vector<8x8xf32>
    %73 = tpu.matmul %68, %70, %cst_35 {dimension_numbers = #tpu.dot_dimension_numbers<[1], [1], [0], [0], [0, 0, 1, 0], [], []>} : vector<8x16xbf16>, vector<8x16xbf16>, vector<8x8xf32> -> vector<8x8xf32>
    %cst_36 = arith.constant 2.500000e-01 : f32
    %74 = vector.broadcast %cst_36 : f32 to vector<8x8xf32>
    %75 = arith.mulf %73, %74 : vector<8x8xf32>
    %76 = arith.addf %75, %3 : vector<8x8xf32>
    %cst_37 = arith.constant dense<0xFF800000> : vector<8xf32>
    %77 = vector.multi_reduction <maximumf>, %76, %cst_37 [1] : vector<8x8xf32> to vector<8xf32>
    %78 = vector.shape_cast %77 : vector<8xf32> to vector<8x1xf32>
    %79 = vector.broadcast %78 : vector<8x1xf32> to vector<8x8xf32>
    %80 = arith.subf %76, %79 : vector<8x8xf32>
    %81 = math.exp %80 : vector<8x8xf32>
    %cst_38 = arith.constant dense<0.000000e+00> : vector<8xf32>
    %82 = vector.multi_reduction <add>, %81, %cst_38 [1] : vector<8x8xf32> to vector<8xf32>
    %83 = vector.shape_cast %82 : vector<8xf32> to vector<8x1xf32>
    %84 = tpu.reciprocal %83 {approx = true} : vector<8x1xf32> -> vector<8x1xf32>
    %85 = vector.broadcast %84 : vector<8x1xf32> to vector<8x8xf32>
    %86 = arith.mulf %81, %85 : vector<8x8xf32>
    %87 = arith.truncf %86 : vector<8x8xf32> to vector<8x8xbf16>
    %cst_39 = arith.constant dense<0.000000e+00> : vector<8x16xf32>
    %88 = tpu.matmul %87, %72, %cst_39 {dimension_numbers = #tpu.dot_dimension_numbers<[1], [0], [0], [1], [0, 0, 1, 1], [], []>} : vector<8x8xbf16>, vector<8x16xbf16>, vector<8x16xf32> -> vector<8x16xf32>
    %89 = arith.truncf %88 : vector<8x16xf32> to vector<8x16xbf16>
    %90 = vector.extract_strided_slice %65 {offsets = [0, 0], sizes = [16, 32], strides = [1, 1]} : vector<32x32xbf16> to vector<16x32xbf16>
    %cst_40 = arith.constant dense<0.000000e+00> : vector<8x32xf32>
    %91 = tpu.matmul %89, %90, %cst_40 {dimension_numbers = #tpu.dot_dimension_numbers<[1], [0], [0], [1], [0, 0, 1, 1], [], []>} : vector<8x16xbf16>, vector<16x32xbf16>, vector<8x32xf32> -> vector<8x32xf32>
    %92 = arith.addf %66, %91 : vector<8x32xf32>
    %93 = vector.extract_strided_slice %63 {offsets = [0, 16], sizes = [8, 16], strides = [1, 1]} : vector<8x96xf32> to vector<8x16xf32>
    %94 = arith.truncf %93 : vector<8x16xf32> to vector<8x16xbf16>
    %95 = vector.extract_strided_slice %63 {offsets = [0, 48], sizes = [8, 16], strides = [1, 1]} : vector<8x96xf32> to vector<8x16xf32>
    %96 = arith.truncf %95 : vector<8x16xf32> to vector<8x16xbf16>
    %97 = vector.extract_strided_slice %63 {offsets = [0, 80], sizes = [8, 16], strides = [1, 1]} : vector<8x96xf32> to vector<8x16xf32>
    %98 = arith.truncf %97 : vector<8x16xf32> to vector<8x16xbf16>
    %cst_41 = arith.constant dense<0.000000e+00> : vector<8x8xf32>
    %99 = tpu.matmul %94, %96, %cst_41 {dimension_numbers = #tpu.dot_dimension_numbers<[1], [1], [0], [0], [0, 0, 1, 0], [], []>} : vector<8x16xbf16>, vector<8x16xbf16>, vector<8x8xf32> -> vector<8x8xf32>
    %cst_42 = arith.constant 2.500000e-01 : f32
    %100 = vector.broadcast %cst_42 : f32 to vector<8x8xf32>
    %101 = arith.mulf %99, %100 : vector<8x8xf32>
    %102 = arith.addf %101, %3 : vector<8x8xf32>
    %cst_43 = arith.constant dense<0xFF800000> : vector<8xf32>
    %103 = vector.multi_reduction <maximumf>, %102, %cst_43 [1] : vector<8x8xf32> to vector<8xf32>
    %104 = vector.shape_cast %103 : vector<8xf32> to vector<8x1xf32>
    %105 = vector.broadcast %104 : vector<8x1xf32> to vector<8x8xf32>
    %106 = arith.subf %102, %105 : vector<8x8xf32>
    %107 = math.exp %106 : vector<8x8xf32>
    %cst_44 = arith.constant dense<0.000000e+00> : vector<8xf32>
    %108 = vector.multi_reduction <add>, %107, %cst_44 [1] : vector<8x8xf32> to vector<8xf32>
    %109 = vector.shape_cast %108 : vector<8xf32> to vector<8x1xf32>
    %110 = tpu.reciprocal %109 {approx = true} : vector<8x1xf32> -> vector<8x1xf32>
    %111 = vector.broadcast %110 : vector<8x1xf32> to vector<8x8xf32>
    %112 = arith.mulf %107, %111 : vector<8x8xf32>
    %113 = arith.truncf %112 : vector<8x8xf32> to vector<8x8xbf16>
    %cst_45 = arith.constant dense<0.000000e+00> : vector<8x16xf32>
    %114 = tpu.matmul %113, %98, %cst_45 {dimension_numbers = #tpu.dot_dimension_numbers<[1], [0], [0], [1], [0, 0, 1, 1], [], []>} : vector<8x8xbf16>, vector<8x16xbf16>, vector<8x16xf32> -> vector<8x16xf32>
    %115 = arith.truncf %114 : vector<8x16xf32> to vector<8x16xbf16>
    %116 = vector.extract_strided_slice %65 {offsets = [16, 0], sizes = [16, 32], strides = [1, 1]} : vector<32x32xbf16> to vector<16x32xbf16>
    %cst_46 = arith.constant dense<0.000000e+00> : vector<8x32xf32>
    %117 = tpu.matmul %115, %116, %cst_46 {dimension_numbers = #tpu.dot_dimension_numbers<[1], [0], [0], [1], [0, 0, 1, 1], [], []>} : vector<8x16xbf16>, vector<16x32xbf16>, vector<8x32xf32> -> vector<8x32xf32>
    %118 = arith.addf %92, %117 : vector<8x32xf32>
    %119 = arith.addf %29, %118 : vector<8x32xf32>
    %c0_47 = arith.constant 0 : index
    %c0_48 = arith.constant 0 : index
    %c0_49 = arith.constant 0 : index
    %120 = vector.load %arg10[%c0_47, %c0_48, %c0_49] : memref<2x1x32xf32, #tpu.memory_space<vmem>>, vector<1x1x32xf32>
    %121 = vector.shape_cast %120 : vector<1x1x32xf32> to vector<1x32xf32>
    %122 = vector.broadcast %121 : vector<1x32xf32> to vector<8x32xf32>
    %123 = arith.addf %119, %122 : vector<8x32xf32>
    %c0_50 = arith.constant 0 : index
    %c0_51 = arith.constant 0 : index
    %c0_52 = arith.constant 0 : index
    %124 = vector.load %arg11[%c0_50, %c0_51, %c0_52] : memref<2x1x32xf32, #tpu.memory_space<vmem>>, vector<1x1x32xf32>
    %125 = vector.shape_cast %124 : vector<1x1x32xf32> to vector<1x32xf32>
    %c0_53 = arith.constant 0 : index
    %c0_54 = arith.constant 0 : index
    %c0_55 = arith.constant 0 : index
    %126 = vector.load %arg12[%c0_53, %c0_54, %c0_55] : memref<2x1x32xf32, #tpu.memory_space<vmem>>, vector<1x1x32xf32>
    %127 = vector.shape_cast %126 : vector<1x1x32xf32> to vector<1x32xf32>
    %cst_56 = arith.constant dense<0.000000e+00> : vector<8xf32>
    %128 = vector.multi_reduction <add>, %123, %cst_56 [1] : vector<8x32xf32> to vector<8xf32>
    %129 = vector.shape_cast %128 : vector<8xf32> to vector<8x1xf32>
    %cst_57 = arith.constant 3.200000e+01 : f32
    %130 = vector.broadcast %cst_57 : f32 to vector<8x1xf32>
    %131 = arith.divf %129, %130 : vector<8x1xf32>
    %132 = vector.broadcast %131 : vector<8x1xf32> to vector<8x32xf32>
    %133 = arith.subf %123, %132 : vector<8x32xf32>
    %134 = arith.mulf %133, %133 : vector<8x32xf32>
    %cst_58 = arith.constant dense<0.000000e+00> : vector<8xf32>
    %135 = vector.multi_reduction <add>, %134, %cst_58 [1] : vector<8x32xf32> to vector<8xf32>
    %136 = vector.shape_cast %135 : vector<8xf32> to vector<8x1xf32>
    %cst_59 = arith.constant 3.200000e+01 : f32
    %137 = vector.broadcast %cst_59 : f32 to vector<8x1xf32>
    %138 = arith.divf %136, %137 : vector<8x1xf32>
    %139 = vector.broadcast %131 : vector<8x1xf32> to vector<8x32xf32>
    %140 = arith.subf %123, %139 : vector<8x32xf32>
    %cst_60 = arith.constant 9.99999974E-6 : f32
    %141 = vector.broadcast %cst_60 : f32 to vector<8x1xf32>
    %142 = arith.addf %138, %141 : vector<8x1xf32>
    %143 = math.rsqrt %142 : vector<8x1xf32>
    %144 = vector.broadcast %143 : vector<8x1xf32> to vector<8x32xf32>
    %145 = arith.mulf %140, %144 : vector<8x32xf32>
    %146 = vector.broadcast %125 : vector<1x32xf32> to vector<8x32xf32>
    %147 = arith.mulf %145, %146 : vector<8x32xf32>
    %148 = vector.broadcast %127 : vector<1x32xf32> to vector<8x32xf32>
    %149 = arith.addf %147, %148 : vector<8x32xf32>
    %150 = arith.truncf %149 : vector<8x32xf32> to vector<8x32xbf16>
    %c0_61 = arith.constant 0 : index
    %c0_62 = arith.constant 0 : index
    %c0_63 = arith.constant 0 : index
    %151 = vector.load %arg13[%c0_61, %c0_62, %c0_63] : memref<2x32x64xbf16, #tpu.memory_space<vmem>>, vector<1x32x64xbf16>
    %152 = vector.shape_cast %151 : vector<1x32x64xbf16> to vector<32x64xbf16>
    %cst_64 = arith.constant dense<0.000000e+00> : vector<8x64xf32>
    %153 = tpu.matmul %150, %152, %cst_64 {dimension_numbers = #tpu.dot_dimension_numbers<[1], [0], [0], [1], [0, 0, 1, 1], [], []>} : vector<8x32xbf16>, vector<32x64xbf16>, vector<8x64xf32> -> vector<8x64xf32>
    %c0_65 = arith.constant 0 : index
    %c0_66 = arith.constant 0 : index
    %c0_67 = arith.constant 0 : index
    %154 = vector.load %arg14[%c0_65, %c0_66, %c0_67] : memref<2x1x64xf32, #tpu.memory_space<vmem>>, vector<1x1x64xf32>
    %155 = vector.shape_cast %154 : vector<1x1x64xf32> to vector<1x64xf32>
    %156 = vector.broadcast %155 : vector<1x64xf32> to vector<8x64xf32>
    %157 = arith.addf %153, %156 : vector<8x64xf32>
    %158 = arith.mulf %157, %157 : vector<8x64xf32>
    %159 = arith.mulf %157, %158 : vector<8x64xf32>
    %cst_68 = arith.constant 4.471500e-02 : f32
    %160 = vector.broadcast %cst_68 : f32 to vector<8x64xf32>
    %161 = arith.mulf %160, %159 : vector<8x64xf32>
    %162 = arith.addf %157, %161 : vector<8x64xf32>
    %cst_69 = arith.constant 0.797884583 : f32
    %163 = vector.broadcast %cst_69 : f32 to vector<8x64xf32>
    %164 = arith.mulf %163, %162 : vector<8x64xf32>
    %165 = math.tanh %164 : vector<8x64xf32>
    %cst_70 = arith.constant 1.000000e+00 : f32
    %166 = vector.broadcast %cst_70 : f32 to vector<8x64xf32>
    %167 = arith.addf %166, %165 : vector<8x64xf32>
    %cst_71 = arith.constant 5.000000e-01 : f32
    %168 = vector.broadcast %cst_71 : f32 to vector<8x64xf32>
    %169 = arith.mulf %168, %167 : vector<8x64xf32>
    %170 = arith.mulf %157, %169 : vector<8x64xf32>
    %171 = arith.truncf %170 : vector<8x64xf32> to vector<8x64xbf16>
    %c0_72 = arith.constant 0 : index
    %c0_73 = arith.constant 0 : index
    %c0_74 = arith.constant 0 : index
    %172 = vector.load %arg15[%c0_72, %c0_73, %c0_74] : memref<2x64x32xbf16, #tpu.memory_space<vmem>>, vector<1x64x32xbf16>
    %173 = vector.shape_cast %172 : vector<1x64x32xbf16> to vector<64x32xbf16>
    %cst_75 = arith.constant dense<0.000000e+00> : vector<8x32xf32>
    %174 = tpu.matmul %171, %173, %cst_75 {dimension_numbers = #tpu.dot_dimension_numbers<[1], [0], [0], [1], [0, 0, 1, 1], [], []>} : vector<8x64xbf16>, vector<64x32xbf16>, vector<8x32xf32> -> vector<8x32xf32>
    %175 = arith.addf %123, %174 : vector<8x32xf32>
    %c0_76 = arith.constant 0 : index
    %c0_77 = arith.constant 0 : index
    %c0_78 = arith.constant 0 : index
    %176 = vector.load %arg16[%c0_76, %c0_77, %c0_78] : memref<2x1x32xf32, #tpu.memory_space<vmem>>, vector<1x1x32xf32>
    %177 = vector.shape_cast %176 : vector<1x1x32xf32> to vector<1x32xf32>
    %178 = vector.broadcast %177 : vector<1x32xf32> to vector<8x32xf32>
    %179 = arith.addf %175, %178 : vector<8x32xf32>
    %c1 = arith.constant 1 : index
    %c0_79 = arith.constant 0 : index
    %c0_80 = arith.constant 0 : index
    %180 = vector.load %arg5[%c1, %c0_79, %c0_80] : memref<2x1x32xf32, #tpu.memory_space<vmem>>, vector<1x1x32xf32>
    %181 = vector.shape_cast %180 : vector<1x1x32xf32> to vector<1x32xf32>
    %c1_81 = arith.constant 1 : index
    %c0_82 = arith.constant 0 : index
    %c0_83 = arith.constant 0 : index
    %182 = vector.load %arg6[%c1_81, %c0_82, %c0_83] : memref<2x1x32xf32, #tpu.memory_space<vmem>>, vector<1x1x32xf32>
    %183 = vector.shape_cast %182 : vector<1x1x32xf32> to vector<1x32xf32>
    %cst_84 = arith.constant dense<0.000000e+00> : vector<8xf32>
    %184 = vector.multi_reduction <add>, %179, %cst_84 [1] : vector<8x32xf32> to vector<8xf32>
    %185 = vector.shape_cast %184 : vector<8xf32> to vector<8x1xf32>
    %cst_85 = arith.constant 3.200000e+01 : f32
    %186 = vector.broadcast %cst_85 : f32 to vector<8x1xf32>
    %187 = arith.divf %185, %186 : vector<8x1xf32>
    %188 = vector.broadcast %187 : vector<8x1xf32> to vector<8x32xf32>
    %189 = arith.subf %179, %188 : vector<8x32xf32>
    %190 = arith.mulf %189, %189 : vector<8x32xf32>
    %cst_86 = arith.constant dense<0.000000e+00> : vector<8xf32>
    %191 = vector.multi_reduction <add>, %190, %cst_86 [1] : vector<8x32xf32> to vector<8xf32>
    %192 = vector.shape_cast %191 : vector<8xf32> to vector<8x1xf32>
    %cst_87 = arith.constant 3.200000e+01 : f32
    %193 = vector.broadcast %cst_87 : f32 to vector<8x1xf32>
    %194 = arith.divf %192, %193 : vector<8x1xf32>
    %195 = vector.broadcast %187 : vector<8x1xf32> to vector<8x32xf32>
    %196 = arith.subf %179, %195 : vector<8x32xf32>
    %cst_88 = arith.constant 9.99999974E-6 : f32
    %197 = vector.broadcast %cst_88 : f32 to vector<8x1xf32>
    %198 = arith.addf %194, %197 : vector<8x1xf32>
    %199 = math.rsqrt %198 : vector<8x1xf32>
    %200 = vector.broadcast %199 : vector<8x1xf32> to vector<8x32xf32>
    %201 = arith.mulf %196, %200 : vector<8x32xf32>
    %202 = vector.broadcast %181 : vector<1x32xf32> to vector<8x32xf32>
    %203 = arith.mulf %201, %202 : vector<8x32xf32>
    %204 = vector.broadcast %183 : vector<1x32xf32> to vector<8x32xf32>
    %205 = arith.addf %203, %204 : vector<8x32xf32>
    %206 = arith.truncf %205 : vector<8x32xf32> to vector<8x32xbf16>
    %c1_89 = arith.constant 1 : index
    %c0_90 = arith.constant 0 : index
    %c0_91 = arith.constant 0 : index
    %207 = vector.load %arg7[%c1_89, %c0_90, %c0_91] : memref<2x32x96xbf16, #tpu.memory_space<vmem>>, vector<1x32x96xbf16>
    %208 = vector.shape_cast %207 : vector<1x32x96xbf16> to vector<32x96xbf16>
    %cst_92 = arith.constant dense<0.000000e+00> : vector<8x96xf32>
    %209 = tpu.matmul %206, %208, %cst_92 {dimension_numbers = #tpu.dot_dimension_numbers<[1], [0], [0], [1], [0, 0, 1, 1], [], []>} : vector<8x32xbf16>, vector<32x96xbf16>, vector<8x96xf32> -> vector<8x96xf32>
    %c1_93 = arith.constant 1 : index
    %c0_94 = arith.constant 0 : index
    %c0_95 = arith.constant 0 : index
    %210 = vector.load %arg8[%c1_93, %c0_94, %c0_95] : memref<2x1x96xf32, #tpu.memory_space<vmem>>, vector<1x1x96xf32>
    %211 = vector.shape_cast %210 : vector<1x1x96xf32> to vector<1x96xf32>
    %212 = vector.broadcast %211 : vector<1x96xf32> to vector<8x96xf32>
    %213 = arith.addf %209, %212 : vector<8x96xf32>
    %c1_96 = arith.constant 1 : index
    %c0_97 = arith.constant 0 : index
    %c0_98 = arith.constant 0 : index
    %214 = vector.load %arg9[%c1_96, %c0_97, %c0_98] : memref<2x32x32xbf16, #tpu.memory_space<vmem>>, vector<1x32x32xbf16>
    %215 = vector.shape_cast %214 : vector<1x32x32xbf16> to vector<32x32xbf16>
    %cst_99 = arith.constant 0.000000e+00 : f32
    %216 = vector.broadcast %cst_99 : f32 to vector<8x32xf32>
    %217 = vector.extract_strided_slice %213 {offsets = [0, 0], sizes = [8, 16], strides = [1, 1]} : vector<8x96xf32> to vector<8x16xf32>
    %218 = arith.truncf %217 : vector<8x16xf32> to vector<8x16xbf16>
    %219 = vector.extract_strided_slice %213 {offsets = [0, 32], sizes = [8, 16], strides = [1, 1]} : vector<8x96xf32> to vector<8x16xf32>
    %220 = arith.truncf %219 : vector<8x16xf32> to vector<8x16xbf16>
    %221 = vector.extract_strided_slice %213 {offsets = [0, 64], sizes = [8, 16], strides = [1, 1]} : vector<8x96xf32> to vector<8x16xf32>
    %222 = arith.truncf %221 : vector<8x16xf32> to vector<8x16xbf16>
    %cst_100 = arith.constant dense<0.000000e+00> : vector<8x8xf32>
    %223 = tpu.matmul %218, %220, %cst_100 {dimension_numbers = #tpu.dot_dimension_numbers<[1], [1], [0], [0], [0, 0, 1, 0], [], []>} : vector<8x16xbf16>, vector<8x16xbf16>, vector<8x8xf32> -> vector<8x8xf32>
    %cst_101 = arith.constant 2.500000e-01 : f32
    %224 = vector.broadcast %cst_101 : f32 to vector<8x8xf32>
    %225 = arith.mulf %223, %224 : vector<8x8xf32>
    %226 = arith.addf %225, %3 : vector<8x8xf32>
    %cst_102 = arith.constant dense<0xFF800000> : vector<8xf32>
    %227 = vector.multi_reduction <maximumf>, %226, %cst_102 [1] : vector<8x8xf32> to vector<8xf32>
    %228 = vector.shape_cast %227 : vector<8xf32> to vector<8x1xf32>
    %229 = vector.broadcast %228 : vector<8x1xf32> to vector<8x8xf32>
    %230 = arith.subf %226, %229 : vector<8x8xf32>
    %231 = math.exp %230 : vector<8x8xf32>
    %cst_103 = arith.constant dense<0.000000e+00> : vector<8xf32>
    %232 = vector.multi_reduction <add>, %231, %cst_103 [1] : vector<8x8xf32> to vector<8xf32>
    %233 = vector.shape_cast %232 : vector<8xf32> to vector<8x1xf32>
    %234 = tpu.reciprocal %233 {approx = true} : vector<8x1xf32> -> vector<8x1xf32>
    %235 = vector.broadcast %234 : vector<8x1xf32> to vector<8x8xf32>
    %236 = arith.mulf %231, %235 : vector<8x8xf32>
    %237 = arith.truncf %236 : vector<8x8xf32> to vector<8x8xbf16>
    %cst_104 = arith.constant dense<0.000000e+00> : vector<8x16xf32>
    %238 = tpu.matmul %237, %222, %cst_104 {dimension_numbers = #tpu.dot_dimension_numbers<[1], [0], [0], [1], [0, 0, 1, 1], [], []>} : vector<8x8xbf16>, vector<8x16xbf16>, vector<8x16xf32> -> vector<8x16xf32>
    %239 = arith.truncf %238 : vector<8x16xf32> to vector<8x16xbf16>
    %240 = vector.extract_strided_slice %215 {offsets = [0, 0], sizes = [16, 32], strides = [1, 1]} : vector<32x32xbf16> to vector<16x32xbf16>
    %cst_105 = arith.constant dense<0.000000e+00> : vector<8x32xf32>
    %241 = tpu.matmul %239, %240, %cst_105 {dimension_numbers = #tpu.dot_dimension_numbers<[1], [0], [0], [1], [0, 0, 1, 1], [], []>} : vector<8x16xbf16>, vector<16x32xbf16>, vector<8x32xf32> -> vector<8x32xf32>
    %242 = arith.addf %216, %241 : vector<8x32xf32>
    %243 = vector.extract_strided_slice %213 {offsets = [0, 16], sizes = [8, 16], strides = [1, 1]} : vector<8x96xf32> to vector<8x16xf32>
    %244 = arith.truncf %243 : vector<8x16xf32> to vector<8x16xbf16>
    %245 = vector.extract_strided_slice %213 {offsets = [0, 48], sizes = [8, 16], strides = [1, 1]} : vector<8x96xf32> to vector<8x16xf32>
    %246 = arith.truncf %245 : vector<8x16xf32> to vector<8x16xbf16>
    %247 = vector.extract_strided_slice %213 {offsets = [0, 80], sizes = [8, 16], strides = [1, 1]} : vector<8x96xf32> to vector<8x16xf32>
    %248 = arith.truncf %247 : vector<8x16xf32> to vector<8x16xbf16>
    %cst_106 = arith.constant dense<0.000000e+00> : vector<8x8xf32>
    %249 = tpu.matmul %244, %246, %cst_106 {dimension_numbers = #tpu.dot_dimension_numbers<[1], [1], [0], [0], [0, 0, 1, 0], [], []>} : vector<8x16xbf16>, vector<8x16xbf16>, vector<8x8xf32> -> vector<8x8xf32>
    %cst_107 = arith.constant 2.500000e-01 : f32
    %250 = vector.broadcast %cst_107 : f32 to vector<8x8xf32>
    %251 = arith.mulf %249, %250 : vector<8x8xf32>
    %252 = arith.addf %251, %3 : vector<8x8xf32>
    %cst_108 = arith.constant dense<0xFF800000> : vector<8xf32>
    %253 = vector.multi_reduction <maximumf>, %252, %cst_108 [1] : vector<8x8xf32> to vector<8xf32>
    %254 = vector.shape_cast %253 : vector<8xf32> to vector<8x1xf32>
    %255 = vector.broadcast %254 : vector<8x1xf32> to vector<8x8xf32>
    %256 = arith.subf %252, %255 : vector<8x8xf32>
    %257 = math.exp %256 : vector<8x8xf32>
    %cst_109 = arith.constant dense<0.000000e+00> : vector<8xf32>
    %258 = vector.multi_reduction <add>, %257, %cst_109 [1] : vector<8x8xf32> to vector<8xf32>
    %259 = vector.shape_cast %258 : vector<8xf32> to vector<8x1xf32>
    %260 = tpu.reciprocal %259 {approx = true} : vector<8x1xf32> -> vector<8x1xf32>
    %261 = vector.broadcast %260 : vector<8x1xf32> to vector<8x8xf32>
    %262 = arith.mulf %257, %261 : vector<8x8xf32>
    %263 = arith.truncf %262 : vector<8x8xf32> to vector<8x8xbf16>
    %cst_110 = arith.constant dense<0.000000e+00> : vector<8x16xf32>
    %264 = tpu.matmul %263, %248, %cst_110 {dimension_numbers = #tpu.dot_dimension_numbers<[1], [0], [0], [1], [0, 0, 1, 1], [], []>} : vector<8x8xbf16>, vector<8x16xbf16>, vector<8x16xf32> -> vector<8x16xf32>
    %265 = arith.truncf %264 : vector<8x16xf32> to vector<8x16xbf16>
    %266 = vector.extract_strided_slice %215 {offsets = [16, 0], sizes = [16, 32], strides = [1, 1]} : vector<32x32xbf16> to vector<16x32xbf16>
    %cst_111 = arith.constant dense<0.000000e+00> : vector<8x32xf32>
    %267 = tpu.matmul %265, %266, %cst_111 {dimension_numbers = #tpu.dot_dimension_numbers<[1], [0], [0], [1], [0, 0, 1, 1], [], []>} : vector<8x16xbf16>, vector<16x32xbf16>, vector<8x32xf32> -> vector<8x32xf32>
    %268 = arith.addf %242, %267 : vector<8x32xf32>
    %269 = arith.addf %179, %268 : vector<8x32xf32>
    %c1_112 = arith.constant 1 : index
    %c0_113 = arith.constant 0 : index
    %c0_114 = arith.constant 0 : index
    %270 = vector.load %arg10[%c1_112, %c0_113, %c0_114] : memref<2x1x32xf32, #tpu.memory_space<vmem>>, vector<1x1x32xf32>
    %271 = vector.shape_cast %270 : vector<1x1x32xf32> to vector<1x32xf32>
    %272 = vector.broadcast %271 : vector<1x32xf32> to vector<8x32xf32>
    %273 = arith.addf %269, %272 : vector<8x32xf32>
    %c1_115 = arith.constant 1 : index
    %c0_116 = arith.constant 0 : index
    %c0_117 = arith.constant 0 : index
    %274 = vector.load %arg11[%c1_115, %c0_116, %c0_117] : memref<2x1x32xf32, #tpu.memory_space<vmem>>, vector<1x1x32xf32>
    %275 = vector.shape_cast %274 : vector<1x1x32xf32> to vector<1x32xf32>
    %c1_118 = arith.constant 1 : index
    %c0_119 = arith.constant 0 : index
    %c0_120 = arith.constant 0 : index
    %276 = vector.load %arg12[%c1_118, %c0_119, %c0_120] : memref<2x1x32xf32, #tpu.memory_space<vmem>>, vector<1x1x32xf32>
    %277 = vector.shape_cast %276 : vector<1x1x32xf32> to vector<1x32xf32>
    %cst_121 = arith.constant dense<0.000000e+00> : vector<8xf32>
    %278 = vector.multi_reduction <add>, %273, %cst_121 [1] : vector<8x32xf32> to vector<8xf32>
    %279 = vector.shape_cast %278 : vector<8xf32> to vector<8x1xf32>
    %cst_122 = arith.constant 3.200000e+01 : f32
    %280 = vector.broadcast %cst_122 : f32 to vector<8x1xf32>
    %281 = arith.divf %279, %280 : vector<8x1xf32>
    %282 = vector.broadcast %281 : vector<8x1xf32> to vector<8x32xf32>
    %283 = arith.subf %273, %282 : vector<8x32xf32>
    %284 = arith.mulf %283, %283 : vector<8x32xf32>
    %cst_123 = arith.constant dense<0.000000e+00> : vector<8xf32>
    %285 = vector.multi_reduction <add>, %284, %cst_123 [1] : vector<8x32xf32> to vector<8xf32>
    %286 = vector.shape_cast %285 : vector<8xf32> to vector<8x1xf32>
    %cst_124 = arith.constant 3.200000e+01 : f32
    %287 = vector.broadcast %cst_124 : f32 to vector<8x1xf32>
    %288 = arith.divf %286, %287 : vector<8x1xf32>
    %289 = vector.broadcast %281 : vector<8x1xf32> to vector<8x32xf32>
    %290 = arith.subf %273, %289 : vector<8x32xf32>
    %cst_125 = arith.constant 9.99999974E-6 : f32
    %291 = vector.broadcast %cst_125 : f32 to vector<8x1xf32>
    %292 = arith.addf %288, %291 : vector<8x1xf32>
    %293 = math.rsqrt %292 : vector<8x1xf32>
    %294 = vector.broadcast %293 : vector<8x1xf32> to vector<8x32xf32>
    %295 = arith.mulf %290, %294 : vector<8x32xf32>
    %296 = vector.broadcast %275 : vector<1x32xf32> to vector<8x32xf32>
    %297 = arith.mulf %295, %296 : vector<8x32xf32>
    %298 = vector.broadcast %277 : vector<1x32xf32> to vector<8x32xf32>
    %299 = arith.addf %297, %298 : vector<8x32xf32>
    %300 = arith.truncf %299 : vector<8x32xf32> to vector<8x32xbf16>
    %c1_126 = arith.constant 1 : index
    %c0_127 = arith.constant 0 : index
    %c0_128 = arith.constant 0 : index
    %301 = vector.load %arg13[%c1_126, %c0_127, %c0_128] : memref<2x32x64xbf16, #tpu.memory_space<vmem>>, vector<1x32x64xbf16>
    %302 = vector.shape_cast %301 : vector<1x32x64xbf16> to vector<32x64xbf16>
    %cst_129 = arith.constant dense<0.000000e+00> : vector<8x64xf32>
    %303 = tpu.matmul %300, %302, %cst_129 {dimension_numbers = #tpu.dot_dimension_numbers<[1], [0], [0], [1], [0, 0, 1, 1], [], []>} : vector<8x32xbf16>, vector<32x64xbf16>, vector<8x64xf32> -> vector<8x64xf32>
    %c1_130 = arith.constant 1 : index
    %c0_131 = arith.constant 0 : index
    %c0_132 = arith.constant 0 : index
    %304 = vector.load %arg14[%c1_130, %c0_131, %c0_132] : memref<2x1x64xf32, #tpu.memory_space<vmem>>, vector<1x1x64xf32>
    %305 = vector.shape_cast %304 : vector<1x1x64xf32> to vector<1x64xf32>
    %306 = vector.broadcast %305 : vector<1x64xf32> to vector<8x64xf32>
    %307 = arith.addf %303, %306 : vector<8x64xf32>
    %308 = arith.mulf %307, %307 : vector<8x64xf32>
    %309 = arith.mulf %307, %308 : vector<8x64xf32>
    %cst_133 = arith.constant 4.471500e-02 : f32
    %310 = vector.broadcast %cst_133 : f32 to vector<8x64xf32>
    %311 = arith.mulf %310, %309 : vector<8x64xf32>
    %312 = arith.addf %307, %311 : vector<8x64xf32>
    %cst_134 = arith.constant 0.797884583 : f32
    %313 = vector.broadcast %cst_134 : f32 to vector<8x64xf32>
    %314 = arith.mulf %313, %312 : vector<8x64xf32>
    %315 = math.tanh %314 : vector<8x64xf32>
    %cst_135 = arith.constant 1.000000e+00 : f32
    %316 = vector.broadcast %cst_135 : f32 to vector<8x64xf32>
    %317 = arith.addf %316, %315 : vector<8x64xf32>
    %cst_136 = arith.constant 5.000000e-01 : f32
    %318 = vector.broadcast %cst_136 : f32 to vector<8x64xf32>
    %319 = arith.mulf %318, %317 : vector<8x64xf32>
    %320 = arith.mulf %307, %319 : vector<8x64xf32>
    %321 = arith.truncf %320 : vector<8x64xf32> to vector<8x64xbf16>
    %c1_137 = arith.constant 1 : index
    %c0_138 = arith.constant 0 : index
    %c0_139 = arith.constant 0 : index
    %322 = vector.load %arg15[%c1_137, %c0_138, %c0_139] : memref<2x64x32xbf16, #tpu.memory_space<vmem>>, vector<1x64x32xbf16>
    %323 = vector.shape_cast %322 : vector<1x64x32xbf16> to vector<64x32xbf16>
    %cst_140 = arith.constant dense<0.000000e+00> : vector<8x32xf32>
    %324 = tpu.matmul %321, %323, %cst_140 {dimension_numbers = #tpu.dot_dimension_numbers<[1], [0], [0], [1], [0, 0, 1, 1], [], []>} : vector<8x64xbf16>, vector<64x32xbf16>, vector<8x32xf32> -> vector<8x32xf32>
    %325 = arith.addf %273, %324 : vector<8x32xf32>
    %c1_141 = arith.constant 1 : index
    %c0_142 = arith.constant 0 : index
    %c0_143 = arith.constant 0 : index
    %326 = vector.load %arg16[%c1_141, %c0_142, %c0_143] : memref<2x1x32xf32, #tpu.memory_space<vmem>>, vector<1x1x32xf32>
    %327 = vector.shape_cast %326 : vector<1x1x32xf32> to vector<1x32xf32>
    %328 = vector.broadcast %327 : vector<1x32xf32> to vector<8x32xf32>
    %329 = arith.addf %325, %328 : vector<8x32xf32>
    %c0_144 = arith.constant 0 : index
    %c0_145 = arith.constant 0 : index
    %330 = vector.load %arg17[%c0_144, %c0_145] : memref<1x32xf32, #tpu.memory_space<vmem>>, vector<1x32xf32>
    %c0_146 = arith.constant 0 : index
    %c0_147 = arith.constant 0 : index
    %331 = vector.load %arg18[%c0_146, %c0_147] : memref<1x32xf32, #tpu.memory_space<vmem>>, vector<1x32xf32>
    %cst_148 = arith.constant dense<0.000000e+00> : vector<8xf32>
    %332 = vector.multi_reduction <add>, %329, %cst_148 [1] : vector<8x32xf32> to vector<8xf32>
    %333 = vector.shape_cast %332 : vector<8xf32> to vector<8x1xf32>
    %cst_149 = arith.constant 3.200000e+01 : f32
    %334 = vector.broadcast %cst_149 : f32 to vector<8x1xf32>
    %335 = arith.divf %333, %334 : vector<8x1xf32>
    %336 = vector.broadcast %335 : vector<8x1xf32> to vector<8x32xf32>
    %337 = arith.subf %329, %336 : vector<8x32xf32>
    %338 = arith.mulf %337, %337 : vector<8x32xf32>
    %cst_150 = arith.constant dense<0.000000e+00> : vector<8xf32>
    %339 = vector.multi_reduction <add>, %338, %cst_150 [1] : vector<8x32xf32> to vector<8xf32>
    %340 = vector.shape_cast %339 : vector<8xf32> to vector<8x1xf32>
    %cst_151 = arith.constant 3.200000e+01 : f32
    %341 = vector.broadcast %cst_151 : f32 to vector<8x1xf32>
    %342 = arith.divf %340, %341 : vector<8x1xf32>
    %343 = vector.broadcast %335 : vector<8x1xf32> to vector<8x32xf32>
    %344 = arith.subf %329, %343 : vector<8x32xf32>
    %cst_152 = arith.constant 9.99999974E-6 : f32
    %345 = vector.broadcast %cst_152 : f32 to vector<8x1xf32>
    %346 = arith.addf %342, %345 : vector<8x1xf32>
    %347 = math.rsqrt %346 : vector<8x1xf32>
    %348 = vector.broadcast %347 : vector<8x1xf32> to vector<8x32xf32>
    %349 = arith.mulf %344, %348 : vector<8x32xf32>
    %350 = vector.broadcast %330 : vector<1x32xf32> to vector<8x32xf32>
    %351 = arith.mulf %349, %350 : vector<8x32xf32>
    %352 = vector.broadcast %331 : vector<1x32xf32> to vector<8x32xf32>
    %353 = arith.addf %351, %352 : vector<8x32xf32>
    %354 = arith.truncf %353 : vector<8x32xf32> to vector<8x32xbf16>
    %c0_153 = arith.constant 0 : index
    %c0_154 = arith.constant 0 : index
    %c0_155 = arith.constant 0 : index
    %355 = vector.load %arg19[%c0_153, %c0_154, %c0_155] : memref<5x32x24xbf16, #tpu.memory_space<vmem>>, vector<1x32x24xbf16>
    %356 = vector.shape_cast %355 : vector<1x32x24xbf16> to vector<32x24xbf16>
    %cst_156 = arith.constant dense<0.000000e+00> : vector<8x24xf32>
    %357 = tpu.matmul %354, %356, %cst_156 {dimension_numbers = #tpu.dot_dimension_numbers<[1], [0], [0], [1], [0, 0, 1, 1], [], []>} : vector<8x32xbf16>, vector<32x24xbf16>, vector<8x24xf32> -> vector<8x24xf32>
    %358 = vector.extract_strided_slice %353 {offsets = [1, 0], sizes = [7, 32], strides = [1, 1]} : vector<8x32xf32> to vector<7x32xf32>
    %359 = vector.extract_strided_slice %353 {offsets = [0, 0], sizes = [1, 32], strides = [1, 1]} : vector<8x32xf32> to vector<1x32xf32>
    %360 = tpu.concatenate %358, %359 in 0 : vector<7x32xf32>, vector<1x32xf32> -> vector<8x32xf32>
    %361 = arith.truncf %360 : vector<8x32xf32> to vector<8x32xbf16>
    %c1_157 = arith.constant 1 : index
    %c0_158 = arith.constant 0 : index
    %c0_159 = arith.constant 0 : index
    %362 = vector.load %arg19[%c1_157, %c0_158, %c0_159] : memref<5x32x24xbf16, #tpu.memory_space<vmem>>, vector<1x32x24xbf16>
    %363 = vector.shape_cast %362 : vector<1x32x24xbf16> to vector<32x24xbf16>
    %cst_160 = arith.constant dense<0.000000e+00> : vector<8x24xf32>
    %364 = tpu.matmul %361, %363, %cst_160 {dimension_numbers = #tpu.dot_dimension_numbers<[1], [0], [0], [1], [0, 0, 1, 1], [], []>} : vector<8x32xbf16>, vector<32x24xbf16>, vector<8x24xf32> -> vector<8x24xf32>
    %365 = arith.addf %357, %364 : vector<8x24xf32>
    %366 = vector.extract_strided_slice %353 {offsets = [2, 0], sizes = [6, 32], strides = [1, 1]} : vector<8x32xf32> to vector<6x32xf32>
    %367 = vector.extract_strided_slice %353 {offsets = [0, 0], sizes = [2, 32], strides = [1, 1]} : vector<8x32xf32> to vector<2x32xf32>
    %368 = tpu.concatenate %366, %367 in 0 : vector<6x32xf32>, vector<2x32xf32> -> vector<8x32xf32>
    %369 = arith.truncf %368 : vector<8x32xf32> to vector<8x32xbf16>
    %c2 = arith.constant 2 : index
    %c0_161 = arith.constant 0 : index
    %c0_162 = arith.constant 0 : index
    %370 = vector.load %arg19[%c2, %c0_161, %c0_162] : memref<5x32x24xbf16, #tpu.memory_space<vmem>>, vector<1x32x24xbf16>
    %371 = vector.shape_cast %370 : vector<1x32x24xbf16> to vector<32x24xbf16>
    %cst_163 = arith.constant dense<0.000000e+00> : vector<8x24xf32>
    %372 = tpu.matmul %369, %371, %cst_163 {dimension_numbers = #tpu.dot_dimension_numbers<[1], [0], [0], [1], [0, 0, 1, 1], [], []>} : vector<8x32xbf16>, vector<32x24xbf16>, vector<8x24xf32> -> vector<8x24xf32>
    %373 = arith.addf %365, %372 : vector<8x24xf32>
    %374 = vector.extract_strided_slice %353 {offsets = [3, 0], sizes = [5, 32], strides = [1, 1]} : vector<8x32xf32> to vector<5x32xf32>
    %375 = vector.extract_strided_slice %353 {offsets = [0, 0], sizes = [3, 32], strides = [1, 1]} : vector<8x32xf32> to vector<3x32xf32>
    %376 = tpu.concatenate %374, %375 in 0 : vector<5x32xf32>, vector<3x32xf32> -> vector<8x32xf32>
    %377 = arith.truncf %376 : vector<8x32xf32> to vector<8x32xbf16>
    %c3 = arith.constant 3 : index
    %c0_164 = arith.constant 0 : index
    %c0_165 = arith.constant 0 : index
    %378 = vector.load %arg19[%c3, %c0_164, %c0_165] : memref<5x32x24xbf16, #tpu.memory_space<vmem>>, vector<1x32x24xbf16>
    %379 = vector.shape_cast %378 : vector<1x32x24xbf16> to vector<32x24xbf16>
    %cst_166 = arith.constant dense<0.000000e+00> : vector<8x24xf32>
    %380 = tpu.matmul %377, %379, %cst_166 {dimension_numbers = #tpu.dot_dimension_numbers<[1], [0], [0], [1], [0, 0, 1, 1], [], []>} : vector<8x32xbf16>, vector<32x24xbf16>, vector<8x24xf32> -> vector<8x24xf32>
    %381 = arith.addf %373, %380 : vector<8x24xf32>
    %382 = vector.extract_strided_slice %353 {offsets = [4, 0], sizes = [4, 32], strides = [1, 1]} : vector<8x32xf32> to vector<4x32xf32>
    %383 = vector.extract_strided_slice %353 {offsets = [0, 0], sizes = [4, 32], strides = [1, 1]} : vector<8x32xf32> to vector<4x32xf32>
    %384 = tpu.concatenate %382, %383 in 0 : vector<4x32xf32>, vector<4x32xf32> -> vector<8x32xf32>
    %385 = arith.truncf %384 : vector<8x32xf32> to vector<8x32xbf16>
    %c4 = arith.constant 4 : index
    %c0_167 = arith.constant 0 : index
    %c0_168 = arith.constant 0 : index
    %386 = vector.load %arg19[%c4, %c0_167, %c0_168] : memref<5x32x24xbf16, #tpu.memory_space<vmem>>, vector<1x32x24xbf16>
    %387 = vector.shape_cast %386 : vector<1x32x24xbf16> to vector<32x24xbf16>
    %cst_169 = arith.constant dense<0.000000e+00> : vector<8x24xf32>
    %388 = tpu.matmul %385, %387, %cst_169 {dimension_numbers = #tpu.dot_dimension_numbers<[1], [0], [0], [1], [0, 0, 1, 1], [], []>} : vector<8x32xbf16>, vector<32x24xbf16>, vector<8x24xf32> -> vector<8x24xf32>
    %389 = arith.addf %381, %388 : vector<8x24xf32>
    %cst_170 = arith.constant 0.000000e+00 : f32
    %390 = vector.broadcast %cst_170 : f32 to vector<8x24xf32>
    %391 = arith.maximumf %389, %390 : vector<8x24xf32>
    %c0_171 = arith.constant 0 : index
    %c0_172 = arith.constant 0 : index
    %392 = vector.load %arg20[%c0_171, %c0_172] : memref<8x24xf32, #tpu.memory_space<vmem>>, vector<8x24xf32>
    %393 = arith.mulf %391, %392 : vector<8x24xf32>
    %cst_173 = arith.constant dense<0xFF800000> : vector<24xf32>
    %394 = vector.multi_reduction <maximumf>, %393, %cst_173 [0] : vector<8x24xf32> to vector<24xf32>
    %395 = vector.shape_cast %394 : vector<24xf32> to vector<1x24xf32>
    %396 = arith.truncf %395 : vector<1x24xf32> to vector<1x24xbf16>
    %c0_174 = arith.constant 0 : index
    %c0_175 = arith.constant 0 : index
    %397 = vector.load %arg21[%c0_174, %c0_175] : memref<24x3xbf16, #tpu.memory_space<vmem>>, vector<24x3xbf16>
    %cst_176 = arith.constant dense<0.000000e+00> : vector<1x3xf32>
    %398 = tpu.matmul %396, %397, %cst_176 {dimension_numbers = #tpu.dot_dimension_numbers<[1], [0], [0], [1], [0, 0, 1, 1], [], []>} : vector<1x24xbf16>, vector<24x3xbf16>, vector<1x3xf32> -> vector<1x3xf32>
    %c0_177 = arith.constant 0 : index
    %c0_178 = arith.constant 0 : index
    %399 = vector.load %arg22[%c0_177, %c0_178] : memref<1x3xf32, #tpu.memory_space<vmem>>, vector<1x3xf32>
    %400 = arith.addf %398, %399 : vector<1x3xf32>
    %c0_179 = arith.constant 0 : index
    %c0_180 = arith.constant 0 : index
    %c0_181 = arith.constant 0 : index
    %401 = vector.load %arg23[%c0_179, %c0_180, %c0_181] : memref<1x1x3xf32, #tpu.memory_space<vmem>>, vector<1x1x3xf32>
    %402 = vector.shape_cast %401 : vector<1x1x3xf32> to vector<1x3xf32>
    %403 = vector.shape_cast %400 : vector<1x3xf32> to vector<1x1x3xf32>
    tpu.vector_store %arg23[%c0_179, %c0_180, %c0_181], %403 {strides = array<i32>} : memref<1x1x3xf32, #tpu.memory_space<vmem>>, vector<1x1x3xf32>,
    return
  }
  func.func @transform_0(%arg0: i32) -> (i32, i32, i32) {
    %c0_i32 = arith.constant 0 : i32
    %c0_i32_0 = arith.constant 0 : i32
    %c0_i32_1 = arith.constant 0 : i32
    return %arg0, %c0_i32, %c0_i32_0 : i32, i32, i32
  }
  func.func @transform_1(%arg0: i32) -> (i32, i32, i32) {
    %c0_i32 = arith.constant 0 : i32
    %c0_i32_0 = arith.constant 0 : i32
    %c0_i32_1 = arith.constant 0 : i32
    return %arg0, %c0_i32, %c0_i32_0 : i32, i32, i32
  }
  func.func @transform_2(%arg0: i32) -> (i32, i32) {
    %c0_i32 = arith.constant 0 : i32
    %c0_i32_0 = arith.constant 0 : i32
    %c0_i32_1 = arith.constant 0 : i32
    return %c0_i32, %c0_i32_0 : i32, i32
  }
  func.func @transform_3(%arg0: i32) -> (i32, i32) {
    %c0_i32 = arith.constant 0 : i32
    %c0_i32_0 = arith.constant 0 : i32
    %c0_i32_1 = arith.constant 0 : i32
    return %c0_i32, %c0_i32_0 : i32, i32
  }
  func.func @transform_4(%arg0: i32) -> (i32, i32, i32) {
    %c0_i32 = arith.constant 0 : i32
    %c0_i32_0 = arith.constant 0 : i32
    %c0_i32_1 = arith.constant 0 : i32
    %c0_i32_2 = arith.constant 0 : i32
    return %c0_i32, %c0_i32_0, %c0_i32_1 : i32, i32, i32
  }
  func.func @transform_5(%arg0: i32) -> (i32, i32, i32) {
    %c0_i32 = arith.constant 0 : i32
    %c0_i32_0 = arith.constant 0 : i32
    %c0_i32_1 = arith.constant 0 : i32
    %c0_i32_2 = arith.constant 0 : i32
    return %c0_i32, %c0_i32_0, %c0_i32_1 : i32, i32, i32
  }
  func.func @transform_6(%arg0: i32) -> (i32, i32, i32) {
    %c0_i32 = arith.constant 0 : i32
    %c0_i32_0 = arith.constant 0 : i32
    %c0_i32_1 = arith.constant 0 : i32
    %c0_i32_2 = arith.constant 0 : i32
    return %c0_i32, %c0_i32_0, %c0_i32_1 : i32, i32, i32
  }
  func.func @transform_7(%arg0: i32) -> (i32, i32, i32) {
    %c0_i32 = arith.constant 0 : i32
    %c0_i32_0 = arith.constant 0 : i32
    %c0_i32_1 = arith.constant 0 : i32
    %c0_i32_2 = arith.constant 0 : i32
    return %c0_i32, %c0_i32_0, %c0_i32_1 : i32, i32, i32
  }
  func.func @transform_8(%arg0: i32) -> (i32, i32, i32) {
    %c0_i32 = arith.constant 0 : i32
    %c0_i32_0 = arith.constant 0 : i32
    %c0_i32_1 = arith.constant 0 : i32
    %c0_i32_2 = arith.constant 0 : i32
    return %c0_i32, %c0_i32_0, %c0_i32_1 : i32, i32, i32
  }
  func.func @transform_9(%arg0: i32) -> (i32, i32, i32) {
    %c0_i32 = arith.constant 0 : i32
    %c0_i32_0 = arith.constant 0 : i32
    %c0_i32_1 = arith.constant 0 : i32
    %c0_i32_2 = arith.constant 0 : i32
    return %c0_i32, %c0_i32_0, %c0_i32_1 : i32, i32, i32
  }
  func.func @transform_10(%arg0: i32) -> (i32, i32, i32) {
    %c0_i32 = arith.constant 0 : i32
    %c0_i32_0 = arith.constant 0 : i32
    %c0_i32_1 = arith.constant 0 : i32
    %c0_i32_2 = arith.constant 0 : i32
    return %c0_i32, %c0_i32_0, %c0_i32_1 : i32, i32, i32
  }
  func.func @transform_11(%arg0: i32) -> (i32, i32, i32) {
    %c0_i32 = arith.constant 0 : i32
    %c0_i32_0 = arith.constant 0 : i32
    %c0_i32_1 = arith.constant 0 : i32
    %c0_i32_2 = arith.constant 0 : i32
    return %c0_i32, %c0_i32_0, %c0_i32_1 : i32, i32, i32
  }
  func.func @transform_12(%arg0: i32) -> (i32, i32, i32) {
    %c0_i32 = arith.constant 0 : i32
    %c0_i32_0 = arith.constant 0 : i32
    %c0_i32_1 = arith.constant 0 : i32
    %c0_i32_2 = arith.constant 0 : i32
    return %c0_i32, %c0_i32_0, %c0_i32_1 : i32, i32, i32
  }
  func.func @transform_13(%arg0: i32) -> (i32, i32, i32) {
    %c0_i32 = arith.constant 0 : i32
    %c0_i32_0 = arith.constant 0 : i32
    %c0_i32_1 = arith.constant 0 : i32
    %c0_i32_2 = arith.constant 0 : i32
    return %c0_i32, %c0_i32_0, %c0_i32_1 : i32, i32, i32
  }
  func.func @transform_14(%arg0: i32) -> (i32, i32, i32) {
    %c0_i32 = arith.constant 0 : i32
    %c0_i32_0 = arith.constant 0 : i32
    %c0_i32_1 = arith.constant 0 : i32
    %c0_i32_2 = arith.constant 0 : i32
    return %c0_i32, %c0_i32_0, %c0_i32_1 : i32, i32, i32
  }
  func.func @transform_15(%arg0: i32) -> (i32, i32, i32) {
    %c0_i32 = arith.constant 0 : i32
    %c0_i32_0 = arith.constant 0 : i32
    %c0_i32_1 = arith.constant 0 : i32
    %c0_i32_2 = arith.constant 0 : i32
    return %c0_i32, %c0_i32_0, %c0_i32_1 : i32, i32, i32
  }
  func.func @transform_16(%arg0: i32) -> (i32, i32) {
    %c0_i32 = arith.constant 0 : i32
    %c0_i32_0 = arith.constant 0 : i32
    %c0_i32_1 = arith.constant 0 : i32
    return %c0_i32, %c0_i32_0 : i32, i32
  }
  func.func @transform_17(%arg0: i32) -> (i32, i32) {
    %c0_i32 = arith.constant 0 : i32
    %c0_i32_0 = arith.constant 0 : i32
    %c0_i32_1 = arith.constant 0 : i32
    return %c0_i32, %c0_i32_0 : i32, i32
  }
  func.func @transform_18(%arg0: i32) -> (i32, i32, i32) {
    %c0_i32 = arith.constant 0 : i32
    %c0_i32_0 = arith.constant 0 : i32
    %c0_i32_1 = arith.constant 0 : i32
    %c0_i32_2 = arith.constant 0 : i32
    return %c0_i32, %c0_i32_0, %c0_i32_1 : i32, i32, i32
  }
  func.func @transform_19(%arg0: i32) -> (i32, i32) {
    %c0_i32 = arith.constant 0 : i32
    %c0_i32_0 = arith.constant 0 : i32
    %c0_i32_1 = arith.constant 0 : i32
    return %c0_i32, %c0_i32_0 : i32, i32
  }
  func.func @transform_20(%arg0: i32) -> (i32, i32) {
    %c0_i32 = arith.constant 0 : i32
    %c0_i32_0 = arith.constant 0 : i32
    %c0_i32_1 = arith.constant 0 : i32
    return %c0_i32, %c0_i32_0 : i32, i32
  }
  func.func @transform_21(%arg0: i32) -> (i32, i32) {
    %c0_i32 = arith.constant 0 : i32
    %c0_i32_0 = arith.constant 0 : i32
    %c0_i32_1 = arith.constant 0 : i32
    return %c0_i32, %c0_i32_0 : i32, i32
  }
  func.func @transform_22(%arg0: i32) -> (i32, i32, i32) {
    %c0_i32 = arith.constant 0 : i32
    %c0_i32_0 = arith.constant 0 : i32
    %c0_i32_1 = arith.constant 0 : i32
    return %arg0, %c0_i32, %c0_i32_0 : i32, i32, i32
  }
}

</mosaic_0001>

<bundles_post_ra>
// kernel: forward.1
= control target key start
LH: loop header
LB: loop body
LE: loop exit
PB: predicated region body
PF: predicated region fallthrough
CT: control target
= control target key end

     0   :  { %s3418_s0 = inlined_call_operand.vmem [shape: f32[2,8,32], index: 0, kind: input, shape index: {}]   ;;  %s3419_s1 = inlined_call_operand.vmem [shape: f32[2,1,8], index: 1, kind: input, shape index: {}]   ;;  %s3420_s2 = inlined_call_operand.vmem [shape: f32[1,32], index: 2, kind: input, shape index: {}]   ;;  %s3421_s3 = inlined_call_operand.vmem [shape: f32[1,32], index: 3, kind: input, shape index: {}]   ;;  %s3422_s4 = inlined_call_operand.vmem [shape: f32[2,1,32], index: 4, kind: input, shape index: {}]   ;;  %s3423_s5 = inlined_call_operand.vmem [shape: f32[2,1,32], index: 5, kind: input, shape index: {}]   ;;  %s3424_s6 = inlined_call_operand.vmem [shape: bf16[2,32,96], index: 6, kind: input, shape index: {}]   ;;  %s3425_s7 = inlined_call_operand.vmem [shape: f32[2,1,96], index: 7, kind: input, shape index: {}]   ;;  %s3426_s8 = inlined_call_operand.vmem [shape: bf16[2,32,32], index: 8, kind: input, shape index: {}]   ;;  %s3427_s9 = inlined_call_operand.vmem [shape: f32[2,1,32], index: 9, kind: input, shape index: {}]   ;;  %s3428_s10 = inlined_call_operand.vmem [shape: f32[2,1,32], index: 10, kind: input, shape index: {}]   ;;  %s3429_s11 = inlined_call_operand.vmem [shape: f32[2,1,32], index: 11, kind: input, shape index: {}]   ;;  %s3430_s12 = inlined_call_operand.vmem [shape: bf16[2,32,64], index: 12, kind: input, shape index: {}]   ;;  %s3431_s13 = inlined_call_operand.vmem [shape: f32[2,1,64], index: 13, kind: input, shape index: {}]   ;;  %s3432_s14 = inlined_call_operand.vmem [shape: bf16[2,64,32], index: 14, kind: input, shape index: {}]   ;;  %s3433_s15 = inlined_call_operand.vmem [shape: f32[2,1,32], index: 15, kind: input, shape index: {}]   ;;  %s3434_s16 = inlined_call_operand.vmem [shape: f32[1,32], index: 16, kind: input, shape index: {}]   ;;  %s3435_s17 = inlined_call_operand.vmem [shape: f32[1,32], index: 17, kind: input, shape index: {}]   ;;  %s3436_s18 = inlined_call_operand.vmem [shape: bf16[5,32,24], index: 18, kind: input, shape index: {}]   ;;  %s3437_s19 = inlined_call_operand.vmem [shape: f32[8,24], index: 19, kind: input, shape index: {}]   ;;  %s3438_s20 = inlined_call_operand.vmem [shape: bf16[24,3], index: 20, kind: input, shape index: {}]   ;;  %s3439_s21 = inlined_call_operand.vmem [shape: f32[1,3], index: 21, kind: input, shape index: {}]   ;;  %s3440_s22 = inlined_call_operand.vmem [shape: f32[2,1,3], index: 22, kind: output, shape index: {}]  }
   0x1   :  { %3446 = sst [smem:[#allocation2_spill]] %s3418_s0 }
   0x2   :  { %3447 = sst [smem:[#allocation3_spill]] %s3419_s1 }
   0x3   :  { %3448 = sst [smem:[#allocation4_spill]] %s3420_s2 }
   0x4   :  { %3449 = sst [smem:[#allocation5_spill]] %s3421_s3  ;;  %s3052_s3 = smov 0  }
   0x5   :  { %3450 = sst [smem:[#allocation6_spill]] %s3422_s4 }
   0x6   :  { %3451 = sst [smem:[#allocation7_spill]] %s3423_s5 }
   0x7   :  { %3452 = sst [smem:[#allocation8_spill]] %s3424_s6 }
   0x8 LB: > { %s2474_s28 = sadd.s32 4294967295, %s2928_s3   ;;  %p2478_p0 = scmp.ge.s32.totalorder %s2928_s3, 1  ;;  %s2928_s3 = sphi %s3052_s3, %s32_s3  }
   0x9   : > { %p619_p1 = scmp.lt.s32.totalorder %s2928_s3, 3 }
   0xb   : > { %p620_p2 = pnand %p2478_p0, %p619_p1 }
   0xc   : > { %p681_p3 = scmp.lt.s32.totalorder (!%p620_p2), %s2474_s28, 1  ;;  %s3453_s0 = sld [smem:[#allocation2_spill]] (!%p620_p2) }
   0xd   : > { %623 = sbr.rel (%p620_p2) target bundleno = 5627 (0x15fb), region = 108  ;;  %s3454_s24 = sld [smem:[#allocation4_spill]] (!%p620_p2) }
   0xe   : > { %s3455_s26 = sld [smem:[#allocation5_spill]] (!%p620_p2)  ;;  %s2932_s2 = smov (!%p620_p2), 80  }
   0xf   : > { %s3457_s1 = sld [smem:[#allocation6_spill]] (!%p620_p2)  ;;  %s2933_s27 = smov (!%p620_p2), 96  }
  0x10   : > { %s3458_s6 = sld [smem:[#allocation7_spill]] (!%p620_p2)  ;;  %s2934_s30 = smov (!%p620_p2), 112  }
  0x11   : > { %s3444_s25 = smov (!%p620_p2), 48  }
  0x12   : > { %s3463_s28 = smov (!%p681_p3, %s2474_s28), 1  ;;  %vm702_vm0 = vcmask 261120   ;;  %v2930_v23 = vmov 0.0   ;;  %vm2931_vm1 = vmmov 0   ;;  %v2485_v35 = vld [vmem:[%s3425_s7] ss:$0 sm:$0xff] }
  0x13   : > { %s2479_s29 = sshll.u32 %s3463_s28, 3  ;;  %v2481_v11 = vld [vmem:[%s3454_s24] ss:$0 sm:$0xff]  ;;  %2667 = vmatprep.subr.bf16.mxu0 %v2930_v23  ;;  %2671 = vmatprep.mubr.msk.bf16.mxu0 %vm2931_vm1, %v2930_v23  ;;  %vm835_vm2 = vcmask 130048   ;;  %vm884_vm3 = vcmask 64512   ;;  %s3445_s24 = smov 64  }
  0x14   : > { %s684_s23 = scalar_lea.vmem %s3453_s0, %s2479_s29  ;;  %v2482_v13 = vld [vmem:[%s3455_s26] ss:$0 sm:$0xff]  ;;  %s3456_s29 = sld [smem:[#allocation8_spill]]  ;;  %2675 = vmatprep.subr.bf16.mxu1 %v2930_v23  ;;  %2677 = vmatprep.mubr.msk.bf16.mxu1 %vm2931_vm1, %v2930_v23  ;;  %vm902_vm4 = vcmask 1043456   ;;  %vm1305_vm5 = vcmask 523264   ;;  %vm2348_vm6 = vcmask 195584  }
  0x15   : > { %v699_v0 = vld [vmem:[%s684_s23] sm:$0xff]  ;;  %s3459_s23 = sld [smem:[#allocation3_spill]]  ;;  %vm2416_vm7 = vcmask 16384  }
  0x16   : > { %v703_v1 = vsel %vm702_vm0, %v699_v0, 0.0  ;;  %v2483_v29 = vld [vmem:[%s3457_s1] ss:$0 sm:$0xff] }
  0x17   : > { %704 = vadd.xlane.f32.xlu0 %v703_v1  ;;  %v2484_v31 = vld [vmem:[%s3458_s6] ss:$0 sm:$0xff] }
  0x1a   : > { %v2858_v22 = vld [vmem:[%s3456_s29 + $0x8] sm:$0xff]   ;;  %v2859_v24 = vld [vmem:[%s3456_s29] sm:$0xff]  }
  0x1b   : > { %2668 = vmatpush3.bf16.msra.mxu0 %v2858_v22  ;;  %s687_s5 = scalar_lea.vmem %s3459_s23, %s3463_s28  ;;  %v2861_v22 = vld [vmem:[%s3426_s8 + $0x8] sm:$0xff]  }
  0x1c   : > { %2669 = vmatprep.subr.bf16.mxu0 %v2930_v23  ;;  %v3129_v48 = vld [vmem:[%s687_s5] ss:$0 sm:$0xff] }
  0x1f   : > { %2670 = vmatpush3.bf16.msra.mxu0 %v2859_v24 }
  0x20   : > { %2681 = vmatprep.subr.bf16.mxu0 %v2930_v23 }
  0xa0   : > { %v705_v2 = vpop.xlane.xlu0 %704 }
  0xa1   : > { %v707_v3 = vmul.f32 0.03125, %v705_v2 }
  0xa3   : > { %v708_v4 = vsub.f32 %v699_v0, %v707_v3 }
  0xa5   : > { %v709_v5 = vmul.f32 %v708_v4, %v708_v4 }
  0xa7   : > { %v710_v6 = vsel %vm702_vm0, %v709_v5, 0.0 }
  0xa8   : > { %711 = vadd.xlane.f32.xlu0 %v710_v6 }
 0x131   : > { %v712_v7 = vpop.xlane.xlu0 %711 }
 0x132   : > { %v713_v8 = vmul.f32 0.03125, %v712_v7 }
 0x134   : > { %v714_v9 = vadd.f32 1e-05, %v713_v8 }
 0x136   : > { %2890 = vrsqrt.f32 %v714_v9 }
 0x143   : > { %v2891_v10 = vpop.eup %2890 }
 0x144   : > { %v716_v12 = vmul.f32 %v2891_v10, %v708_v4 }
 0x146   : > { %v723_v14 = vmul.f32 %v2481_v11, %v716_v12 }
 0x148   : > { %v3074_v15 = vadd.f32 %v2482_v13, %v723_v14 }
 0x14a   : > { %v733_v16 = vsel %vm702_vm0, %v3074_v15, 0.0 }
 0x14b   : > { %734 = vadd.xlane.f32.xlu1 %v733_v16 }
 0x1d4   : > { %v735_v17 = vpop.xlane.xlu1 %734 }
 0x1d5   : > { %v736_v18 = vmul.f32 0.03125, %v735_v17 }
 0x1d7   : > { %v737_v19 = vsub.f32 %v3074_v15, %v736_v18 }
 0x1d9   : > { %v738_v20 = vmul.f32 %v737_v19, %v737_v19 }
 0x1db   : > { %v739_v21 = vsel %vm702_vm0, %v738_v20, 0.0 }
 0x1dc   : > { %740 = vadd.xlane.f32.xlu1 %v739_v21  ;;  %v2860_v21 = vld [vmem:[%s3426_s8] sm:$0xff]  }
 0x265   : > { %v741_v25 = vpop.xlane.xlu1 %740 }
 0x266   : > { %v742_v26 = vmul.f32 0.03125, %v741_v25 }
 0x268   : > { %v743_v27 = vadd.f32 1e-05, %v742_v26 }
 0x26a   : > { %2892 = vrsqrt.f32 %v743_v27 }
 0x277   : > { %v2893_v28 = vpop.eup %2892 }
 0x278   : > { %v745_v30 = vmul.f32 %v2893_v28, %v737_v19 }
 0x27a   : > { %v752_v32 = vmul.f32 %v2483_v29, %v745_v30 }
 0x27c   : > { %v759_v33 = vadd.f32 %v2484_v31, %v752_v32 }
 0x27e   : > { %v760_v34 = vpack.c.bf16 %v759_v33, %v759_v33 }
 0x280   : > { %2672 = vmatmul.mubr.msk.bf16.vlgmr.msra.gmra.mxu0 %vm702_vm0, %v760_v34 }
 0x281   : > { %2683 = vmatprep.mubr.msk.bf16.mxu0 %vm2931_vm1, %v2930_v23 }
 0x340   : > { %v821_v36 = vpop.f32.mrf.mxu0 }
 0x341   : > { %v822_v37 = vadd.f32 %v2485_v35, %v821_v36 }
 0x342   : > { %v2673_v38 = vpop.f32.mrf.mxu0 }
 0x343   : > { %v3106_v39 = vpack.c.bf16 %v822_v37, %v822_v37 }
 0x344   : > { %v824_v40 = vpop.f32.mrf.mxu0 }
 0x345   : > { %949 = vrot.lane.b32.xlu1 %v3106_v39, %s2932_s2  ;;  %833 = vrot.lane.b32.xlu0 %v3106_v39, %s2933_s27  ;;  %v2497_v40 = vld [vmem:[%s3427_s9] ss:$0 sm:$0xff] }
 0x346   : > { %v2674_v41 = vpop.f32.mrf.mxu0 }
 0x349   : > { %947 = vrot.lane.b32.xlu1 %v3106_v39, %s2934_s30 }
 0x3b7   : > { %v834_v42 = vpop.permute.xlu0 %833  ;;  %v950_v44 = vpop.permute.xlu1 %949 }
 0x3b8   : > { %v840_v43 = vsel %vm835_vm2, %v834_v42, 0  ;;  %v955_v45 = vsel %vm835_vm2, %v950_v44, 0 }
 0x3b9   : > { %2676 = vmatpush3.bf16.xpose.msra.mxu1 %v840_v43 }
 0x3ba   : > { %2687 = vmatprep.subr.bf16.mxu1 %v2930_v23 }
 0x3bb   : > { %v948_v46 = vpop.permute.xlu1 %947 }
 0x3c0   : > { %2678 = vmatmul.mubr.msk.bf16.vlgmr.msra.gmra.mxu1 %vm835_vm2, %v3106_v39 }
 0x3c1   : > { %2688 = vmatpush3.bf16.xpose.msra.mxu1 %v955_v45  ;;  %2689 = vmatprep.mubr.msk.bf16.mxu1 %vm2931_vm1, %v2930_v23 }
 0x3c2   : > { %2699 = vmatprep.subr.bf16.mxu1 %v2930_v23 }
 0x3c8   : > { %2690 = vmatmul.mubr.msk.bf16.vlgmr.msra.gmra.mxu1 %vm835_vm2, %v948_v46 }
 0x3c9   : > { %2701 = vmatprep.mubr.msk.bf16.mxu1 %vm2931_vm1, %v2930_v23  ;;  %2700 = vmatpush3.bf16.msra.mxu1 %v2861_v22  ;;  %v2509_v22 = vld [vmem:[%s3433_s15] ss:$0 sm:$0xff] }
 0x3ca   : > { %2711 = vmatprep.subr.bf16.mxu1 %v2930_v23 }
 0x480   : > { %v876_v47 = vpop.f32.mrf.mxu1 }
 0x481   : > { %v882_v49 = vmul.f32 0.25, %v876_v47 }
 0x482   : > { %v2679_v50 = vpop.f32.mrf.mxu1 }
 0x483   : > { %v883_v51 = vadd.f32 %v3129_v48, %v882_v49 }
 0x484   : > { %v879_v52 = vpop.f32.mrf.mxu1 }
 0x485   : > { %v885_v53 = vsel %vm884_vm3, %v883_v51, -inf }
 0x486   : > { %886 = vmax.xlane.f32.xlu1 %v885_v53  ;;  %v2680_v54 = vpop.f32.mrf.mxu1  ;;  %v2863_v53 = vld [vmem:[%s3430_s12] sm:$0xff]  }
 0x488   : > { %v991_v55 = vpop.f32.mrf.mxu1 }
 0x489   : > { %v997_v56 = vmul.f32 0.25, %v991_v55 }
 0x48a   : > { %v2691_v57 = vpop.f32.mrf.mxu1 }
 0x48b   : > { %v998_v58 = vadd.f32 %v3129_v48, %v997_v56 }
 0x48c   : > { %v994_v59 = vpop.f32.mrf.mxu1 }
 0x48d   : > { %v999_v60 = vsel %vm884_vm3, %v998_v58, -inf }
 0x48e   : > { %1000 = vmax.xlane.f32.xlu0 %v999_v60  ;;  %v2692_v61 = vpop.f32.mrf.mxu1  ;;  %v2499_v60 = vld [vmem:[%s3429_s11] ss:$0 sm:$0xff] }
 0x497   : > { %897 = vrot.lane.b32.xlu1 %v3106_v39, %s3445_s24 }
 0x50f   : > { %v887_v62 = vpop.xlane.xlu1 %886 }
 0x510   : > { %v888_v63 = vsub.f32 %v883_v51, %v887_v62 }
 0x512   : > { %v889_v0 = vmul.f32 1.442695, %v888_v63 }
 0x513   : > { %v898_v1 = vpop.permute.xlu1 %897 }
 0x514   : > { %2894 = vpow2.f32 %v889_v0  ;;  %v904_v2 = vsel %vm902_vm4, %v898_v1, 0  ;;  %v2864_v0 = vld [vmem:[%s3432_s14 + $0x18] sm:$0xff]   ;;  %v2865_v1 = vld [vmem:[%s3432_s14 + $0x10] sm:$0xff]  }
 0x515   : > { %2682 = vmatpush3.bf16.msra.mxu0 %v904_v2  ;;  %v2866_v2 = vld [vmem:[%s3432_s14 + $0x8] sm:$0xff]  }
 0x516   : > { %2693 = vmatprep.subr.bf16.mxu0 %v2930_v23 }
 0x517   : > { %v1001_v3 = vpop.xlane.xlu0 %1000 }
 0x518   : > { %v1002_v4 = vsub.f32 %v998_v58, %v1001_v3  ;;  %v2498_v58 = vld [vmem:[%s3428_s10] ss:$0 sm:$0xff] }
 0x519   : > { %v2867_v3 = vld [vmem:[%s3432_s14] sm:$0xff]  }
 0x51a   : > { %v1003_v5 = vmul.f32 1.442695, %v1002_v4  ;;  %v2500_v4 = vld [vmem:[%s3431_s13] ss:$0 sm:$0xff] }
 0x51c   : > { %2896 = vpow2.f32 %v1003_v5 }
 0x521   : > { %v2895_v6 = vpop.eup %2894 }
 0x522   : > { %v891_v7 = vsel %vm884_vm3, %v2895_v6, 0.0 }
 0x523   : > { %892 = vadd.xlane.f32.xlu0 %v891_v7 }
 0x529   : > { %v2897_v8 = vpop.eup %2896 }
 0x52a   : > { %v1005_v9 = vsel %vm884_vm3, %v2897_v8, 0.0 }
 0x52b   : > { %1006 = vadd.xlane.f32.xlu0 %v1005_v9 }
 0x541   : > { %1011 = vrot.lane.b32.xlu0 %v3106_v39, %s3444_s25 }
 0x5ac   : > { %v893_v10 = vpop.xlane.xlu0 %892 }
 0x5ad   : > { %2898 = vrcp.f32 %v893_v10 }
 0x5b4   : > { %v1007_v11 = vpop.xlane.xlu0 %1006 }
 0x5b5   : > { %2900 = vrcp.f32 %v1007_v11 }
 0x5b8   : > { %v1012_v14 = vpop.permute.xlu0 %1011 }
 0x5b9   : > { %v1017_v17 = vsel %vm902_vm4, %v1012_v14, 0 }
 0x5ba   : > { %v2899_v12 = vpop.eup %2898 }
 0x5bb   : > { %v895_v13 = vmul.f32 %v2899_v12, %v2895_v6 }
 0x5bd   : > { %v896_v16 = vpack.c.bf16 %v895_v13, %v895_v13 }
 0x5bf   : > { %2684 = vmatmul.mubr.msk.bf16.vlgmr.msra.gmra.mxu0 %vm884_vm3, %v896_v16 }
 0x5c0   : > { %2694 = vmatpush3.bf16.msra.mxu0 %v1017_v17  ;;  %2695 = vmatprep.mubr.msk.bf16.mxu0 %vm2931_vm1, %v2930_v23 }
 0x5c1   : > { %2705 = vmatprep.subr.bf16.mxu0 %v2930_v23 }
 0x5c2   : > { %v2901_v18 = vpop.eup %2900 }
 0x5c3   : > { %v1009_v19 = vmul.f32 %v2901_v18, %v2897_v8 }
 0x5c5   : > { %v1010_v20 = vpack.c.bf16 %v1009_v19, %v1009_v19 }
 0x5c7   : > { %2696 = vmatmul.mubr.msk.bf16.vlgmr.msra.gmra.mxu0 %vm884_vm3, %v1010_v20 }
 0x5c8   : > { %2707 = vmatprep.mubr.msk.bf16.mxu0 %vm2931_vm1, %v2930_v23  ;;  %2706 = vmatpush3.bf16.msra.mxu0 %v2860_v21 }
 0x5c9   : > { %2719 = vmatprep.subr.bf16.mxu0 %v2930_v23 }
 0x67f   : > { %v940_v24 = vpop.f32.mrf.mxu0 }
 0x680   : > { %v946_v25 = vpack.c.bf16 %v940_v24, %v940_v24 }
 0x681   : > { %v2685_v26 = vpop.f32.mrf.mxu0 }
 0x682   : > { %2708 = vmatmul.mubr.msk.bf16.vlgmr.msra.gmra.mxu0 %vm835_vm2, %v946_v25 }
 0x683   : > { %v943_v27 = vpop.f32.mrf.mxu0  ;;  %2727 = vmatprep.mubr.msk.bf16.mxu0 %vm2931_vm1, %v2930_v23  ;;  %2720 = vmatpush3.bf16.msra.mxu0 %v2864_v0 }
 0x684   : > { %2721 = vmatprep.subr.bf16.mxu0 %v2930_v23 }
 0x685   : > { %v2686_v28 = vpop.f32.mrf.mxu0 }
 0x687   : > { %v1053_v29 = vpop.f32.mrf.mxu0  ;;  %2722 = vmatpush3.bf16.msra.mxu0 %v2865_v1 }
 0x688   : > { %v1059_v30 = vpack.c.bf16 %v1053_v29, %v1053_v29  ;;  %2723 = vmatprep.subr.bf16.mxu0 %v2930_v23 }
 0x689   : > { %v2697_v31 = vpop.f32.mrf.mxu0 }
 0x68a   : > { %2702 = vmatmul.mubr.msk.bf16.vlgmr.msra.gmra.mxu1 %vm835_vm2, %v1059_v30 }
 0x68b   : > { %v1056_v32 = vpop.f32.mrf.mxu0  ;;  %2715 = vmatprep.mubr.msk.bf16.mxu1 %vm2931_vm1, %v2930_v23  ;;  %2724 = vmatpush3.bf16.msra.mxu0 %v2866_v2 }
 0x68c   : > { %2725 = vmatprep.subr.bf16.mxu0 %v2930_v23 }
 0x68d   : > { %v2698_v33 = vpop.f32.mrf.mxu0 }
 0x68f   : > { %2726 = vmatpush3.bf16.msra.mxu0 %v2867_v3 }
 0x690   : > { %2745 = vmatprep.subr.bf16.mxu0 %v2930_v23 }
 0x742   : > { %v1152_v34 = vpop.f32.mrf.mxu0 }
 0x744   : > { %v2709_v35 = vpop.f32.mrf.mxu0 }
 0x745   : > { %v2868_v35 = vld [vmem:[%s3456_s29 + $0x18] sm:$0xff]  }
 0x746   : > { %v1155_v36 = vpop.f32.mrf.mxu0 }
 0x747   : > { %v2869_v36 = vld [vmem:[%s3456_s29 + $0x10] sm:$0xff]  }
 0x748   : > { %v2710_v37 = vpop.f32.mrf.mxu0 }
 0x74a   : > { %v1103_v38 = vpop.f32.mrf.mxu1 }
 0x74b   : > { %v1153_v39 = vadd.f32 %v1152_v34, %v1103_v38 }
 0x74c   : > { %v2703_v41 = vpop.f32.mrf.mxu1 }
 0x74d   : > { %v1158_v42 = vadd.f32 %v1153_v39, %v3074_v15  ;;  %v2862_v15 = vld [vmem:[%s3430_s12 + $0x8] sm:$0xff]   ;;  %v2512_v41 = vld [vmem:[%s3457_s1 + $0x1] ss:$0 sm:$0xff] }
 0x74e   : > { %v1106_v43 = vpop.f32.mrf.mxu1  ;;  %2712 = vmatpush3.bf16.msra.mxu1 %v2862_v15 }
 0x74f   : > { %v3169_v44 = vadd.f32 %v2497_v40, %v1158_v42  ;;  %2713 = vmatprep.subr.bf16.mxu1 %v2930_v23  ;;  %v2513_v43 = vld [vmem:[%s3458_s6 + $0x1] ss:$0 sm:$0xff] }
 0x750   : > { %v2704_v45 = vpop.f32.mrf.mxu1 }
 0x751   : > { %v1169_v46 = vsel %vm702_vm0, %v3169_v44, 0.0 }
 0x752   : > { %1170 = vadd.xlane.f32.xlu1 %v1169_v46  ;;  %2714 = vmatpush3.bf16.msra.mxu1 %v2863_v53 }
 0x753   : > { %2731 = vmatprep.subr.bf16.mxu1 %v2930_v23 }
 0x7db   : > { %v1171_v47 = vpop.xlane.xlu1 %1170 }
 0x7dc   : > { %v1172_v49 = vmul.f32 0.03125, %v1171_v47  ;;  %v2519_v47 = vld [vmem:[%s3425_s7 + $0x1] ss:$0 sm:$0xff] }
 0x7de   : > { %v1173_v50 = vsub.f32 %v3169_v44, %v1172_v49 }
 0x7e0   : > { %v1174_v51 = vmul.f32 %v1173_v50, %v1173_v50 }
 0x7e2   : > { %v1175_v52 = vsel %vm702_vm0, %v1174_v51, 0.0 }
 0x7e3   : > { %1176 = vadd.xlane.f32.xlu0 %v1175_v52 }
 0x86c   : > { %v1177_v54 = vpop.xlane.xlu0 %1176 }
 0x86d   : > { %v1178_v55 = vmul.f32 0.03125, %v1177_v54 }
 0x86f   : > { %v1179_v56 = vadd.f32 1e-05, %v1178_v55 }
 0x871   : > { %2902 = vrsqrt.f32 %v1179_v56 }
 0x87e   : > { %v2903_v57 = vpop.eup %2902 }
 0x87f   : > { %v1181_v59 = vmul.f32 %v2903_v57, %v1173_v50 }
 0x881   : > { %v1188_v61 = vmul.f32 %v2498_v58, %v1181_v59 }
 0x883   : > { %v1195_v62 = vadd.f32 %v2499_v60, %v1188_v61 }
 0x885   : > { %v1196_v63 = vpack.c.bf16 %v1195_v62, %v1195_v62 }
 0x887   : > { %2716 = vmatmul.mubr.msk.bf16.vlgmr.msra.gmra.mxu1 %vm702_vm0, %v1196_v63 }
 0x888   : > { %2735 = vmatprep.mubr.msk.bf16.mxu1 %vm2931_vm1, %v2930_v23  ;;  %2732 = vmatpush3.bf16.msra.mxu1 %v2868_v35 }
 0x889   : > { %2733 = vmatprep.subr.bf16.mxu1 %v2930_v23 }
 0x88c   : > { %2734 = vmatpush3.bf16.msra.mxu1 %v2869_v36 }
 0x88d   : > { %2739 = vmatprep.subr.bf16.mxu1 %v2930_v23 }
 0x947   : > { %v1257_v5 = vpop.f32.mrf.mxu1 }
 0x948   : > { %v1258_v6 = vadd.f32 %v2500_v4, %v1257_v5 }
 0x949   : > { %v2717_v7 = vpop.f32.mrf.mxu1 }
 0x94a   : > { %v1263_v8 = vmul.f32 %v1258_v6, %v1258_v6 }
 0x94b   : > { %v1260_v9 = vpop.f32.mrf.mxu1 }
 0x94c   : > { %v1264_v10 = vmul.f32 %v1263_v8, %v1258_v6 }
 0x94d   : > { %v2718_v11 = vpop.f32.mrf.mxu1 }
 0x94e   : > { %v1265_v12 = vmul.f32 0.044715, %v1264_v10 }
 0x950   : > { %v1266_v13 = vadd.f32 %v1265_v12, %v1258_v6 }
 0x952   : > { %v1267_v14 = vmul.f32 0.7978846, %v1266_v13 }
 0x954   : > { %2904 = vtanh.f32 %v1267_v14 }
 0x961   : > { %v2905_v16 = vpop.eup %2904 }
 0x962   : > { %v1269_v17 = vadd.f32 1.0, %v2905_v16 }
 0x964   : > { %v1270_v18 = vmul.f32 0.5, %v1269_v17 }
 0x966   : > { %v1271_v19 = vmul.f32 %v1270_v18, %v1258_v6 }
 0x968   : > { %v1272_v20 = vpack.c.bf16 %v1271_v19, %v1271_v19 }
 0x96a   : > { %2728 = vmatmul.mubr.msk.bf16.vlgmr.msra.gmra.mxu0 %vm1305_vm5, %v1272_v20 }
 0x96b   : > { %2747 = vmatprep.mubr.msk.bf16.mxu0 %vm2931_vm1, %v2930_v23 }
 0xa2a   : > { %v1343_v21 = vpop.f32.mrf.mxu0 }
 0xa2b   : > { %v1349_v24 = vadd.f32 %v1343_v21, %v3169_v44 }
 0xa2c   : > { %v2729_v25 = vpop.f32.mrf.mxu0 }
 0xa2d   : > { %v3218_v26 = vadd.f32 %v2509_v22, %v1349_v24 }
 0xa2e   : > { %v1346_v27 = vpop.f32.mrf.mxu0 }
 0xa2f   : > { %v1362_v28 = vsel %vm702_vm0, %v3218_v26, 0.0 }
 0xa30   : > { %1363 = vadd.xlane.f32.xlu1 %v1362_v28  ;;  %v2730_v29 = vpop.f32.mrf.mxu0 }
 0xab9   : > { %v1364_v30 = vpop.xlane.xlu1 %1363 }
 0xaba   : > { %v1365_v31 = vmul.f32 0.03125, %v1364_v30 }
 0xabc   : > { %v1366_v32 = vsub.f32 %v3218_v26, %v1365_v31 }
 0xabe   : > { %v1367_v33 = vmul.f32 %v1366_v32, %v1366_v32 }
 0xac0   : > { %v1368_v34 = vsel %vm702_vm0, %v1367_v33, 0.0  ;;  %v2870_v33 = vld [vmem:[%s3426_s8 + $0x10] sm:$0xff]  }
 0xac1   : > { %1369 = vadd.xlane.f32.xlu0 %v1368_v34  ;;  %v2871_v34 = vld [vmem:[%s3426_s8 + $0x18] sm:$0xff]  }
 0xb4a   : > { %v1370_v37 = vpop.xlane.xlu0 %1369 }
 0xb4b   : > { %v1371_v38 = vmul.f32 0.03125, %v1370_v37 }
 0xb4d   : > { %v1372_v39 = vadd.f32 1e-05, %v1371_v38 }
 0xb4f   : > { %2906 = vrsqrt.f32 %v1372_v39 }
 0xb5c   : > { %v2907_v40 = vpop.eup %2906 }
 0xb5d   : > { %v1374_v42 = vmul.f32 %v2907_v40, %v1366_v32 }
 0xb5f   : > { %v1381_v44 = vmul.f32 %v2512_v41, %v1374_v42 }
 0xb61   : > { %v1388_v45 = vadd.f32 %v2513_v43, %v1381_v44 }
 0xb63   : > { %v1389_v46 = vpack.c.bf16 %v1388_v45, %v1388_v45 }
 0xb65   : > { %2736 = vmatmul.mubr.msk.bf16.vlgmr.msra.gmra.mxu1 %vm702_vm0, %v1389_v46 }
 0xb66   : > { %2741 = vmatprep.mubr.msk.bf16.mxu1 %vm2931_vm1, %v2930_v23 }
 0xc25   : > { %v1452_v49 = vpop.f32.mrf.mxu1 }
 0xc26   : > { %v1453_v50 = vadd.f32 %v2519_v47, %v1452_v49 }
 0xc27   : > { %v2737_v51 = vpop.f32.mrf.mxu1 }
 0xc28   : > { %v1463_v52 = vpack.c.bf16 %v1453_v50, %v1453_v50 }
 0xc29   : > { %v1455_v15 = vpop.f32.mrf.mxu1 }
 0xc2a   : > { %1578 = vrot.lane.b32.xlu0 %v1463_v52, %s2932_s2  ;;  %1465 = vrot.lane.b32.xlu1 %v1463_v52, %s2933_s27  ;;  %s3460_s2 = smov 64   ;;  %s3461_s27 = smov 48  }
 0xc2b   : > { %v2738_v53 = vpop.f32.mrf.mxu1 }
 0xc2e   : > { %1576 = vrot.lane.b32.xlu1 %v1463_v52, %s2934_s30  ;;  %s690_s30 = scalar_lea.vmem %s3440_s22, %s3463_s28 }
 0xc9c   : > { %v1466_v54 = vpop.permute.xlu1 %1465  ;;  %v1579_v56 = vpop.permute.xlu0 %1578 }
 0xc9d   : > { %v1471_v55 = vsel %vm835_vm2, %v1466_v54, 0  ;;  %v1584_v57 = vsel %vm835_vm2, %v1579_v56, 0 }
 0xc9e   : > { %2740 = vmatpush3.bf16.xpose.msra.mxu1 %v1471_v55 }
 0xc9f   : > { %2751 = vmatprep.subr.bf16.mxu1 %v2930_v23 }
 0xca0   : > { %v1577_v58 = vpop.permute.xlu1 %1576 }
 0xca5   : > { %2742 = vmatmul.mubr.msk.bf16.vlgmr.msra.gmra.mxu1 %vm835_vm2, %v1463_v52 }
 0xca6   : > { %2752 = vmatpush3.bf16.xpose.msra.mxu1 %v1584_v57  ;;  %2753 = vmatprep.mubr.msk.bf16.mxu1 %vm2931_vm1, %v2930_v23 }
 0xca7   : > { %2763 = vmatprep.subr.bf16.mxu1 %v2930_v23 }
 0xcad   : > { %2754 = vmatmul.mubr.msk.bf16.vlgmr.msra.gmra.mxu1 %vm835_vm2, %v1577_v58 }
 0xcae   : > { %2765 = vmatprep.mubr.msk.bf16.mxu1 %vm2931_vm1, %v2930_v23  ;;  %2764 = vmatpush3.bf16.msra.mxu1 %v2871_v34 }
 0xcaf   : > { %2775 = vmatprep.subr.bf16.mxu1 %v2930_v23 }
 0xd65   : > { %v1507_v59 = vpop.f32.mrf.mxu1 }
 0xd66   : > { %v1513_v60 = vmul.f32 0.25, %v1507_v59 }
 0xd67   : > { %v2743_v61 = vpop.f32.mrf.mxu1 }
 0xd68   : > { %v1514_v62 = vadd.f32 %v3129_v48, %v1513_v60 }
 0xd69   : > { %v1510_v63 = vpop.f32.mrf.mxu1 }
 0xd6a   : > { %v1515_v0 = vsel %vm884_vm3, %v1514_v62, -inf  ;;  %v2872_v63 = vld [vmem:[%s3430_s12 + $0x18] sm:$0xff]  }
 0xd6b   : > { %1516 = vmax.xlane.f32.xlu1 %v1515_v0  ;;  %v2744_v1 = vpop.f32.mrf.mxu1 }
 0xd6d   : > { %v1620_v2 = vpop.f32.mrf.mxu1 }
 0xd6e   : > { %v1626_v3 = vmul.f32 0.25, %v1620_v2 }
 0xd6f   : > { %v2755_v4 = vpop.f32.mrf.mxu1 }
 0xd70   : > { %v1627_v5 = vadd.f32 %v3129_v48, %v1626_v3  ;;  %v2539_v4 = vld [vmem:[%s3428_s10 + $0x1] ss:$0 sm:$0xff] }
 0xd71   : > { %v1623_v6 = vpop.f32.mrf.mxu1 }
 0xd72   : > { %v1628_v7 = vsel %vm884_vm3, %v1627_v5, -inf  ;;  %v2540_v6 = vld [vmem:[%s3429_s11 + $0x1] ss:$0 sm:$0xff] }
 0xd73   : > { %1629 = vmax.xlane.f32.xlu0 %v1628_v7  ;;  %v2756_v8 = vpop.f32.mrf.mxu1 }
 0xdf4   : > { %v1517_v9 = vpop.xlane.xlu1 %1516 }
 0xdf5   : > { %v1518_v10 = vsub.f32 %v1514_v62, %v1517_v9 }
 0xdf7   : > { %v1519_v11 = vmul.f32 1.442695, %v1518_v10  ;;  %v2874_v10 = vld [vmem:[%s3432_s14 + $0x38] sm:$0xff]  }
 0xdf9   : > { %2908 = vpow2.f32 %v1519_v11  ;;  %v2875_v11 = vld [vmem:[%s3432_s14 + $0x30] sm:$0xff]  }
 0xdfc   : > { %v1630_v12 = vpop.xlane.xlu0 %1629 }
 0xdfd   : > { %v1631_v13 = vsub.f32 %v1627_v5, %v1630_v12  ;;  %v2876_v12 = vld [vmem:[%s3432_s14 + $0x28] sm:$0xff]  }
 0xdff   : > { %v1632_v14 = vmul.f32 1.442695, %v1631_v13  ;;  %v2877_v13 = vld [vmem:[%s3432_s14 + $0x20] sm:$0xff]  }
 0xe01   : > { %2910 = vpow2.f32 %v1632_v14  ;;  %v2546_v14 = vld [vmem:[%s3431_s13 + $0x1] ss:$0 sm:$0xff] }
 0xe06   : > { %v2909_v16 = vpop.eup %2908 }
 0xe07   : > { %v1521_v17 = vsel %vm884_vm3, %v2909_v16, 0.0 }
 0xe08   : > { %1522 = vadd.xlane.f32.xlu0 %v1521_v17 }
 0xe0e   : > { %v2911_v18 = vpop.eup %2910 }
 0xe0f   : > { %v1634_v48 = vsel %vm884_vm3, %v2911_v18, 0.0 }
 0xe10   : > { %1635 = vadd.xlane.f32.xlu1 %v1634_v48 }
 0xe1e   : > { %1527 = vrot.lane.b32.xlu0 %v1463_v52, %s3460_s2 }
 0xe21   : > { %1640 = vrot.lane.b32.xlu1 %v1463_v52, %s3461_s27  ;;  %v2536_v52 = vld [vmem:[%s3427_s9 + $0x1] ss:$0 sm:$0xff] }
 0xe91   : > { %v1523_v19 = vpop.xlane.xlu0 %1522 }
 0xe92   : > { %2912 = vrcp.f32 %v1523_v19 }
 0xe95   : > { %v1528_v20 = vpop.permute.xlu0 %1527 }
 0xe96   : > { %v1533_v21 = vsel %vm902_vm4, %v1528_v20, 0 }
 0xe97   : > { %2746 = vmatpush3.bf16.msra.mxu0 %v1533_v21 }
 0xe98   : > { %2757 = vmatprep.subr.bf16.mxu0 %v2930_v23 }
 0xe99   : > { %v1636_v22 = vpop.xlane.xlu1 %1635 }
 0xe9a   : > { %2914 = vrcp.f32 %v1636_v22 }
 0xe9d   : > { %v1641_v27 = vpop.permute.xlu1 %1640 }
 0xe9e   : > { %v1646_v29 = vsel %vm902_vm4, %v1641_v27, 0 }
 0xe9f   : > { %v2913_v24 = vpop.eup %2912 }
 0xea0   : > { %v1525_v25 = vmul.f32 %v2913_v24, %v2909_v16 }
 0xea2   : > { %v1526_v28 = vpack.c.bf16 %v1525_v25, %v1525_v25 }
 0xea4   : > { %2748 = vmatmul.mubr.msk.bf16.vlgmr.msra.gmra.mxu0 %vm884_vm3, %v1526_v28 }
 0xea5   : > { %2758 = vmatpush3.bf16.msra.mxu0 %v1646_v29  ;;  %2759 = vmatprep.mubr.msk.bf16.mxu0 %vm2931_vm1, %v2930_v23 }
 0xea6   : > { %2769 = vmatprep.subr.bf16.mxu0 %v2930_v23 }
 0xea7   : > { %v2915_v30 = vpop.eup %2914 }
 0xea8   : > { %v1638_v31 = vmul.f32 %v2915_v30, %v2911_v18 }
 0xeaa   : > { %v1639_v32 = vpack.c.bf16 %v1638_v31, %v1638_v31 }
 0xeac   : > { %2760 = vmatmul.mubr.msk.bf16.vlgmr.msra.gmra.mxu0 %vm884_vm3, %v1639_v32 }
 0xead   : > { %2771 = vmatprep.mubr.msk.bf16.mxu0 %vm2931_vm1, %v2930_v23  ;;  %2770 = vmatpush3.bf16.msra.mxu0 %v2870_v33  ;;  %v2564_v33 = vld [vmem:[%s3433_s15 + $0x1] ss:$0 sm:$0xff] }
 0xeae   : > { %2783 = vmatprep.subr.bf16.mxu0 %v2930_v23 }
 0xf64   : > { %v1569_v35 = vpop.f32.mrf.mxu0 }
 0xf65   : > { %v1575_v36 = vpack.c.bf16 %v1569_v35, %v1569_v35 }
 0xf66   : > { %v2749_v37 = vpop.f32.mrf.mxu0 }
 0xf67   : > { %2772 = vmatmul.mubr.msk.bf16.vlgmr.msra.gmra.mxu0 %vm835_vm2, %v1575_v36 }
 0xf68   : > { %v1572_v38 = vpop.f32.mrf.mxu0  ;;  %2791 = vmatprep.mubr.msk.bf16.mxu0 %vm2931_vm1, %v2930_v23  ;;  %2784 = vmatpush3.bf16.msra.mxu0 %v2874_v10  ;;  %v2889_v10 = vld [vmem:[%s3438_s20] sm:$0xff]  }
 0xf69   : > { %2785 = vmatprep.subr.bf16.mxu0 %v2930_v23 }
 0xf6a   : > { %v2750_v39 = vpop.f32.mrf.mxu0 }
 0xf6c   : > { %v1682_v40 = vpop.f32.mrf.mxu0  ;;  %2786 = vmatpush3.bf16.msra.mxu0 %v2875_v11 }
 0xf6d   : > { %v1688_v41 = vpack.c.bf16 %v1682_v40, %v1682_v40  ;;  %2787 = vmatprep.subr.bf16.mxu0 %v2930_v23 }
 0xf6e   : > { %v2761_v42 = vpop.f32.mrf.mxu0 }
 0xf6f   : > { %2766 = vmatmul.mubr.msk.bf16.vlgmr.msra.gmra.mxu1 %vm835_vm2, %v1688_v41 }
 0xf70   : > { %v1685_v43 = vpop.f32.mrf.mxu0  ;;  %2779 = vmatprep.mubr.msk.bf16.mxu1 %vm2931_vm1, %v2930_v23  ;;  %2776 = vmatpush3.bf16.msra.mxu1 %v2872_v63 }
 0xf71   : > { %2777 = vmatprep.subr.bf16.mxu1 %v2930_v23  ;;  %2788 = vmatpush3.bf16.msra.mxu0 %v2876_v12 }
 0xf72   : > { %v2762_v44 = vpop.f32.mrf.mxu0  ;;  %2789 = vmatprep.subr.bf16.mxu0 %v2930_v23 }
 0xf75   : > { %2790 = vmatpush3.bf16.msra.mxu0 %v2877_v13 }
 0xf76   : > { %2811 = vmatprep.subr.bf16.mxu0 %v2930_v23 }
0x1027   : > { %v1781_v45 = vpop.f32.mrf.mxu0 }
0x1029   : > { %v2773_v46 = vpop.f32.mrf.mxu0 }
0x102a   : > { %v2879_v46 = vld [vmem:[%s3436_s18 + $0x28] sm:$0xff]  }
0x102b   : > { %v1784_v47 = vpop.f32.mrf.mxu0 }
0x102c   : > { %v2880_v47 = vld [vmem:[%s3436_s18 + $0x10] sm:$0xff]  }
0x102d   : > { %v2774_v49 = vpop.f32.mrf.mxu0 }
0x102e   : > { %v2881_v49 = vld [vmem:[%s3436_s18 + $0x20] sm:$0xff]  }
0x102f   : > { %v1732_v50 = vpop.f32.mrf.mxu1 }
0x1030   : > { %v1782_v51 = vadd.f32 %v1781_v45, %v1732_v50  ;;  %v2878_v45 = vld [vmem:[%s3436_s18 + $0x18] sm:$0xff]  }
0x1031   : > { %v2767_v15 = vpop.f32.mrf.mxu1 }
0x1032   : > { %v1787_v53 = vadd.f32 %v1782_v51, %v3218_v26  ;;  %v2873_v26 = vld [vmem:[%s3430_s12 + $0x10] sm:$0xff]  }
0x1033   : > { %v1735_v54 = vpop.f32.mrf.mxu1  ;;  %2778 = vmatpush3.bf16.msra.mxu1 %v2873_v26  ;;  %v2884_v26 = vld [vmem:[%s3436_s18] sm:$0xff]  }
0x1034   : > { %v1796_v55 = vadd.f32 %v2536_v52, %v1787_v53  ;;  %2795 = vmatprep.subr.bf16.mxu1 %v2930_v23  ;;  %v2565_v53 = vld [vmem:[%s3434_s16] ss:$0 sm:$0xff] }
0x1035   : > { %v2768_v56 = vpop.f32.mrf.mxu1 }
0x1036   : > { %v1801_v57 = vsel %vm702_vm0, %v1796_v55, 0.0 }
0x1037   : > { %1802 = vadd.xlane.f32.xlu1 %v1801_v57 }
0x10c0   : > { %v1803_v58 = vpop.xlane.xlu1 %1802 }
0x10c1   : > { %v1804_v59 = vmul.f32 0.03125, %v1803_v58 }
0x10c3   : > { %v1805_v60 = vsub.f32 %v1796_v55, %v1804_v59 }
0x10c5   : > { %v1806_v61 = vmul.f32 %v1805_v60, %v1805_v60 }
0x10c7   : > { %v1807_v62 = vsel %vm702_vm0, %v1806_v61, 0.0  ;;  %v2883_v61 = vld [vmem:[%s3436_s18 + $0x48] sm:$0xff]  }
0x10c8   : > { %1808 = vadd.xlane.f32.xlu0 %v1807_v62 }
0x1151   : > { %v1809_v0 = vpop.xlane.xlu0 %1808 }
0x1152   : > { %v1810_v1 = vmul.f32 0.03125, %v1809_v0  ;;  %v2885_v0 = vld [vmem:[%s3436_s18 + $0x40] sm:$0xff]  }
0x1154   : > { %v1811_v2 = vadd.f32 1e-05, %v1810_v1 }
0x1156   : > { %2916 = vrsqrt.f32 %v1811_v2  ;;  %v2886_v2 = vld [vmem:[%s3436_s18 + $0x38] sm:$0xff]  }
0x1163   : > { %v2917_v3 = vpop.eup %2916 }
0x1164   : > { %v1813_v5 = vmul.f32 %v2917_v3, %v1805_v60  ;;  %v2882_v60 = vld [vmem:[%s3436_s18 + $0x8] sm:$0xff]  }
0x1166   : > { %v1820_v7 = vmul.f32 %v2539_v4, %v1813_v5  ;;  %v2887_v5 = vld [vmem:[%s3436_s18 + $0x30] sm:$0xff]  }
0x1168   : > { %v1827_v8 = vadd.f32 %v2540_v6, %v1820_v7 }
0x116a   : > { %v1828_v9 = vpack.c.bf16 %v1827_v8, %v1827_v8  ;;  %v2888_v8 = vld [vmem:[%s3438_s20 + $0x8] ss:$0 sps:$4 sm:$0xff]  }
0x116c   : > { %2780 = vmatmul.mubr.msk.bf16.vlgmr.msra.gmra.mxu1 %vm702_vm0, %v1828_v9  ;;  %v2374_v9 = vsel %vm902_vm4, %v2888_v8, 0 }
0x116d   : > { %2799 = vmatprep.mubr.msk.bf16.mxu1 %vm2931_vm1, %v2930_v23  ;;  %2796 = vmatpush3.bf16.msra.mxu1 %v2878_v45 }
0x116e   : > { %2797 = vmatprep.subr.bf16.mxu1 %v2930_v23 }
0x1171   : > { %2798 = vmatpush3.bf16.msra.mxu1 %v2880_v47  ;;  %v2360_v47 = vld [vmem:[%s3439_s21] sm:$0x1] }
0x1172   : > { %2803 = vmatprep.subr.bf16.mxu1 %v2930_v23 }
0x122c   : > { %v1891_v16 = vpop.f32.mrf.mxu1 }
0x122d   : > { %v1892_v17 = vadd.f32 %v2546_v14, %v1891_v16 }
0x122e   : > { %v2781_v18 = vpop.f32.mrf.mxu1 }
0x122f   : > { %v1897_v48 = vmul.f32 %v1892_v17, %v1892_v17 }
0x1230   : > { %v1894_v19 = vpop.f32.mrf.mxu1 }
0x1231   : > { %v1898_v20 = vmul.f32 %v1897_v48, %v1892_v17 }
0x1232   : > { %v2782_v21 = vpop.f32.mrf.mxu1 }
0x1233   : > { %v1899_v22 = vmul.f32 0.044715, %v1898_v20 }
0x1235   : > { %v1900_v24 = vadd.f32 %v1899_v22, %v1892_v17 }
0x1237   : > { %v1901_v25 = vmul.f32 0.7978846, %v1900_v24 }
0x1239   : > { %2918 = vtanh.f32 %v1901_v25 }
0x1246   : > { %v2919_v27 = vpop.eup %2918 }
0x1247   : > { %v1903_v28 = vadd.f32 1.0, %v2919_v27 }
0x1249   : > { %v1904_v29 = vmul.f32 0.5, %v1903_v28 }
0x124b   : > { %v1905_v30 = vmul.f32 %v1904_v29, %v1892_v17 }
0x124d   : > { %v1906_v31 = vpack.c.bf16 %v1905_v30, %v1905_v30 }
0x124f   : > { %2792 = vmatmul.mubr.msk.bf16.vlgmr.msra.gmra.mxu0 %vm1305_vm5, %v1906_v31 }
0x1250   : > { %2815 = vmatprep.mubr.msk.bf16.mxu0 %vm2931_vm1, %v2930_v23  ;;  %2812 = vmatpush3.bf16.msra.mxu0 %v2879_v46 }
0x1251   : > { %2813 = vmatprep.subr.bf16.mxu0 %v2930_v23 }
0x1254   : > { %2814 = vmatpush3.bf16.msra.mxu0 %v2881_v49 }
0x1255   : > { %2827 = vmatprep.subr.bf16.mxu0 %v2930_v23 }
0x130f   : > { %v1977_v32 = vpop.f32.mrf.mxu0 }
0x1310   : > { %v1983_v34 = vadd.f32 %v1977_v32, %v1796_v55  ;;  %v2566_v55 = vld [vmem:[%s3435_s17] ss:$0 sm:$0xff] }
0x1311   : > { %v2793_v35 = vpop.f32.mrf.mxu0 }
0x1312   : > { %v1992_v36 = vadd.f32 %v2564_v33, %v1983_v34  ;;  %v2346_v34 = vld [vmem:[%s3437_s19] sm:$0xff] }
0x1313   : > { %v1980_v37 = vpop.f32.mrf.mxu0 }
0x1314   : > { %v1995_v38 = vsel %vm702_vm0, %v1992_v36, 0.0 }
0x1315   : > { %1996 = vadd.xlane.f32.xlu0 %v1995_v38  ;;  %v2794_v39 = vpop.f32.mrf.mxu0 }
0x139e   : > { %v1997_v40 = vpop.xlane.xlu0 %1996 }
0x139f   : > { %v1998_v41 = vmul.f32 0.03125, %v1997_v40 }
0x13a1   : > { %v1999_v42 = vsub.f32 %v1992_v36, %v1998_v41 }
0x13a3   : > { %v2000_v43 = vmul.f32 %v1999_v42, %v1999_v42 }
0x13a5   : > { %v2001_v44 = vsel %vm702_vm0, %v2000_v43, 0.0 }
0x13a6   : > { %2002 = vadd.xlane.f32.xlu1 %v2001_v44 }
0x142f   : > { %v2003_v50 = vpop.xlane.xlu1 %2002 }
0x1430   : > { %v2004_v51 = vmul.f32 0.03125, %v2003_v50 }
0x1432   : > { %v2005_v52 = vadd.f32 1e-05, %v2004_v51 }
0x1434   : > { %2920 = vrsqrt.f32 %v2005_v52 }
0x1441   : > { %v2921_v15 = vpop.eup %2920 }
0x1442   : > { %v2007_v54 = vmul.f32 %v2921_v15, %v1999_v42 }
0x1444   : > { %v2014_v56 = vmul.f32 %v2565_v53, %v2007_v54 }
0x1446   : > { %v2021_v57 = vadd.f32 %v2566_v55, %v2014_v56 }
0x1448   : > { %v2028_v58 = vrot.slane %v2021_v57, 1  ;;  %v2148_v59 = vrot.slane %v2021_v57, 2  ;;  %v2280_v1 = vrot.slane %v2021_v57, 4  ;;  %v2022_v3 = vpack.c.bf16 %v2021_v57, %v2021_v57 }
0x1449   : > { %v2214_v6 = vrot.slane %v2021_v57, 3 }
0x144a   : > { %v2032_v62 = vpack.c.bf16 %v2028_v58, %v2028_v58  ;;  %v2152_v63 = vpack.c.bf16 %v2148_v59, %v2148_v59  ;;  %v2283_v4 = vpack.c.bf16 %v2280_v1, %v2280_v1 }
0x144b   : > { %v2218_v7 = vpack.c.bf16 %v2214_v6, %v2214_v6 }
0x144c   : > { %2800 = vmatmul.mubr.msk.bf16.vlgmr.msra.gmra.mxu1 %vm702_vm0, %v2032_v62  ;;  %2816 = vmatmul.mubr.msk.bf16.vlgmr.msra.gmra.mxu0 %vm702_vm0, %v2152_v63 }
0x144d   : > { %2804 = vmatpush3.bf16.msra.mxu1 %v2882_v60  ;;  %2828 = vmatpush3.bf16.msra.mxu0 %v2883_v61 }
0x144e   : > { %2805 = vmatprep.subr.bf16.mxu1 %v2930_v23  ;;  %2829 = vmatprep.subr.bf16.mxu0 %v2930_v23 }
0x144f   : > { %2807 = vmatprep.mubr.msk.bf16.mxu1 %vm2931_vm1, %v2930_v23  ;;  %2831 = vmatprep.mubr.msk.bf16.mxu0 %vm2931_vm1, %v2930_v23 }
0x1451   : > { %2806 = vmatpush3.bf16.msra.mxu1 %v2884_v26  ;;  %2830 = vmatpush3.bf16.msra.mxu0 %v2885_v0 }
0x1452   : > { %2819 = vmatprep.subr.bf16.mxu1 %v2930_v23 }
0x1454   : > { %2808 = vmatmul.mubr.msk.bf16.vlgmr.msra.gmra.mxu1 %vm702_vm0, %v2022_v3  ;;  %2832 = vmatmul.mubr.msk.bf16.vlgmr.msra.gmra.mxu0 %vm702_vm0, %v2283_v4 }
0x1455   : > { %2820 = vmatpush3.bf16.msra.mxu1 %v2886_v2  ;;  %2823 = vmatprep.mubr.msk.bf16.mxu1 %vm2931_vm1, %v2930_v23 }
0x1456   : > { %2821 = vmatprep.subr.bf16.mxu1 %v2930_v23 }
0x1459   : > { %2822 = vmatpush3.bf16.msra.mxu1 %v2887_v5 }
0x145a   : > { %2835 = vmatprep.subr.bf16.mxu1 %v2930_v23 }
0x145c   : > { %2824 = vmatmul.mubr.msk.bf16.vlgmr.msra.gmra.mxu1 %vm702_vm0, %v2218_v7 }
0x145d   : > { %2839 = vmatprep.mubr.msk.bf16.mxu1 %vm2931_vm1, %v2930_v23  ;;  %2836 = vmatpush3.bf16.msra.mxu1 %v2374_v9 }
0x145e   : > { %2837 = vmatprep.subr.bf16.mxu1 %v2930_v23 }
0x1461   : > { %2838 = vmatpush3.bf16.msra.mxu1 %v2889_v10 }
0x150c   : > { %v2087_v11 = vpop.f32.mrf.mxu1  ;;  %v2207_v12 = vpop.f32.mrf.mxu0 }
0x150e   : > { %v2801_v13 = vpop.f32.mrf.mxu1  ;;  %v2817_v14 = vpop.f32.mrf.mxu0 }
0x1510   : > { %v2090_v16 = vpop.f32.mrf.mxu1  ;;  %v2210_v17 = vpop.f32.mrf.mxu0 }
0x1512   : > { %v2802_v18 = vpop.f32.mrf.mxu1  ;;  %v2818_v48 = vpop.f32.mrf.mxu0 }
0x1514   : > { %v2142_v19 = vpop.f32.mrf.mxu1  ;;  %v2338_v20 = vpop.f32.mrf.mxu0 }
0x1515   : > { %v2143_v24 = vadd.f32 %v2142_v19, %v2087_v11 }
0x1516   : > { %v2809_v21 = vpop.f32.mrf.mxu1  ;;  %v2833_v22 = vpop.f32.mrf.mxu0 }
0x1517   : > { %v2213_v30 = vadd.f32 %v2207_v12, %v2143_v24 }
0x1518   : > { %v2145_v25 = vpop.f32.mrf.mxu1  ;;  %v2341_v27 = vpop.f32.mrf.mxu0 }
0x151a   : > { %v2810_v28 = vpop.f32.mrf.mxu1  ;;  %v2834_v29 = vpop.f32.mrf.mxu0 }
0x151c   : > { %v2273_v23 = vpop.f32.mrf.mxu1 }
0x151d   : > { %v2279_v31 = vadd.f32 %v2273_v23, %v2213_v30 }
0x151e   : > { %v2825_v32 = vpop.f32.mrf.mxu1 }
0x151f   : > { %v2344_v33 = vadd.f32 %v2338_v20, %v2279_v31 }
0x1520   : > { %v2276_v35 = vpop.f32.mrf.mxu1 }
0x1521   : > { %v2345_v36 = vmax.f32 %v2344_v33, 0.0 }
0x1522   : > { %v2826_v37 = vpop.f32.mrf.mxu1 }
0x1523   : > { %v2347_v38 = vmul.f32 %v2346_v34, %v2345_v36 }
0x1525   : > { %v2349_v39 = vsel %vm2348_vm6, %v2347_v38, -inf }
0x1526   : > { %v2350_v40 = vrot.slane %v2349_v39, 4 }
0x1528   : > { %v2351_v41 = vmax.f32 %v2349_v39, %v2350_v40 }
0x152a   : > { %v2352_v42 = vrot.slane %v2351_v41, 2 }
0x152c   : > { %v2353_v43 = vmax.f32 %v2351_v41, %v2352_v42 }
0x152e   : > { %v2354_v44 = vrot.slane %v2353_v43, 1 }
0x1530   : > { %v2355_v45 = vmax.f32 %v2353_v43, %v2354_v44 }
0x1532   : > { %v2356_v46 = vpack.c.bf16 %v2355_v45, %v2355_v45 }
0x1534   : > { %2840 = vmatmul.mubr.msk.bf16.vlgmr.msra.gmra.mxu1 %vm2348_vm6, %v2356_v46 }
0x15f4   : > { %v2410_v49 = vpop.f32.mrf.mxu1 }
0x15f5   : > { %v2411_v50 = vadd.f32 %v2410_v49, %v2360_v47 }
0x15f6   : > { %v2841_v51 = vpop.f32.mrf.mxu1 }
0x15f7   : > { %2417 = vst.msk [vmem:[%s690_s30] sm:$0x1] %vm2416_vm7, %v2411_v50 }
0x15f8   : > { %v2413_v52 = vpop.f32.mrf.mxu1 }
0x15fa   : > { %v2842_v15 = vpop.f32.mrf.mxu1 }
0x15fb PF: > { %s32_s3 = sadd.s32 1, %s2928_s3  }
0x15fc   : > { %p29_p4 = scmp.ge.s32.totalorder %s32_s3, 4  }
0x15fe   :  { %31 = sbr.rel (!%p29_p4) target bundleno = 8 (0x8), region = 157 }

// kernel: forward.1
= control target key start
LH: loop header
LB: loop body
LE: loop exit
PB: predicated region body
PF: predicated region fallthrough
CT: control target
= control target key end

     0   :  { %s3418_s0 = inlined_call_operand.vmem [shape: f32[2,8,32], index: 0, kind: input, shape index: {}]   ;;  %s3419_s1 = inlined_call_operand.vmem [shape: f32[2,1,8], index: 1, kind: input, shape index: {}]   ;;  %s3420_s2 = inlined_call_operand.vmem [shape: f32[1,32], index: 2, kind: input, shape index: {}]   ;;  %s3421_s3 = inlined_call_operand.vmem [shape: f32[1,32], index: 3, kind: input, shape index: {}]   ;;  %s3422_s4 = inlined_call_operand.vmem [shape: f32[2,1,32], index: 4, kind: input, shape index: {}]   ;;  %s3423_s5 = inlined_call_operand.vmem [shape: f32[2,1,32], index: 5, kind: input, shape index: {}]   ;;  %s3424_s6 = inlined_call_operand.vmem [shape: bf16[2,32,96], index: 6, kind: input, shape index: {}]   ;;  %s3425_s7 = inlined_call_operand.vmem [shape: f32[2,1,96], index: 7, kind: input, shape index: {}]   ;;  %s3426_s8 = inlined_call_operand.vmem [shape: bf16[2,32,32], index: 8, kind: input, shape index: {}]   ;;  %s3427_s9 = inlined_call_operand.vmem [shape: f32[2,1,32], index: 9, kind: input, shape index: {}]   ;;  %s3428_s10 = inlined_call_operand.vmem [shape: f32[2,1,32], index: 10, kind: input, shape index: {}]   ;;  %s3429_s11 = inlined_call_operand.vmem [shape: f32[2,1,32], index: 11, kind: input, shape index: {}]   ;;  %s3430_s12 = inlined_call_operand.vmem [shape: bf16[2,32,64], index: 12, kind: input, shape index: {}]   ;;  %s3431_s13 = inlined_call_operand.vmem [shape: f32[2,1,64], index: 13, kind: input, shape index: {}]   ;;  %s3432_s14 = inlined_call_operand.vmem [shape: bf16[2,64,32], index: 14, kind: input, shape index: {}]   ;;  %s3433_s15 = inlined_call_operand.vmem [shape: f32[2,1,32], index: 15, kind: input, shape index: {}]   ;;  %s3434_s16 = inlined_call_operand.vmem [shape: f32[1,32], index: 16, kind: input, shape index: {}]   ;;  %s3435_s17 = inlined_call_operand.vmem [shape: f32[1,32], index: 17, kind: input, shape index: {}]   ;;  %s3436_s18 = inlined_call_operand.vmem [shape: bf16[5,32,24], index: 18, kind: input, shape index: {}]   ;;  %s3437_s19 = inlined_call_operand.vmem [shape: f32[8,24], index: 19, kind: input, shape index: {}]   ;;  %s3438_s20 = inlined_call_operand.vmem [shape: bf16[24,3], index: 20, kind: input, shape index: {}]   ;;  %s3439_s21 = inlined_call_operand.vmem [shape: f32[1,3], index: 21, kind: input, shape index: {}]   ;;  %s3440_s22 = inlined_call_operand.vmem [shape: f32[2,1,3], index: 22, kind: output, shape index: {}]  }
   0x1   :  { %3446 = sst [smem:[#allocation2_spill]] %s3418_s0 }
   0x2   :  { %3447 = sst [smem:[#allocation3_spill]] %s3419_s1 }
   0x3   :  { %3448 = sst [smem:[#allocation4_spill]] %s3420_s2 }
   0x4   :  { %3449 = sst [smem:[#allocation5_spill]] %s3421_s3  ;;  %s3052_s3 = smov 0  }
   0x5   :  { %3450 = sst [smem:[#allocation6_spill]] %s3422_s4 }
   0x6   :  { %3451 = sst [smem:[#allocation7_spill]] %s3423_s5 }
   0x7   :  { %3452 = sst [smem:[#allocation8_spill]] %s3424_s6 }
   0x8 LB: > { %s2474_s28 = sadd.s32 4294967295, %s2928_s3   ;;  %p2478_p0 = scmp.ge.s32.totalorder %s2928_s3, 1  ;;  %s2928_s3 = sphi %s3052_s3, %s32_s3  }
   0x9   : > { %p619_p1 = scmp.lt.s32.totalorder %s2928_s3, 3 }
   0xb   : > { %p620_p2 = pnand %p2478_p0, %p619_p1 }
   0xc   : > { %p681_p3 = scmp.lt.s32.totalorder (!%p620_p2), %s2474_s28, 1  ;;  %s3453_s0 = sld [smem:[#allocation2_spill]] (!%p620_p2) }
   0xd   : > { %623 = sbr.rel (%p620_p2) target bundleno = 5627 (0x15fb), region = 108  ;;  %s3454_s24 = sld [smem:[#allocation4_spill]] (!%p620_p2) }
   0xe   : > { %s3455_s26 = sld [smem:[#allocation5_spill]] (!%p620_p2)  ;;  %s2932_s2 = smov (!%p620_p2), 80  }
   0xf   : > { %s3457_s1 = sld [smem:[#allocation6_spill]] (!%p620_p2)  ;;  %s2933_s27 = smov (!%p620_p2), 96  }
  0x10   : > { %s3458_s6 = sld [smem:[#allocation7_spill]] (!%p620_p2)  ;;  %s2934_s30 = smov (!%p620_p2), 112  }
  0x11   : > { %s3444_s25 = smov (!%p620_p2), 48  }
  0x12   : > { %s3463_s28 = smov (!%p681_p3, %s2474_s28), 1  ;;  %vm702_vm0 = vcmask 261120   ;;  %v2930_v23 = vmov 0.0   ;;  %vm2931_vm1 = vmmov 0   ;;  %v2485_v35 = vld [vmem:[%s3425_s7] ss:$0 sm:$0xff] }
  0x13   : > { %s2479_s29 = sshll.u32 %s3463_s28, 3  ;;  %v2481_v11 = vld [vmem:[%s3454_s24] ss:$0 sm:$0xff]  ;;  %2667 = vmatprep.subr.bf16.mxu0 %v2930_v23  ;;  %2671 = vmatprep.mubr.msk.bf16.mxu0 %vm2931_vm1, %v2930_v23  ;;  %vm835_vm2 = vcmask 130048   ;;  %vm884_vm3 = vcmask 64512   ;;  %s3445_s24 = smov 64  }
  0x14   : > { %s684_s23 = scalar_lea.vmem %s3453_s0, %s2479_s29  ;;  %v2482_v13 = vld [vmem:[%s3455_s26] ss:$0 sm:$0xff]  ;;  %s3456_s29 = sld [smem:[#allocation8_spill]]  ;;  %2675 = vmatprep.subr.bf16.mxu1 %v2930_v23  ;;  %2677 = vmatprep.mubr.msk.bf16.mxu1 %vm2931_vm1, %v2930_v23  ;;  %vm902_vm4 = vcmask 1043456   ;;  %vm1305_vm5 = vcmask 523264   ;;  %vm2348_vm6 = vcmask 195584  }
  0x15   : > { %v699_v0 = vld [vmem:[%s684_s23] sm:$0xff]  ;;  %s3459_s23 = sld [smem:[#allocation3_spill]]  ;;  %vm2416_vm7 = vcmask 16384  }
  0x16   : > { %v703_v1 = vsel %vm702_vm0, %v699_v0, 0.0  ;;  %v2483_v29 = vld [vmem:[%s3457_s1] ss:$0 sm:$0xff] }
  0x17   : > { %704 = vadd.xlane.f32.xlu0 %v703_v1  ;;  %v2484_v31 = vld [vmem:[%s3458_s6] ss:$0 sm:$0xff] }
  0x1a   : > { %v2858_v22 = vld [vmem:[%s3456_s29 + $0x8] sm:$0xff]   ;;  %v2859_v24 = vld [vmem:[%s3456_s29] sm:$0xff]  }
  0x1b   : > { %2668 = vmatpush3.bf16.msra.mxu0 %v2858_v22  ;;  %s687_s5 = scalar_lea.vmem %s3459_s23, %s3463_s28  ;;  %v2861_v22 = vld [vmem:[%s3426_s8 + $0x8] sm:$0xff]  }
  0x1c   : > { %2669 = vmatprep.subr.bf16.mxu0 %v2930_v23  ;;  %v3129_v48 = vld [vmem:[%s687_s5] ss:$0 sm:$0xff] }
  0x1f   : > { %2670 = vmatpush3.bf16.msra.mxu0 %v2859_v24 }
  0x20   : > { %2681 = vmatprep.subr.bf16.mxu0 %v2930_v23 }
  0xa0   : > { %v705_v2 = vpop.xlane.xlu0 %704 }
  0xa1   : > { %v707_v3 = vmul.f32 0.03125, %v705_v2 }
  0xa3   : > { %v708_v4 = vsub.f32 %v699_v0, %v707_v3 }
  0xa5   : > { %v709_v5 = vmul.f32 %v708_v4, %v708_v4 }
  0xa7   : > { %v710_v6 = vsel %vm702_vm0, %v709_v5, 0.0 }
  0xa8   : > { %711 = vadd.xlane.f32.xlu0 %v710_v6 }
 0x131   : > { %v712_v7 = vpop.xlane.xlu0 %711 }
 0x132   : > { %v713_v8 = vmul.f32 0.03125, %v712_v7 }
 0x134   : > { %v714_v9 = vadd.f32 1e-05, %v713_v8 }
 0x136   : > { %2890 = vrsqrt.f32 %v714_v9 }
 0x143   : > { %v2891_v10 = vpop.eup %2890 }
 0x144   : > { %v716_v12 = vmul.f32 %v2891_v10, %v708_v4 }
 0x146   : > { %v723_v14 = vmul.f32 %v2481_v11, %v716_v12 }
 0x148   : > { %v3074_v15 = vadd.f32 %v2482_v13, %v723_v14 }
 0x14a   : > { %v733_v16 = vsel %vm702_vm0, %v3074_v15, 0.0 }
 0x14b   : > { %734 = vadd.xlane.f32.xlu1 %v733_v16 }
 0x1d4   : > { %v735_v17 = vpop.xlane.xlu1 %734 }
 0x1d5   : > { %v736_v18 = vmul.f32 0.03125, %v735_v17 }
 0x1d7   : > { %v737_v19 = vsub.f32 %v3074_v15, %v736_v18 }
 0x1d9   : > { %v738_v20 = vmul.f32 %v737_v19, %v737_v19 }
 0x1db   : > { %v739_v21 = vsel %vm702_vm0, %v738_v20, 0.0 }
 0x1dc   : > { %740 = vadd.xlane.f32.xlu1 %v739_v21  ;;  %v2860_v21 = vld [vmem:[%s3426_s8] sm:$0xff]  }
 0x265   : > { %v741_v25 = vpop.xlane.xlu1 %740 }
 0x266   : > { %v742_v26 = vmul.f32 0.03125, %v741_v25 }
 0x268   : > { %v743_v27 = vadd.f32 1e-05, %v742_v26 }
 0x26a   : > { %2892 = vrsqrt.f32 %v743_v27 }
 0x277   : > { %v2893_v28 = vpop.eup %2892 }
 0x278   : > { %v745_v30 = vmul.f32 %v2893_v28, %v737_v19 }
 0x27a   : > { %v752_v32 = vmul.f32 %v2483_v29, %v745_v30 }
 0x27c   : > { %v759_v33 = vadd.f32 %v2484_v31, %v752_v32 }
 0x27e   : > { %v760_v34 = vpack.c.bf16 %v759_v33, %v759_v33 }
 0x280   : > { %2672 = vmatmul.mubr.msk.bf16.vlgmr.msra.gmra.mxu0 %vm702_vm0, %v760_v34 }
 0x281   : > { %2683 = vmatprep.mubr.msk.bf16.mxu0 %vm2931_vm1, %v2930_v23 }
 0x340   : > { %v821_v36 = vpop.f32.mrf.mxu0 }
 0x341   : > { %v822_v37 = vadd.f32 %v2485_v35, %v821_v36 }
 0x342   : > { %v2673_v38 = vpop.f32.mrf.mxu0 }
 0x343   : > { %v3106_v39 = vpack.c.bf16 %v822_v37, %v822_v37 }
 0x344   : > { %v824_v40 = vpop.f32.mrf.mxu0 }
 0x345   : > { %949 = vrot.lane.b32.xlu1 %v3106_v39, %s2932_s2  ;;  %833 = vrot.lane.b32.xlu0 %v3106_v39, %s2933_s27  ;;  %v2497_v40 = vld [vmem:[%s3427_s9] ss:$0 sm:$0xff] }
 0x346   : > { %v2674_v41 = vpop.f32.mrf.mxu0 }
 0x349   : > { %947 = vrot.lane.b32.xlu1 %v3106_v39, %s2934_s30 }
 0x3b7   : > { %v834_v42 = vpop.permute.xlu0 %833  ;;  %v950_v44 = vpop.permute.xlu1 %949 }
 0x3b8   : > { %v840_v43 = vsel %vm835_vm2, %v834_v42, 0  ;;  %v955_v45 = vsel %vm835_vm2, %v950_v44, 0 }
 0x3b9   : > { %2676 = vmatpush3.bf16.xpose.msra.mxu1 %v840_v43 }
 0x3ba   : > { %2687 = vmatprep.subr.bf16.mxu1 %v2930_v23 }
 0x3bb   : > { %v948_v46 = vpop.permute.xlu1 %947 }
 0x3c0   : > { %2678 = vmatmul.mubr.msk.bf16.vlgmr.msra.gmra.mxu1 %vm835_vm2, %v3106_v39 }
 0x3c1   : > { %2688 = vmatpush3.bf16.xpose.msra.mxu1 %v955_v45  ;;  %2689 = vmatprep.mubr.msk.bf16.mxu1 %vm2931_vm1, %v2930_v23 }
 0x3c2   : > { %2699 = vmatprep.subr.bf16.mxu1 %v2930_v23 }
 0x3c8   : > { %2690 = vmatmul.mubr.msk.bf16.vlgmr.msra.gmra.mxu1 %vm835_vm2, %v948_v46 }
 0x3c9   : > { %2701 = vmatprep.mubr.msk.bf16.mxu1 %vm2931_vm1, %v2930_v23  ;;  %2700 = vmatpush3.bf16.msra.mxu1 %v2861_v22  ;;  %v2509_v22 = vld [vmem:[%s3433_s15] ss:$0 sm:$0xff] }
 0x3ca   : > { %2711 = vmatprep.subr.bf16.mxu1 %v2930_v23 }
 0x480   : > { %v876_v47 = vpop.f32.mrf.mxu1 }
 0x481   : > { %v882_v49 = vmul.f32 0.25, %v876_v47 }
 0x482   : > { %v2679_v50 = vpop.f32.mrf.mxu1 }
 0x483   : > { %v883_v51 = vadd.f32 %v3129_v48, %v882_v49 }
 0x484   : > { %v879_v52 = vpop.f32.mrf.mxu1 }
 0x485   : > { %v885_v53 = vsel %vm884_vm3, %v883_v51, -inf }
 0x486   : > { %886 = vmax.xlane.f32.xlu1 %v885_v53  ;;  %v2680_v54 = vpop.f32.mrf.mxu1  ;;  %v2863_v53 = vld [vmem:[%s3430_s12] sm:$0xff]  }
 0x488   : > { %v991_v55 = vpop.f32.mrf.mxu1 }
 0x489   : > { %v997_v56 = vmul.f32 0.25, %v991_v55 }
 0x48a   : > { %v2691_v57 = vpop.f32.mrf.mxu1 }
 0x48b   : > { %v998_v58 = vadd.f32 %v3129_v48, %v997_v56 }
 0x48c   : > { %v994_v59 = vpop.f32.mrf.mxu1 }
 0x48d   : > { %v999_v60 = vsel %vm884_vm3, %v998_v58, -inf }
 0x48e   : > { %1000 = vmax.xlane.f32.xlu0 %v999_v60  ;;  %v2692_v61 = vpop.f32.mrf.mxu1  ;;  %v2499_v60 = vld [vmem:[%s3429_s11] ss:$0 sm:$0xff] }
 0x497   : > { %897 = vrot.lane.b32.xlu1 %v3106_v39, %s3445_s24 }
 0x50f   : > { %v887_v62 = vpop.xlane.xlu1 %886 }
 0x510   : > { %v888_v63 = vsub.f32 %v883_v51, %v887_v62 }
 0x512   : > { %v889_v0 = vmul.f32 1.442695, %v888_v63 }
 0x513   : > { %v898_v1 = vpop.permute.xlu1 %897 }
 0x514   : > { %2894 = vpow2.f32 %v889_v0  ;;  %v904_v2 = vsel %vm902_vm4, %v898_v1, 0  ;;  %v2864_v0 = vld [vmem:[%s3432_s14 + $0x18] sm:$0xff]   ;;  %v2865_v1 = vld [vmem:[%s3432_s14 + $0x10] sm:$0xff]  }
 0x515   : > { %2682 = vmatpush3.bf16.msra.mxu0 %v904_v2  ;;  %v2866_v2 = vld [vmem:[%s3432_s14 + $0x8] sm:$0xff]  }
 0x516   : > { %2693 = vmatprep.subr.bf16.mxu0 %v2930_v23 }
 0x517   : > { %v1001_v3 = vpop.xlane.xlu0 %1000 }
 0x518   : > { %v1002_v4 = vsub.f32 %v998_v58, %v1001_v3  ;;  %v2498_v58 = vld [vmem:[%s3428_s10] ss:$0 sm:$0xff] }
 0x519   : > { %v2867_v3 = vld [vmem:[%s3432_s14] sm:$0xff]  }
 0x51a   : > { %v1003_v5 = vmul.f32 1.442695, %v1002_v4  ;;  %v2500_v4 = vld [vmem:[%s3431_s13] ss:$0 sm:$0xff] }
 0x51c   : > { %2896 = vpow2.f32 %v1003_v5 }
 0x521   : > { %v2895_v6 = vpop.eup %2894 }
 0x522   : > { %v891_v7 = vsel %vm884_vm3, %v2895_v6, 0.0 }
 0x523   : > { %892 = vadd.xlane.f32.xlu0 %v891_v7 }
 0x529   : > { %v2897_v8 = vpop.eup %2896 }
 0x52a   : > { %v1005_v9 = vsel %vm884_vm3, %v2897_v8, 0.0 }
 0x52b   : > { %1006 = vadd.xlane.f32.xlu0 %v1005_v9 }
 0x541   : > { %1011 = vrot.lane.b32.xlu0 %v3106_v39, %s3444_s25 }
 0x5ac   : > { %v893_v10 = vpop.xlane.xlu0 %892 }
 0x5ad   : > { %2898 = vrcp.f32 %v893_v10 }
 0x5b4   : > { %v1007_v11 = vpop.xlane.xlu0 %1006 }
 0x5b5   : > { %2900 = vrcp.f32 %v1007_v11 }
 0x5b8   : > { %v1012_v14 = vpop.permute.xlu0 %1011 }
 0x5b9   : > { %v1017_v17 = vsel %vm902_vm4, %v1012_v14, 0 }
 0x5ba   : > { %v2899_v12 = vpop.eup %2898 }
 0x5bb   : > { %v895_v13 = vmul.f32 %v2899_v12, %v2895_v6 }
 0x5bd   : > { %v896_v16 = vpack.c.bf16 %v895_v13, %v895_v13 }
 0x5bf   : > { %2684 = vmatmul.mubr.msk.bf16.vlgmr.msra.gmra.mxu0 %vm884_vm3, %v896_v16 }
 0x5c0   : > { %2694 = vmatpush3.bf16.msra.mxu0 %v1017_v17  ;;  %2695 = vmatprep.mubr.msk.bf16.mxu0 %vm2931_vm1, %v2930_v23 }
 0x5c1   : > { %2705 = vmatprep.subr.bf16.mxu0 %v2930_v23 }
 0x5c2   : > { %v2901_v18 = vpop.eup %2900 }
 0x5c3   : > { %v1009_v19 = vmul.f32 %v2901_v18, %v2897_v8 }
 0x5c5   : > { %v1010_v20 = vpack.c.bf16 %v1009_v19, %v1009_v19 }
 0x5c7   : > { %2696 = vmatmul.mubr.msk.bf16.vlgmr.msra.gmra.mxu0 %vm884_vm3, %v1010_v20 }
 0x5c8   : > { %2707 = vmatprep.mubr.msk.bf16.mxu0 %vm2931_vm1, %v2930_v23  ;;  %2706 = vmatpush3.bf16.msra.mxu0 %v2860_v21 }
 0x5c9   : > { %2719 = vmatprep.subr.bf16.mxu0 %v2930_v23 }
 0x67f   : > { %v940_v24 = vpop.f32.mrf.mxu0 }
 0x680   : > { %v946_v25 = vpack.c.bf16 %v940_v24, %v940_v24 }
 0x681   : > { %v2685_v26 = vpop.f32.mrf.mxu0 }
 0x682   : > { %2708 = vmatmul.mubr.msk.bf16.vlgmr.msra.gmra.mxu0 %vm835_vm2, %v946_v25 }
 0x683   : > { %v943_v27 = vpop.f32.mrf.mxu0  ;;  %2727 = vmatprep.mubr.msk.bf16.mxu0 %vm2931_vm1, %v2930_v23  ;;  %2720 = vmatpush3.bf16.msra.mxu0 %v2864_v0 }
 0x684   : > { %2721 = vmatprep.subr.bf16.mxu0 %v2930_v23 }
 0x685   : > { %v2686_v28 = vpop.f32.mrf.mxu0 }
 0x687   : > { %v1053_v29 = vpop.f32.mrf.mxu0  ;;  %2722 = vmatpush3.bf16.msra.mxu0 %v2865_v1 }
 0x688   : > { %v1059_v30 = vpack.c.bf16 %v1053_v29, %v1053_v29  ;;  %2723 = vmatprep.subr.bf16.mxu0 %v2930_v23 }
 0x689   : > { %v2697_v31 = vpop.f32.mrf.mxu0 }
 0x68a   : > { %2702 = vmatmul.mubr.msk.bf16.vlgmr.msra.gmra.mxu1 %vm835_vm2, %v1059_v30 }
 0x68b   : > { %v1056_v32 = vpop.f32.mrf.mxu0  ;;  %2715 = vmatprep.mubr.msk.bf16.mxu1 %vm2931_vm1, %v2930_v23  ;;  %2724 = vmatpush3.bf16.msra.mxu0 %v2866_v2 }
 0x68c   : > { %2725 = vmatprep.subr.bf16.mxu0 %v2930_v23 }
 0x68d   : > { %v2698_v33 = vpop.f32.mrf.mxu0 }
 0x68f   : > { %2726 = vmatpush3.bf16.msra.mxu0 %v2867_v3 }
 0x690   : > { %2745 = vmatprep.subr.bf16.mxu0 %v2930_v23 }
 0x742   : > { %v1152_v34 = vpop.f32.mrf.mxu0 }
 0x744   : > { %v2709_v35 = vpop.f32.mrf.mxu0 }
 0x745   : > { %v2868_v35 = vld [vmem:[%s3456_s29 + $0x18] sm:$0xff]  }
 0x746   : > { %v1155_v36 = vpop.f32.mrf.mxu0 }
 0x747   : > { %v2869_v36 = vld [vmem:[%s3456_s29 + $0x10] sm:$0xff]  }
 0x748   : > { %v2710_v37 = vpop.f32.mrf.mxu0 }
 0x74a   : > { %v1103_v38 = vpop.f32.mrf.mxu1 }
 0x74b   : > { %v1153_v39 = vadd.f32 %v1152_v34, %v1103_v38 }
 0x74c   : > { %v2703_v41 = vpop.f32.mrf.mxu1 }
 0x74d   : > { %v1158_v42 = vadd.f32 %v1153_v39, %v3074_v15  ;;  %v2862_v15 = vld [vmem:[%s3430_s12 + $0x8] sm:$0xff]   ;;  %v2512_v41 = vld [vmem:[%s3457_s1 + $0x1] ss:$0 sm:$0xff] }
 0x74e   : > { %v1106_v43 = vpop.f32.mrf.mxu1  ;;  %2712 = vmatpush3.bf16.msra.mxu1 %v2862_v15 }
 0x74f   : > { %v3169_v44 = vadd.f32 %v2497_v40, %v1158_v42  ;;  %2713 = vmatprep.subr.bf16.mxu1 %v2930_v23  ;;  %v2513_v43 = vld [vmem:[%s3458_s6 + $0x1] ss:$0 sm:$0xff] }
 0x750   : > { %v2704_v45 = vpop.f32.mrf.mxu1 }
 0x751   : > { %v1169_v46 = vsel %vm702_vm0, %v3169_v44, 0.0 }
 0x752   : > { %1170 = vadd.xlane.f32.xlu1 %v1169_v46  ;;  %2714 = vmatpush3.bf16.msra.mxu1 %v2863_v53 }
 0x753   : > { %2731 = vmatprep.subr.bf16.mxu1 %v2930_v23 }
 0x7db   : > { %v1171_v47 = vpop.xlane.xlu1 %1170 }
 0x7dc   : > { %v1172_v49 = vmul.f32 0.03125, %v1171_v47  ;;  %v2519_v47 = vld [vmem:[%s3425_s7 + $0x1] ss:$0 sm:$0xff] }
 0x7de   : > { %v1173_v50 = vsub.f32 %v3169_v44, %v1172_v49 }
 0x7e0   : > { %v1174_v51 = vmul.f32 %v1173_v50, %v1173_v50 }
 0x7e2   : > { %v1175_v52 = vsel %vm702_vm0, %v1174_v51, 0.0 }
 0x7e3   : > { %1176 = vadd.xlane.f32.xlu0 %v1175_v52 }
 0x86c   : > { %v1177_v54 = vpop.xlane.xlu0 %1176 }
 0x86d   : > { %v1178_v55 = vmul.f32 0.03125, %v1177_v54 }
 0x86f   : > { %v1179_v56 = vadd.f32 1e-05, %v1178_v55 }
 0x871   : > { %2902 = vrsqrt.f32 %v1179_v56 }
 0x87e   : > { %v2903_v57 = vpop.eup %2902 }
 0x87f   : > { %v1181_v59 = vmul.f32 %v2903_v57, %v1173_v50 }
 0x881   : > { %v1188_v61 = vmul.f32 %v2498_v58, %v1181_v59 }
 0x883   : > { %v1195_v62 = vadd.f32 %v2499_v60, %v1188_v61 }
 0x885   : > { %v1196_v63 = vpack.c.bf16 %v1195_v62, %v1195_v62 }
 0x887   : > { %2716 = vmatmul.mubr.msk.bf16.vlgmr.msra.gmra.mxu1 %vm702_vm0, %v1196_v63 }
 0x888   : > { %2735 = vmatprep.mubr.msk.bf16.mxu1 %vm2931_vm1, %v2930_v23  ;;  %2732 = vmatpush3.bf16.msra.mxu1 %v2868_v35 }
 0x889   : > { %2733 = vmatprep.subr.bf16.mxu1 %v2930_v23 }
 0x88c   : > { %2734 = vmatpush3.bf16.msra.mxu1 %v2869_v36 }
 0x88d   : > { %2739 = vmatprep.subr.bf16.mxu1 %v2930_v23 }
 0x947   : > { %v1257_v5 = vpop.f32.mrf.mxu1 }
 0x948   : > { %v1258_v6 = vadd.f32 %v2500_v4, %v1257_v5 }
 0x949   : > { %v2717_v7 = vpop.f32.mrf.mxu1 }
 0x94a   : > { %v1263_v8 = vmul.f32 %v1258_v6, %v1258_v6 }
 0x94b   : > { %v1260_v9 = vpop.f32.mrf.mxu1 }
 0x94c   : > { %v1264_v10 = vmul.f32 %v1263_v8, %v1258_v6 }
 0x94d   : > { %v2718_v11 = vpop.f32.mrf.mxu1 }
 0x94e   : > { %v1265_v12 = vmul.f32 0.044715, %v1264_v10 }
 0x950   : > { %v1266_v13 = vadd.f32 %v1265_v12, %v1258_v6 }
 0x952   : > { %v1267_v14 = vmul.f32 0.7978846, %v1266_v13 }
 0x954   : > { %2904 = vtanh.f32 %v1267_v14 }
 0x961   : > { %v2905_v16 = vpop.eup %2904 }
 0x962   : > { %v1269_v17 = vadd.f32 1.0, %v2905_v16 }
 0x964   : > { %v1270_v18 = vmul.f32 0.5, %v1269_v17 }
 0x966   : > { %v1271_v19 = vmul.f32 %v1270_v18, %v1258_v6 }
 0x968   : > { %v1272_v20 = vpack.c.bf16 %v1271_v19, %v1271_v19 }
 0x96a   : > { %2728 = vmatmul.mubr.msk.bf16.vlgmr.msra.gmra.mxu0 %vm1305_vm5, %v1272_v20 }
 0x96b   : > { %2747 = vmatprep.mubr.msk.bf16.mxu0 %vm2931_vm1, %v2930_v23 }
 0xa2a   : > { %v1343_v21 = vpop.f32.mrf.mxu0 }
 0xa2b   : > { %v1349_v24 = vadd.f32 %v1343_v21, %v3169_v44 }
 0xa2c   : > { %v2729_v25 = vpop.f32.mrf.mxu0 }
 0xa2d   : > { %v3218_v26 = vadd.f32 %v2509_v22, %v1349_v24 }
 0xa2e   : > { %v1346_v27 = vpop.f32.mrf.mxu0 }
 0xa2f   : > { %v1362_v28 = vsel %vm702_vm0, %v3218_v26, 0.0 }
 0xa30   : > { %1363 = vadd.xlane.f32.xlu1 %v1362_v28  ;;  %v2730_v29 = vpop.f32.mrf.mxu0 }
 0xab9   : > { %v1364_v30 = vpop.xlane.xlu1 %1363 }
 0xaba   : > { %v1365_v31 = vmul.f32 0.03125, %v1364_v30 }
 0xabc   : > { %v1366_v32 = vsub.f32 %v3218_v26, %v1365_v31 }
 0xabe   : > { %v1367_v33 = vmul.f32 %v1366_v32, %v1366_v32 }
 0xac0   : > { %v1368_v34 = vsel %vm702_vm0, %v1367_v33, 0.0  ;;  %v2870_v33 = vld [vmem:[%s3426_s8 + $0x10] sm:$0xff]  }
 0xac1   : > { %1369 = vadd.xlane.f32.xlu0 %v1368_v34  ;;  %v2871_v34 = vld [vmem:[%s3426_s8 + $0x18] sm:$0xff]  }
 0xb4a   : > { %v1370_v37 = vpop.xlane.xlu0 %1369 }
 0xb4b   : > { %v1371_v38 = vmul.f32 0.03125, %v1370_v37 }
 0xb4d   : > { %v1372_v39 = vadd.f32 1e-05, %v1371_v38 }
 0xb4f   : > { %2906 = vrsqrt.f32 %v1372_v39 }
 0xb5c   : > { %v2907_v40 = vpop.eup %2906 }
 0xb5d   : > { %v1374_v42 = vmul.f32 %v2907_v40, %v1366_v32 }
 0xb5f   : > { %v1381_v44 = vmul.f32 %v2512_v41, %v1374_v42 }
 0xb61   : > { %v1388_v45 = vadd.f32 %v2513_v43, %v1381_v44 }
 0xb63   : > { %v1389_v46 = vpack.c.bf16 %v1388_v45, %v1388_v45 }
 0xb65   : > { %2736 = vmatmul.mubr.msk.bf16.vlgmr.msra.gmra.mxu1 %vm702_vm0, %v1389_v46 }
 0xb66   : > { %2741 = vmatprep.mubr.msk.bf16.mxu1 %vm2931_vm1, %v2930_v23 }
 0xc25   : > { %v1452_v49 = vpop.f32.mrf.mxu1 }
 0xc26   : > { %v1453_v50 = vadd.f32 %v2519_v47, %v1452_v49 }
 0xc27   : > { %v2737_v51 = vpop.f32.mrf.mxu1 }
 0xc28   : > { %v1463_v52 = vpack.c.bf16 %v1453_v50, %v1453_v50 }
 0xc29   : > { %v1455_v15 = vpop.f32.mrf.mxu1 }
 0xc2a   : > { %1578 = vrot.lane.b32.xlu0 %v1463_v52, %s2932_s2  ;;  %1465 = vrot.lane.b32.xlu1 %v1463_v52, %s2933_s27  ;;  %s3460_s2 = smov 64   ;;  %s3461_s27 = smov 48  }
 0xc2b   : > { %v2738_v53 = vpop.f32.mrf.mxu1 }
 0xc2e   : > { %1576 = vrot.lane.b32.xlu1 %v1463_v52, %s2934_s30  ;;  %s690_s30 = scalar_lea.vmem %s3440_s22, %s3463_s28 }
 0xc9c   : > { %v1466_v54 = vpop.permute.xlu1 %1465  ;;  %v1579_v56 = vpop.permute.xlu0 %1578 }
 0xc9d   : > { %v1471_v55 = vsel %vm835_vm2, %v1466_v54, 0  ;;  %v1584_v57 = vsel %vm835_vm2, %v1579_v56, 0 }
 0xc9e   : > { %2740 = vmatpush3.bf16.xpose.msra.mxu1 %v1471_v55 }
 0xc9f   : > { %2751 = vmatprep.subr.bf16.mxu1 %v2930_v23 }
 0xca0   : > { %v1577_v58 = vpop.permute.xlu1 %1576 }
 0xca5   : > { %2742 = vmatmul.mubr.msk.bf16.vlgmr.msra.gmra.mxu1 %vm835_vm2, %v1463_v52 }
 0xca6   : > { %2752 = vmatpush3.bf16.xpose.msra.mxu1 %v1584_v57  ;;  %2753 = vmatprep.mubr.msk.bf16.mxu1 %vm2931_vm1, %v2930_v23 }
 0xca7   : > { %2763 = vmatprep.subr.bf16.mxu1 %v2930_v23 }
 0xcad   : > { %2754 = vmatmul.mubr.msk.bf16.vlgmr.msra.gmra.mxu1 %vm835_vm2, %v1577_v58 }
 0xcae   : > { %2765 = vmatprep.mubr.msk.bf16.mxu1 %vm2931_vm1, %v2930_v23  ;;  %2764 = vmatpush3.bf16.msra.mxu1 %v2871_v34 }
 0xcaf   : > { %2775 = vmatprep.subr.bf16.mxu1 %v2930_v23 }
 0xd65   : > { %v1507_v59 = vpop.f32.mrf.mxu1 }
 0xd66   : > { %v1513_v60 = vmul.f32 0.25, %v1507_v59 }
 0xd67   : > { %v2743_v61 = vpop.f32.mrf.mxu1 }
 0xd68   : > { %v1514_v62 = vadd.f32 %v3129_v48, %v1513_v60 }
 0xd69   : > { %v1510_v63 = vpop.f32.mrf.mxu1 }
 0xd6a   : > { %v1515_v0 = vsel %vm884_vm3, %v1514_v62, -inf  ;;  %v2872_v63 = vld [vmem:[%s3430_s12 + $0x18] sm:$0xff]  }
 0xd6b   : > { %1516 = vmax.xlane.f32.xlu1 %v1515_v0  ;;  %v2744_v1 = vpop.f32.mrf.mxu1 }
 0xd6d   : > { %v1620_v2 = vpop.f32.mrf.mxu1 }
 0xd6e   : > { %v1626_v3 = vmul.f32 0.25, %v1620_v2 }
 0xd6f   : > { %v2755_v4 = vpop.f32.mrf.mxu1 }
 0xd70   : > { %v1627_v5 = vadd.f32 %v3129_v48, %v1626_v3  ;;  %v2539_v4 = vld [vmem:[%s3428_s10 + $0x1] ss:$0 sm:$0xff] }
 0xd71   : > { %v1623_v6 = vpop.f32.mrf.mxu1 }
 0xd72   : > { %v1628_v7 = vsel %vm884_vm3, %v1627_v5, -inf  ;;  %v2540_v6 = vld [vmem:[%s3429_s11 + $0x1] ss:$0 sm:$0xff] }
 0xd73   : > { %1629 = vmax.xlane.f32.xlu0 %v1628_v7  ;;  %v2756_v8 = vpop.f32.mrf.mxu1 }
 0xdf4   : > { %v1517_v9 = vpop.xlane.xlu1 %1516 }
 0xdf5   : > { %v1518_v10 = vsub.f32 %v1514_v62, %v1517_v9 }
 0xdf7   : > { %v1519_v11 = vmul.f32 1.442695, %v1518_v10  ;;  %v2874_v10 = vld [vmem:[%s3432_s14 + $0x38] sm:$0xff]  }
 0xdf9   : > { %2908 = vpow2.f32 %v1519_v11  ;;  %v2875_v11 = vld [vmem:[%s3432_s14 + $0x30] sm:$0xff]  }
 0xdfc   : > { %v1630_v12 = vpop.xlane.xlu0 %1629 }
 0xdfd   : > { %v1631_v13 = vsub.f32 %v1627_v5, %v1630_v12  ;;  %v2876_v12 = vld [vmem:[%s3432_s14 + $0x28] sm:$0xff]  }
 0xdff   : > { %v1632_v14 = vmul.f32 1.442695, %v1631_v13  ;;  %v2877_v13 = vld [vmem:[%s3432_s14 + $0x20] sm:$0xff]  }
 0xe01   : > { %2910 = vpow2.f32 %v1632_v14  ;;  %v2546_v14 = vld [vmem:[%s3431_s13 + $0x1] ss:$0 sm:$0xff] }
 0xe06   : > { %v2909_v16 = vpop.eup %2908 }
 0xe07   : > { %v1521_v17 = vsel %vm884_vm3, %v2909_v16, 0.0 }
 0xe08   : > { %1522 = vadd.xlane.f32.xlu0 %v1521_v17 }
 0xe0e   : > { %v2911_v18 = vpop.eup %2910 }
 0xe0f   : > { %v1634_v48 = vsel %vm884_vm3, %v2911_v18, 0.0 }
 0xe10   : > { %1635 = vadd.xlane.f32.xlu1 %v1634_v48 }
 0xe1e   : > { %1527 = vrot.lane.b32.xlu0 %v1463_v52, %s3460_s2 }
 0xe21   : > { %1640 = vrot.lane.b32.xlu1 %v1463_v52, %s3461_s27  ;;  %v2536_v52 = vld [vmem:[%s3427_s9 + $0x1] ss:$0 sm:$0xff] }
 0xe91   : > { %v1523_v19 = vpop.xlane.xlu0 %1522 }
 0xe92   : > { %2912 = vrcp.f32 %v1523_v19 }
 0xe95   : > { %v1528_v20 = vpop.permute.xlu0 %1527 }
 0xe96   : > { %v1533_v21 = vsel %vm902_vm4, %v1528_v20, 0 }
 0xe97   : > { %2746 = vmatpush3.bf16.msra.mxu0 %v1533_v21 }
 0xe98   : > { %2757 = vmatprep.subr.bf16.mxu0 %v2930_v23 }
 0xe99   : > { %v1636_v22 = vpop.xlane.xlu1 %1635 }
 0xe9a   : > { %2914 = vrcp.f32 %v1636_v22 }
 0xe9d   : > { %v1641_v27 = vpop.permute.xlu1 %1640 }
 0xe9e   : > { %v1646_v29 = vsel %vm902_vm4, %v1641_v27, 0 }
 0xe9f   : > { %v2913_v24 = vpop.eup %2912 }
 0xea0   : > { %v1525_v25 = vmul.f32 %v2913_v24, %v2909_v16 }
 0xea2   : > { %v1526_v28 = vpack.c.bf16 %v1525_v25, %v1525_v25 }
 0xea4   : > { %2748 = vmatmul.mubr.msk.bf16.vlgmr.msra.gmra.mxu0 %vm884_vm3, %v1526_v28 }
 0xea5   : > { %2758 = vmatpush3.bf16.msra.mxu0 %v1646_v29  ;;  %2759 = vmatprep.mubr.msk.bf16.mxu0 %vm2931_vm1, %v2930_v23 }
 0xea6   : > { %2769 = vmatprep.subr.bf16.mxu0 %v2930_v23 }
 0xea7   : > { %v2915_v30 = vpop.eup %2914 }
 0xea8   : > { %v1638_v31 = vmul.f32 %v2915_v30, %v2911_v18 }
 0xeaa   : > { %v1639_v32 = vpack.c.bf16 %v1638_v31, %v1638_v31 }
 0xeac   : > { %2760 = vmatmul.mubr.msk.bf16.vlgmr.msra.gmra.mxu0 %vm884_vm3, %v1639_v32 }
 0xead   : > { %2771 = vmatprep.mubr.msk.bf16.mxu0 %vm2931_vm1, %v2930_v23  ;;  %2770 = vmatpush3.bf16.msra.mxu0 %v2870_v33  ;;  %v2564_v33 = vld [vmem:[%s3433_s15 + $0x1] ss:$0 sm:$0xff] }
 0xeae   : > { %2783 = vmatprep.subr.bf16.mxu0 %v2930_v23 }
 0xf64   : > { %v1569_v35 = vpop.f32.mrf.mxu0 }
 0xf65   : > { %v1575_v36 = vpack.c.bf16 %v1569_v35, %v1569_v35 }
 0xf66   : > { %v2749_v37 = vpop.f32.mrf.mxu0 }
 0xf67   : > { %2772 = vmatmul.mubr.msk.bf16.vlgmr.msra.gmra.mxu0 %vm835_vm2, %v1575_v36 }
 0xf68   : > { %v1572_v38 = vpop.f32.mrf.mxu0  ;;  %2791 = vmatprep.mubr.msk.bf16.mxu0 %vm2931_vm1, %v2930_v23  ;;  %2784 = vmatpush3.bf16.msra.mxu0 %v2874_v10  ;;  %v2889_v10 = vld [vmem:[%s3438_s20] sm:$0xff]  }
 0xf69   : > { %2785 = vmatprep.subr.bf16.mxu0 %v2930_v23 }
 0xf6a   : > { %v2750_v39 = vpop.f32.mrf.mxu0 }
 0xf6c   : > { %v1682_v40 = vpop.f32.mrf.mxu0  ;;  %2786 = vmatpush3.bf16.msra.mxu0 %v2875_v11 }
 0xf6d   : > { %v1688_v41 = vpack.c.bf16 %v1682_v40, %v1682_v40  ;;  %2787 = vmatprep.subr.bf16.mxu0 %v2930_v23 }
 0xf6e   : > { %v2761_v42 = vpop.f32.mrf.mxu0 }
 0xf6f   : > { %2766 = vmatmul.mubr.msk.bf16.vlgmr.msra.gmra.mxu1 %vm835_vm2, %v1688_v41 }
 0xf70   : > { %v1685_v43 = vpop.f32.mrf.mxu0  ;;  %2779 = vmatprep.mubr.msk.bf16.mxu1 %vm2931_vm1, %v2930_v23  ;;  %2776 = vmatpush3.bf16.msra.mxu1 %v2872_v63 }
 0xf71   : > { %2777 = vmatprep.subr.bf16.mxu1 %v2930_v23  ;;  %2788 = vmatpush3.bf16.msra.mxu0 %v2876_v12 }
 0xf72   : > { %v2762_v44 = vpop.f32.mrf.mxu0  ;;  %2789 = vmatprep.subr.bf16.mxu0 %v2930_v23 }
 0xf75   : > { %2790 = vmatpush3.bf16.msra.mxu0 %v2877_v13 }
 0xf76   : > { %2811 = vmatprep.subr.bf16.mxu0 %v2930_v23 }
0x1027   : > { %v1781_v45 = vpop.f32.mrf.mxu0 }
0x1029   : > { %v2773_v46 = vpop.f32.mrf.mxu0 }
0x102a   : > { %v2879_v46 = vld [vmem:[%s3436_s18 + $0x28] sm:$0xff]  }
0x102b   : > { %v1784_v47 = vpop.f32.mrf.mxu0 }
0x102c   : > { %v2880_v47 = vld [vmem:[%s3436_s18 + $0x10] sm:$0xff]  }
0x102d   : > { %v2774_v49 = vpop.f32.mrf.mxu0 }
0x102e   : > { %v2881_v49 = vld [vmem:[%s3436_s18 + $0x20] sm:$0xff]  }
0x102f   : > { %v1732_v50 = vpop.f32.mrf.mxu1 }
0x1030   : > { %v1782_v51 = vadd.f32 %v1781_v45, %v1732_v50  ;;  %v2878_v45 = vld [vmem:[%s3436_s18 + $0x18] sm:$0xff]  }
0x1031   : > { %v2767_v15 = vpop.f32.mrf.mxu1 }
0x1032   : > { %v1787_v53 = vadd.f32 %v1782_v51, %v3218_v26  ;;  %v2873_v26 = vld [vmem:[%s3430_s12 + $0x10] sm:$0xff]  }
0x1033   : > { %v1735_v54 = vpop.f32.mrf.mxu1  ;;  %2778 = vmatpush3.bf16.msra.mxu1 %v2873_v26  ;;  %v2884_v26 = vld [vmem:[%s3436_s18] sm:$0xff]  }
0x1034   : > { %v1796_v55 = vadd.f32 %v2536_v52, %v1787_v53  ;;  %2795 = vmatprep.subr.bf16.mxu1 %v2930_v23  ;;  %v2565_v53 = vld [vmem:[%s3434_s16] ss:$0 sm:$0xff] }
0x1035   : > { %v2768_v56 = vpop.f32.mrf.mxu1 }
0x1036   : > { %v1801_v57 = vsel %vm702_vm0, %v1796_v55, 0.0 }
0x1037   : > { %1802 = vadd.xlane.f32.xlu1 %v1801_v57 }
0x10c0   : > { %v1803_v58 = vpop.xlane.xlu1 %1802 }
0x10c1   : > { %v1804_v59 = vmul.f32 0.03125, %v1803_v58 }
0x10c3   : > { %v1805_v60 = vsub.f32 %v1796_v55, %v1804_v59 }
0x10c5   : > { %v1806_v61 = vmul.f32 %v1805_v60, %v1805_v60 }
0x10c7   : > { %v1807_v62 = vsel %vm702_vm0, %v1806_v61, 0.0  ;;  %v2883_v61 = vld [vmem:[%s3436_s18 + $0x48] sm:$0xff]  }
0x10c8   : > { %1808 = vadd.xlane.f32.xlu0 %v1807_v62 }
0x1151   : > { %v1809_v0 = vpop.xlane.xlu0 %1808 }
0x1152   : > { %v1810_v1 = vmul.f32 0.03125, %v1809_v0  ;;  %v2885_v0 = vld [vmem:[%s3436_s18 + $0x40] sm:$0xff]  }
0x1154   : > { %v1811_v2 = vadd.f32 1e-05, %v1810_v1 }
0x1156   : > { %2916 = vrsqrt.f32 %v1811_v2  ;;  %v2886_v2 = vld [vmem:[%s3436_s18 + $0x38] sm:$0xff]  }
0x1163   : > { %v2917_v3 = vpop.eup %2916 }
0x1164   : > { %v1813_v5 = vmul.f32 %v2917_v3, %v1805_v60  ;;  %v2882_v60 = vld [vmem:[%s3436_s18 + $0x8] sm:$0xff]  }
0x1166   : > { %v1820_v7 = vmul.f32 %v2539_v4, %v1813_v5  ;;  %v2887_v5 = vld [vmem:[%s3436_s18 + $0x30] sm:$0xff]  }
0x1168   : > { %v1827_v8 = vadd.f32 %v2540_v6, %v1820_v7 }
0x116a   : > { %v1828_v9 = vpack.c.bf16 %v1827_v8, %v1827_v8  ;;  %v2888_v8 = vld [vmem:[%s3438_s20 + $0x8] ss:$0 sps:$4 sm:$0xff]  }
0x116c   : > { %2780 = vmatmul.mubr.msk.bf16.vlgmr.msra.gmra.mxu1 %vm702_vm0, %v1828_v9  ;;  %v2374_v9 = vsel %vm902_vm4, %v2888_v8, 0 }
0x116d   : > { %2799 = vmatprep.mubr.msk.bf16.mxu1 %vm2931_vm1, %v2930_v23  ;;  %2796 = vmatpush3.bf16.msra.mxu1 %v2878_v45 }
0x116e   : > { %2797 = vmatprep.subr.bf16.mxu1 %v2930_v23 }
0x1171   : > { %2798 = vmatpush3.bf16.msra.mxu1 %v2880_v47  ;;  %v2360_v47 = vld [vmem:[%s3439_s21] sm:$0x1] }
0x1172   : > { %2803 = vmatprep.subr.bf16.mxu1 %v2930_v23 }
0x122c   : > { %v1891_v16 = vpop.f32.mrf.mxu1 }
0x122d   : > { %v1892_v17 = vadd.f32 %v2546_v14, %v1891_v16 }
0x122e   : > { %v2781_v18 = vpop.f32.mrf.mxu1 }
0x122f   : > { %v1897_v48 = vmul.f32 %v1892_v17, %v1892_v17 }
0x1230   : > { %v1894_v19 = vpop.f32.mrf.mxu1 }
0x1231   : > { %v1898_v20 = vmul.f32 %v1897_v48, %v1892_v17 }
0x1232   : > { %v2782_v21 = vpop.f32.mrf.mxu1 }
0x1233   : > { %v1899_v22 = vmul.f32 0.044715, %v1898_v20 }
0x1235   : > { %v1900_v24 = vadd.f32 %v1899_v22, %v1892_v17 }
0x1237   : > { %v1901_v25 = vmul.f32 0.7978846, %v1900_v24 }
0x1239   : > { %2918 = vtanh.f32 %v1901_v25 }
0x1246   : > { %v2919_v27 = vpop.eup %2918 }
0x1247   : > { %v1903_v28 = vadd.f32 1.0, %v2919_v27 }
0x1249   : > { %v1904_v29 = vmul.f32 0.5, %v1903_v28 }
0x124b   : > { %v1905_v30 = vmul.f32 %v1904_v29, %v1892_v17 }
0x124d   : > { %v1906_v31 = vpack.c.bf16 %v1905_v30, %v1905_v30 }
0x124f   : > { %2792 = vmatmul.mubr.msk.bf16.vlgmr.msra.gmra.mxu0 %vm1305_vm5, %v1906_v31 }
0x1250   : > { %2815 = vmatprep.mubr.msk.bf16.mxu0 %vm2931_vm1, %v2930_v23  ;;  %2812 = vmatpush3.bf16.msra.mxu0 %v2879_v46 }
0x1251   : > { %2813 = vmatprep.subr.bf16.mxu0 %v2930_v23 }
0x1254   : > { %2814 = vmatpush3.bf16.msra.mxu0 %v2881_v49 }
0x1255   : > { %2827 = vmatprep.subr.bf16.mxu0 %v2930_v23 }
0x130f   : > { %v1977_v32 = vpop.f32.mrf.mxu0 }
0x1310   : > { %v1983_v34 = vadd.f32 %v1977_v32, %v1796_v55  ;;  %v2566_v55 = vld [vmem:[%s3435_s17] ss:$0 sm:$0xff] }
0x1311   : > { %v2793_v35 = vpop.f32.mrf.mxu0 }
0x1312   : > { %v1992_v36 = vadd.f32 %v2564_v33, %v1983_v34  ;;  %v2346_v34 = vld [vmem:[%s3437_s19] sm:$0xff] }
0x1313   : > { %v1980_v37 = vpop.f32.mrf.mxu0 }
0x1314   : > { %v1995_v38 = vsel %vm702_vm0, %v1992_v36, 0.0 }
0x1315   : > { %1996 = vadd.xlane.f32.xlu0 %v1995_v38  ;;  %v2794_v39 = vpop.f32.mrf.mxu0 }
0x139e   : > { %v1997_v40 = vpop.xlane.xlu0 %1996 }
0x139f   : > { %v1998_v41 = vmul.f32 0.03125, %v1997_v40 }
0x13a1   : > { %v1999_v42 = vsub.f32 %v1992_v36, %v1998_v41 }
0x13a3   : > { %v2000_v43 = vmul.f32 %v1999_v42, %v1999_v42 }
0x13a5   : > { %v2001_v44 = vsel %vm702_vm0, %v2000_v43, 0.0 }
0x13a6   : > { %2002 = vadd.xlane.f32.xlu1 %v2001_v44 }
0x142f   : > { %v2003_v50 = vpop.xlane.xlu1 %2002 }
0x1430   : > { %v2004_v51 = vmul.f32 0.03125, %v2003_v50 }
0x1432   : > { %v2005_v52 = vadd.f32 1e-05, %v2004_v51 }
0x1434   : > { %2920 = vrsqrt.f32 %v2005_v52 }
0x1441   : > { %v2921_v15 = vpop.eup %2920 }
0x1442   : > { %v2007_v54 = vmul.f32 %v2921_v15, %v1999_v42 }
0x1444   : > { %v2014_v56 = vmul.f32 %v2565_v53, %v2007_v54 }
0x1446   : > { %v2021_v57 = vadd.f32 %v2566_v55, %v2014_v56 }
0x1448   : > { %v2028_v58 = vrot.slane %v2021_v57, 1  ;;  %v2148_v59 = vrot.slane %v2021_v57, 2  ;;  %v2280_v1 = vrot.slane %v2021_v57, 4  ;;  %v2022_v3 = vpack.c.bf16 %v2021_v57, %v2021_v57 }
0x1449   : > { %v2214_v6 = vrot.slane %v2021_v57, 3 }
0x144a   : > { %v2032_v62 = vpack.c.bf16 %v2028_v58, %v2028_v58  ;;  %v2152_v63 = vpack.c.bf16 %v2148_v59, %v2148_v59  ;;  %v2283_v4 = vpack.c.bf16 %v2280_v1, %v2280_v1 }
0x144b   : > { %v2218_v7 = vpack.c.bf16 %v2214_v6, %v2214_v6 }
0x144c   : > { %2800 = vmatmul.mubr.msk.bf16.vlgmr.msra.gmra.mxu1 %vm702_vm0, %v2032_v62  ;;  %2816 = vmatmul.mubr.msk.bf16.vlgmr.msra.gmra.mxu0 %vm702_vm0, %v2152_v63 }
0x144d   : > { %2804 = vmatpush3.bf16.msra.mxu1 %v2882_v60  ;;  %2828 = vmatpush3.bf16.msra.mxu0 %v2883_v61 }
0x144e   : > { %2805 = vmatprep.subr.bf16.mxu1 %v2930_v23  ;;  %2829 = vmatprep.subr.bf16.mxu0 %v2930_v23 }
0x144f   : > { %2807 = vmatprep.mubr.msk.bf16.mxu1 %vm2931_vm1, %v2930_v23  ;;  %2831 = vmatprep.mubr.msk.bf16.mxu0 %vm2931_vm1, %v2930_v23 }
0x1451   : > { %2806 = vmatpush3.bf16.msra.mxu1 %v2884_v26  ;;  %2830 = vmatpush3.bf16.msra.mxu0 %v2885_v0 }
0x1452   : > { %2819 = vmatprep.subr.bf16.mxu1 %v2930_v23 }
0x1454   : > { %2808 = vmatmul.mubr.msk.bf16.vlgmr.msra.gmra.mxu1 %vm702_vm0, %v2022_v3  ;;  %2832 = vmatmul.mubr.msk.bf16.vlgmr.msra.gmra.mxu0 %vm702_vm0, %v2283_v4 }
0x1455   : > { %2820 = vmatpush3.bf16.msra.mxu1 %v2886_v2  ;;  %2823 = vmatprep.mubr.msk.bf16.mxu1 %vm2931_vm1, %v2930_v23 }
0x1456   : > { %2821 = vmatprep.subr.bf16.mxu1 %v2930_v23 }
0x1459   : > { %2822 = vmatpush3.bf16.msra.mxu1 %v2887_v5 }
0x145a   : > { %2835 = vmatprep.subr.bf16.mxu1 %v2930_v23 }
0x145c   : > { %2824 = vmatmul.mubr.msk.bf16.vlgmr.msra.gmra.mxu1 %vm702_vm0, %v2218_v7 }
0x145d   : > { %2839 = vmatprep.mubr.msk.bf16.mxu1 %vm2931_vm1, %v2930_v23  ;;  %2836 = vmatpush3.bf16.msra.mxu1 %v2374_v9 }
0x145e   : > { %2837 = vmatprep.subr.bf16.mxu1 %v2930_v23 }
0x1461   : > { %2838 = vmatpush3.bf16.msra.mxu1 %v2889_v10 }
0x150c   : > { %v2087_v11 = vpop.f32.mrf.mxu1  ;;  %v2207_v12 = vpop.f32.mrf.mxu0 }
0x150e   : > { %v2801_v13 = vpop.f32.mrf.mxu1  ;;  %v2817_v14 = vpop.f32.mrf.mxu0 }
0x1510   : > { %v2090_v16 = vpop.f32.mrf.mxu1  ;;  %v2210_v17 = vpop.f32.mrf.mxu0 }
0x1512   : > { %v2802_v18 = vpop.f32.mrf.mxu1  ;;  %v2818_v48 = vpop.f32.mrf.mxu0 }
0x1514   : > { %v2142_v19 = vpop.f32.mrf.mxu1  ;;  %v2338_v20 = vpop.f32.mrf.mxu0 }
0x1515   : > { %v2143_v24 = vadd.f32 %v2142_v19, %v2087_v11 }
0x1516   : > { %v2809_v21 = vpop.f32.mrf.mxu1  ;;  %v2833_v22 = vpop.f32.mrf.mxu0 }
0x1517   : > { %v2213_v30 = vadd.f32 %v2207_v12, %v2143_v24 }
0x1518   : > { %v2145_v25 = vpop.f32.mrf.mxu1  ;;  %v2341_v27 = vpop.f32.mrf.mxu0 }
0x151a   : > { %v2810_v28 = vpop.f32.mrf.mxu1  ;;  %v2834_v29 = vpop.f32.mrf.mxu0 }
0x151c   : > { %v2273_v23 = vpop.f32.mrf.mxu1 }
0x151d   : > { %v2279_v31 = vadd.f32 %v2273_v23, %v2213_v30 }
0x151e   : > { %v2825_v32 = vpop.f32.mrf.mxu1 }
0x151f   : > { %v2344_v33 = vadd.f32 %v2338_v20, %v2279_v31 }
0x1520   : > { %v2276_v35 = vpop.f32.mrf.mxu1 }
0x1521   : > { %v2345_v36 = vmax.f32 %v2344_v33, 0.0 }
0x1522   : > { %v2826_v37 = vpop.f32.mrf.mxu1 }
0x1523   : > { %v2347_v38 = vmul.f32 %v2346_v34, %v2345_v36 }
0x1525   : > { %v2349_v39 = vsel %vm2348_vm6, %v2347_v38, -inf }
0x1526   : > { %v2350_v40 = vrot.slane %v2349_v39, 4 }
0x1528   : > { %v2351_v41 = vmax.f32 %v2349_v39, %v2350_v40 }
0x152a   : > { %v2352_v42 = vrot.slane %v2351_v41, 2 }
0x152c   : > { %v2353_v43 = vmax.f32 %v2351_v41, %v2352_v42 }
0x152e   : > { %v2354_v44 = vrot.slane %v2353_v43, 1 }
0x1530   : > { %v2355_v45 = vmax.f32 %v2353_v43, %v2354_v44 }
0x1532   : > { %v2356_v46 = vpack.c.bf16 %v2355_v45, %v2355_v45 }
0x1534   : > { %2840 = vmatmul.mubr.msk.bf16.vlgmr.msra.gmra.mxu1 %vm2348_vm6, %v2356_v46 }
0x15f4   : > { %v2410_v49 = vpop.f32.mrf.mxu1 }
0x15f5   : > { %v2411_v50 = vadd.f32 %v2410_v49, %v2360_v47 }
0x15f6   : > { %v2841_v51 = vpop.f32.mrf.mxu1 }
0x15f7   : > { %2417 = vst.msk [vmem:[%s690_s30] sm:$0x1] %vm2416_vm7, %v2411_v50 }
0x15f8   : > { %v2413_v52 = vpop.f32.mrf.mxu1 }
0x15fa   : > { %v2842_v15 = vpop.f32.mrf.mxu1 }
0x15fb PF: > { %s32_s3 = sadd.s32 1, %s2928_s3  }
0x15fc   : > { %p29_p4 = scmp.ge.s32.totalorder %s32_s3, 4  }
0x15fe   :  { %31 = sbr.rel (!%p29_p4) target bundleno = 8 (0x8), region = 157 }

</bundles_post_ra>
